<compile_context>
chip_gen: v5e
topology: v5e:2x2
jax: 0.10.0
libtpu: 0.0.40
codegen_flags: <defaults>
</compile_context>

<pallas_src>
import functools

import jax
import jax.numpy as jnp
from jax.experimental import pallas as pl
from jax.experimental.pallas import tpu as pltpu

# Layer sizes from the PyTorch module.
ENC_DIMS = [28 * 28, 128, 64, 16, 3]
DEC_DIMS = [3, 16, 64, 128, 28 * 28]

LATENT_PAD = 128           # latent 3 -> 128 lanes (zero-padded)
DEC_PAD = 896              # 784 -> 896 = 7*128 lanes (zero-padded)


def _round_up(n, m):
    return ((n + m - 1) // m) * m


def _autoencoder_kernel(x_ref,
                        w1, b1, w2, b2, w3, b3, w4, b4,      # encoder params
                        w5, b5, w6, b6, w7, b7, w8, b8,      # decoder params
                        enc_ref, dec_ref):
    """Fused 8-layer MLP autoencoder forward for one batch tile."""
    x = x_ref[...]

    # ---- encoder: Linear+Tanh x3, then Linear (no activation) ----
    # Layer 1 (784->128) carries ~46% of the FLOPs: bf16 operands, f32 accumulation.
    h = jnp.tanh(jnp.dot(x.astype(jnp.bfloat16), w1[...],
                         preferred_element_type=jnp.float32) + b1[...])
    h = jnp.tanh(jnp.dot(h, w2[...], preferred_element_type=jnp.float32) + b2[...])
    h = jnp.tanh(jnp.dot(h, w3[...], preferred_element_type=jnp.float32) + b3[...])
    # Latent layer: output zero-padded 3 -> 128 lanes so the store is lane-dense.
    encoded = jnp.dot(h, w4[...], preferred_element_type=jnp.float32) + b4[...]
    enc_ref[...] = encoded.astype(enc_ref.dtype)

    # ---- decoder: Linear+Tanh x3, then Linear+Sigmoid ----
    # w5 has zero rows for the padded latent lanes, so the padding is a no-op.
    d = jnp.tanh(jnp.dot(encoded, w5[...], preferred_element_type=jnp.float32) + b5[...])
    d = jnp.tanh(jnp.dot(d, w6[...], preferred_element_type=jnp.float32) + b6[...])
    d = jnp.tanh(jnp.dot(d, w7[...], preferred_element_type=jnp.float32) + b7[...])
    # Layer 8 (128->896, zero-padded cols) carries ~52% of the FLOPs: bf16 operands.
    logits = jnp.dot(d.astype(jnp.bfloat16), w8[...],
                     preferred_element_type=jnp.float32) + b8[...]
    # Sigmoid with the divide pushed onto the EUP reciprocal slot.
    dec_ref[...] = pl.reciprocal(1.0 + jnp.exp(-logits), approx=True).astype(dec_ref.dtype)


def init_params(key):
    """Deterministic PyTorch-Linear-style init: U(-1/sqrt(fan_in), 1/sqrt(fan_in)).

    Weights are stored as (in_features, out_features); biases as (1, out_features).
    """
    dims = list(zip(ENC_DIMS[:-1], ENC_DIMS[1:])) + list(zip(DEC_DIMS[:-1], DEC_DIMS[1:]))
    params = []
    for (fan_in, fan_out) in dims:
        key, kw, kb = jax.random.split(key, 3)
        bound = 1.0 / jnp.sqrt(float(fan_in))
        w = jax.random.uniform(kw, (fan_in, fan_out), jnp.float32, -bound, bound)
        b = jax.random.uniform(kb, (1, fan_out), jnp.float32, -bound, bound)
        params.append((w, b))
    return params


def _prepare_kernel_params(params):
    """Zero-pad lane dims to multiples of 128 and cast the big-matmul weights to bf16."""
    (w1, b1), (w2, b2), (w3, b3), (w4, b4), (w5, b5), (w6, b6), (w7, b7), (w8, b8) = params

    # Latent: pad output cols of layer 4 and input rows of layer 5 with zeros.
    w4p = jnp.pad(w4, ((0, 0), (0, LATENT_PAD - w4.shape[1])))
    b4p = jnp.pad(b4, ((0, 0), (0, LATENT_PAD - b4.shape[1])))
    w5p = jnp.pad(w5, ((0, LATENT_PAD - w5.shape[0]), (0, 0)))

    # Reconstruction: pad output cols of layer 8 with zeros (sliced off in wrapper).
    w8p = jnp.pad(w8, ((0, 0), (0, DEC_PAD - w8.shape[1])))
    b8p = jnp.pad(b8, ((0, 0), (0, DEC_PAD - b8.shape[1])))

    return [
        w1.astype(jnp.bfloat16), b1,
        w2, b2,
        w3, b3,
        w4p, b4p,
        w5p, b5,
        w6, b6,
        w7, b7,
        w8p.astype(jnp.bfloat16), b8p,
    ]


@functools.partial(jax.jit, static_argnames=("tile_b",))
def autoencoder_forward(x, params, *, tile_b=512):
    """Runs the fused autoencoder Pallas kernel. x: (B, 784) float32.

    tile_b=512 fits comfortably in v7x's 64 MiB VMEM (weights + double-buffered
    batch tiles + intermediates stay well under the 32 MiB scoped default);
    on v5e/v6e (128 MiB) tile_b up to 1024-2048 is fine.
    """
    B, D = x.shape
    assert D == ENC_DIMS[0]

    # Cap / align the batch tile and pad the batch so the grid divides evenly.
    tile_b = _round_up(min(int(tile_b), _round_up(B, 8)), 8)
    B_pad = _round_up(B, tile_b)
    if B_pad != B:
        x = jnp.pad(x, ((0, B_pad - B), (0, 0)))

    flat_params = _prepare_kernel_params(params)

    # Full-array BlockSpecs for all (small) parameters -- resident in VMEM,
    # constant index_map so they are fetched once and reused across grid steps.
    def full_spec(arr):
        return pl.BlockSpec(arr.shape, lambda i: (0, 0))

    param_specs = [full_spec(a) for a in flat_params]

    grid = (B_pad // tile_b,)
    out_shapes = (
        jax.ShapeDtypeStruct((B_pad, LATENT_PAD), jnp.float32),   # padded encoded
        jax.ShapeDtypeStruct((B_pad, DEC_PAD), jnp.float32),      # padded decoded
    )

    encoded_p, decoded_p = pl.pallas_call(
        _autoencoder_kernel,
        out_shape=out_shapes,
        grid_spec=pltpu.PrefetchScalarGridSpec(
            num_scalar_prefetch=0,
            grid=grid,
            in_specs=[pl.BlockSpec((tile_b, D), lambda i: (i, 0))] + param_specs,
            out_specs=[
                pl.BlockSpec((tile_b, LATENT_PAD), lambda i: (i, 0)),
                pl.BlockSpec((tile_b, DEC_PAD), lambda i: (i, 0)),
            ],
        ),
        compiler_params=pltpu.CompilerParams(
            dimension_semantics=("parallel",)),   # batch axis shards across TCs (v7x)
    )(x, *flat_params)

    # Strip the lane/batch padding outside the kernel.
    encoded = encoded_p[:B, :ENC_DIMS[-1]]
    decoded = decoded_p[:B, :DEC_DIMS[-1]]
    return encoded, decoded


def reference_forward(x, params):
    """Pure-JAX f32 reference matching the PyTorch module semantics."""
    h = x
    # encoder
    for idx in range(4):
        w, b = params[idx]
        h = h @ w + b
        if idx < 3:
            h = jnp.tanh(h)
    encoded = h
    # decoder
    d = encoded
    for idx in range(4, 8):
        w, b = params[idx]
        d = d @ w + b
        if idx < 7:
            d = jnp.tanh(d)
        else:
            d = jax.nn.sigmoid(d)
    return encoded, d


if __name__ == "__main__":
    key = jax.random.PRNGKey(0)
    k_param, k_x = jax.random.split(key)

    params = init_params(k_param)

    # Ragged batch (not a multiple of the tile) exercises the padding path and
    # gives a grid of 3 steps, so both TensorCores are used on v7x.
    B = 300
    x = jax.random.uniform(k_x, (B, 28 * 28), jnp.float32)   # MNIST-like flat input

    encoded, decoded = autoencoder_forward(x, params, tile_b=128)
    jax.block_until_ready((encoded, decoded))

    enc_ref, dec_ref = reference_forward(x, params)
    assert encoded.shape == (B, 3) and decoded.shape == (B, 28 * 28)
    # Loose tolerance accounts for bf16 operands on the two large matmuls
    # (observed error ~1e-3) and the approx EUP reciprocal in the sigmoid.
    assert jnp.allclose(encoded, enc_ref, atol=2e-2), float(jnp.max(jnp.abs(encoded - enc_ref)))
    assert jnp.allclose(decoded, dec_ref, atol=2e-2), float(jnp.max(jnp.abs(decoded - dec_ref)))

    print("KERNEL_OK")
</pallas_src>

<mosaic_0001>
module attributes {stable_mosaic.version = 11 : i64} {
  func.func @_autoencoder_kernel(%arg0: i32, %arg1: memref<128x784xf32, #tpu.memory_space<vmem>>, %arg2: memref<784x128xbf16, #tpu.memory_space<vmem>>, %arg3: memref<1x128xf32, #tpu.memory_space<vmem>>, %arg4: memref<128x64xf32, #tpu.memory_space<vmem>>, %arg5: memref<1x64xf32, #tpu.memory_space<vmem>>, %arg6: memref<64x16xf32, #tpu.memory_space<vmem>>, %arg7: memref<1x16xf32, #tpu.memory_space<vmem>>, %arg8: memref<16x128xf32, #tpu.memory_space<vmem>>, %arg9: memref<1x128xf32, #tpu.memory_space<vmem>>, %arg10: memref<128x16xf32, #tpu.memory_space<vmem>>, %arg11: memref<1x16xf32, #tpu.memory_space<vmem>>, %arg12: memref<16x64xf32, #tpu.memory_space<vmem>>, %arg13: memref<1x64xf32, #tpu.memory_space<vmem>>, %arg14: memref<64x128xf32, #tpu.memory_space<vmem>>, %arg15: memref<1x128xf32, #tpu.memory_space<vmem>>, %arg16: memref<128x896xbf16, #tpu.memory_space<vmem>>, %arg17: memref<1x896xf32, #tpu.memory_space<vmem>>, %arg18: memref<128x128xf32, #tpu.memory_space<vmem>>, %arg19: memref<128x896xf32, #tpu.memory_space<vmem>>) attributes {dimension_semantics = [#tpu.dimension_semantics<parallel>], iteration_bounds = array<i64: 3>, scalar_prefetch = 0 : i64, scratch_operands = 0 : i64, tpu.core_type = #tpu.core_type<tc>, window_params = [{transform_indices = @transform_0, window_bounds = array<i64: 128, 784>}, {pipeline_mode = #tpu.pipeline_mode<synchronous>, transform_indices = @transform_1, window_bounds = array<i64: 784, 128>}, {pipeline_mode = #tpu.pipeline_mode<synchronous>, transform_indices = @transform_2, window_bounds = array<i64: 1, 128>}, {pipeline_mode = #tpu.pipeline_mode<synchronous>, transform_indices = @transform_3, window_bounds = array<i64: 128, 64>}, {pipeline_mode = #tpu.pipeline_mode<synchronous>, transform_indices = @transform_4, window_bounds = array<i64: 1, 64>}, {pipeline_mode = #tpu.pipeline_mode<synchronous>, transform_indices = @transform_5, window_bounds = array<i64: 64, 16>}, {pipeline_mode = #tpu.pipeline_mode<synchronous>, transform_indices = @transform_6, window_bounds = array<i64: 1, 16>}, {pipeline_mode = #tpu.pipeline_mode<synchronous>, transform_indices = @transform_7, window_bounds = array<i64: 16, 128>}, {pipeline_mode = #tpu.pipeline_mode<synchronous>, transform_indices = @transform_8, window_bounds = array<i64: 1, 128>}, {pipeline_mode = #tpu.pipeline_mode<synchronous>, transform_indices = @transform_9, window_bounds = array<i64: 128, 16>}, {pipeline_mode = #tpu.pipeline_mode<synchronous>, transform_indices = @transform_10, window_bounds = array<i64: 1, 16>}, {pipeline_mode = #tpu.pipeline_mode<synchronous>, transform_indices = @transform_11, window_bounds = array<i64: 16, 64>}, {pipeline_mode = #tpu.pipeline_mode<synchronous>, transform_indices = @transform_12, window_bounds = array<i64: 1, 64>}, {pipeline_mode = #tpu.pipeline_mode<synchronous>, transform_indices = @transform_13, window_bounds = array<i64: 64, 128>}, {pipeline_mode = #tpu.pipeline_mode<synchronous>, transform_indices = @transform_14, window_bounds = array<i64: 1, 128>}, {pipeline_mode = #tpu.pipeline_mode<synchronous>, transform_indices = @transform_15, window_bounds = array<i64: 128, 896>}, {pipeline_mode = #tpu.pipeline_mode<synchronous>, transform_indices = @transform_16, window_bounds = array<i64: 1, 896>}, {transform_indices = @transform_17, window_bounds = array<i64: 128, 128>}, {transform_indices = @transform_18, window_bounds = array<i64: 128, 896>}]} {
    %c0 = arith.constant 0 : index
    %c0_0 = arith.constant 0 : index
    %0 = vector.load %arg1[%c0, %c0_0] : memref<128x784xf32, #tpu.memory_space<vmem>>, vector<128x784xf32>
    %1 = arith.truncf %0 : vector<128x784xf32> to vector<128x784xbf16>
    %c0_1 = arith.constant 0 : index
    %c0_2 = arith.constant 0 : index
    %2 = vector.load %arg2[%c0_1, %c0_2] : memref<784x128xbf16, #tpu.memory_space<vmem>>, vector<784x128xbf16>
    %cst = arith.constant dense<0.000000e+00> : vector<128x128xf32>
    %3 = tpu.matmul %1, %2, %cst {dimension_numbers = #tpu.dot_dimension_numbers<[1], [0], [0], [1], [0, 0, 1, 1], [], []>} : vector<128x784xbf16>, vector<784x128xbf16>, vector<128x128xf32> -> vector<128x128xf32>
    %c0_3 = arith.constant 0 : index
    %c0_4 = arith.constant 0 : index
    %4 = vector.load %arg3[%c0_3, %c0_4] : memref<1x128xf32, #tpu.memory_space<vmem>>, vector<1x128xf32>
    %5 = vector.broadcast %4 : vector<1x128xf32> to vector<128x128xf32>
    %6 = arith.addf %3, %5 : vector<128x128xf32>
    %7 = math.tanh %6 : vector<128x128xf32>
    %c0_5 = arith.constant 0 : index
    %c0_6 = arith.constant 0 : index
    %8 = vector.load %arg4[%c0_5, %c0_6] : memref<128x64xf32, #tpu.memory_space<vmem>>, vector<128x64xf32>
    %cst_7 = arith.constant dense<0.000000e+00> : vector<128x64xf32>
    %9 = tpu.matmul %7, %8, %cst_7 {dimension_numbers = #tpu.dot_dimension_numbers<[1], [0], [0], [1], [0, 0, 1, 1], [], []>} : vector<128x128xf32>, vector<128x64xf32>, vector<128x64xf32> -> vector<128x64xf32>
    %c0_8 = arith.constant 0 : index
    %c0_9 = arith.constant 0 : index
    %10 = vector.load %arg5[%c0_8, %c0_9] : memref<1x64xf32, #tpu.memory_space<vmem>>, vector<1x64xf32>
    %11 = vector.broadcast %10 : vector<1x64xf32> to vector<128x64xf32>
    %12 = arith.addf %9, %11 : vector<128x64xf32>
    %13 = math.tanh %12 : vector<128x64xf32>
    %c0_10 = arith.constant 0 : index
    %c0_11 = arith.constant 0 : index
    %14 = vector.load %arg6[%c0_10, %c0_11] : memref<64x16xf32, #tpu.memory_space<vmem>>, vector<64x16xf32>
    %cst_12 = arith.constant dense<0.000000e+00> : vector<128x16xf32>
    %15 = tpu.matmul %13, %14, %cst_12 {dimension_numbers = #tpu.dot_dimension_numbers<[1], [0], [0], [1], [0, 0, 1, 1], [], []>} : vector<128x64xf32>, vector<64x16xf32>, vector<128x16xf32> -> vector<128x16xf32>
    %c0_13 = arith.constant 0 : index
    %c0_14 = arith.constant 0 : index
    %16 = vector.load %arg7[%c0_13, %c0_14] : memref<1x16xf32, #tpu.memory_space<vmem>>, vector<1x16xf32>
    %17 = vector.broadcast %16 : vector<1x16xf32> to vector<128x16xf32>
    %18 = arith.addf %15, %17 : vector<128x16xf32>
    %19 = math.tanh %18 : vector<128x16xf32>
    %c0_15 = arith.constant 0 : index
    %c0_16 = arith.constant 0 : index
    %20 = vector.load %arg8[%c0_15, %c0_16] : memref<16x128xf32, #tpu.memory_space<vmem>>, vector<16x128xf32>
    %cst_17 = arith.constant dense<0.000000e+00> : vector<128x128xf32>
    %21 = tpu.matmul %19, %20, %cst_17 {dimension_numbers = #tpu.dot_dimension_numbers<[1], [0], [0], [1], [0, 0, 1, 1], [], []>} : vector<128x16xf32>, vector<16x128xf32>, vector<128x128xf32> -> vector<128x128xf32>
    %c0_18 = arith.constant 0 : index
    %c0_19 = arith.constant 0 : index
    %22 = vector.load %arg9[%c0_18, %c0_19] : memref<1x128xf32, #tpu.memory_space<vmem>>, vector<1x128xf32>
    %23 = vector.broadcast %22 : vector<1x128xf32> to vector<128x128xf32>
    %24 = arith.addf %21, %23 : vector<128x128xf32>
    %c0_20 = arith.constant 0 : index
    %c0_21 = arith.constant 0 : index
    %25 = vector.load %arg18[%c0_20, %c0_21] : memref<128x128xf32, #tpu.memory_space<vmem>>, vector<128x128xf32>
    tpu.vector_store %arg18[%c0_20, %c0_21], %24 {strides = array<i32>} : memref<128x128xf32, #tpu.memory_space<vmem>>, vector<128x128xf32>,
    %c0_22 = arith.constant 0 : index
    %c0_23 = arith.constant 0 : index
    %26 = vector.load %arg10[%c0_22, %c0_23] : memref<128x16xf32, #tpu.memory_space<vmem>>, vector<128x16xf32>
    %cst_24 = arith.constant dense<0.000000e+00> : vector<128x16xf32>
    %27 = tpu.matmul %24, %26, %cst_24 {dimension_numbers = #tpu.dot_dimension_numbers<[1], [0], [0], [1], [0, 0, 1, 1], [], []>} : vector<128x128xf32>, vector<128x16xf32>, vector<128x16xf32> -> vector<128x16xf32>
    %c0_25 = arith.constant 0 : index
    %c0_26 = arith.constant 0 : index
    %28 = vector.load %arg11[%c0_25, %c0_26] : memref<1x16xf32, #tpu.memory_space<vmem>>, vector<1x16xf32>
    %29 = vector.broadcast %28 : vector<1x16xf32> to vector<128x16xf32>
    %30 = arith.addf %27, %29 : vector<128x16xf32>
    %31 = math.tanh %30 : vector<128x16xf32>
    %c0_27 = arith.constant 0 : index
    %c0_28 = arith.constant 0 : index
    %32 = vector.load %arg12[%c0_27, %c0_28] : memref<16x64xf32, #tpu.memory_space<vmem>>, vector<16x64xf32>
    %cst_29 = arith.constant dense<0.000000e+00> : vector<128x64xf32>
    %33 = tpu.matmul %31, %32, %cst_29 {dimension_numbers = #tpu.dot_dimension_numbers<[1], [0], [0], [1], [0, 0, 1, 1], [], []>} : vector<128x16xf32>, vector<16x64xf32>, vector<128x64xf32> -> vector<128x64xf32>
    %c0_30 = arith.constant 0 : index
    %c0_31 = arith.constant 0 : index
    %34 = vector.load %arg13[%c0_30, %c0_31] : memref<1x64xf32, #tpu.memory_space<vmem>>, vector<1x64xf32>
    %35 = vector.broadcast %34 : vector<1x64xf32> to vector<128x64xf32>
    %36 = arith.addf %33, %35 : vector<128x64xf32>
    %37 = math.tanh %36 : vector<128x64xf32>
    %c0_32 = arith.constant 0 : index
    %c0_33 = arith.constant 0 : index
    %38 = vector.load %arg14[%c0_32, %c0_33] : memref<64x128xf32, #tpu.memory_space<vmem>>, vector<64x128xf32>
    %cst_34 = arith.constant dense<0.000000e+00> : vector<128x128xf32>
    %39 = tpu.matmul %37, %38, %cst_34 {dimension_numbers = #tpu.dot_dimension_numbers<[1], [0], [0], [1], [0, 0, 1, 1], [], []>} : vector<128x64xf32>, vector<64x128xf32>, vector<128x128xf32> -> vector<128x128xf32>
    %c0_35 = arith.constant 0 : index
    %c0_36 = arith.constant 0 : index
    %40 = vector.load %arg15[%c0_35, %c0_36] : memref<1x128xf32, #tpu.memory_space<vmem>>, vector<1x128xf32>
    %41 = vector.broadcast %40 : vector<1x128xf32> to vector<128x128xf32>
    %42 = arith.addf %39, %41 : vector<128x128xf32>
    %43 = math.tanh %42 : vector<128x128xf32>
    %44 = arith.truncf %43 : vector<128x128xf32> to vector<128x128xbf16>
    %c0_37 = arith.constant 0 : index
    %c0_38 = arith.constant 0 : index
    %45 = vector.load %arg16[%c0_37, %c0_38] : memref<128x896xbf16, #tpu.memory_space<vmem>>, vector<128x896xbf16>
    %cst_39 = arith.constant dense<0.000000e+00> : vector<128x896xf32>
    %46 = tpu.matmul %44, %45, %cst_39 {dimension_numbers = #tpu.dot_dimension_numbers<[1], [0], [0], [1], [0, 0, 1, 1], [], []>} : vector<128x128xbf16>, vector<128x896xbf16>, vector<128x896xf32> -> vector<128x896xf32>
    %c0_40 = arith.constant 0 : index
    %c0_41 = arith.constant 0 : index
    %47 = vector.load %arg17[%c0_40, %c0_41] : memref<1x896xf32, #tpu.memory_space<vmem>>, vector<1x896xf32>
    %48 = vector.broadcast %47 : vector<1x896xf32> to vector<128x896xf32>
    %49 = arith.addf %46, %48 : vector<128x896xf32>
    %cst_42 = arith.constant 0.000000e+00 : f32
    %50 = vector.broadcast %cst_42 : f32 to vector<128x896xf32>
    %51 = arith.subf %50, %49 : vector<128x896xf32>
    %52 = math.exp %51 : vector<128x896xf32>
    %cst_43 = arith.constant 1.000000e+00 : f32
    %53 = vector.broadcast %cst_43 : f32 to vector<128x896xf32>
    %54 = arith.addf %53, %52 : vector<128x896xf32>
    %55 = tpu.reciprocal %54 {approx = true} : vector<128x896xf32> -> vector<128x896xf32>
    %c0_44 = arith.constant 0 : index
    %c0_45 = arith.constant 0 : index
    %56 = vector.load %arg19[%c0_44, %c0_45] : memref<128x896xf32, #tpu.memory_space<vmem>>, vector<128x896xf32>
    tpu.vector_store %arg19[%c0_44, %c0_45], %55 {strides = array<i32>} : memref<128x896xf32, #tpu.memory_space<vmem>>, vector<128x896xf32>,
    return
  }
  func.func @transform_0(%arg0: i32) -> (i32, i32) {
    %c0_i32 = arith.constant 0 : i32
    %c0_i32_0 = arith.constant 0 : i32
    return %arg0, %c0_i32 : i32, i32
  }
  func.func @transform_1(%arg0: i32) -> (i32, i32) {
    %c0_i32 = arith.constant 0 : i32
    %c0_i32_0 = arith.constant 0 : i32
    %c0_i32_1 = arith.constant 0 : i32
    return %c0_i32, %c0_i32_0 : i32, i32
  }
  func.func @transform_2(%arg0: i32) -> (i32, i32) {
    %c0_i32 = arith.constant 0 : i32
    %c0_i32_0 = arith.constant 0 : i32
    %c0_i32_1 = arith.constant 0 : i32
    return %c0_i32, %c0_i32_0 : i32, i32
  }
  func.func @transform_3(%arg0: i32) -> (i32, i32) {
    %c0_i32 = arith.constant 0 : i32
    %c0_i32_0 = arith.constant 0 : i32
    %c0_i32_1 = arith.constant 0 : i32
    return %c0_i32, %c0_i32_0 : i32, i32
  }
  func.func @transform_4(%arg0: i32) -> (i32, i32) {
    %c0_i32 = arith.constant 0 : i32
    %c0_i32_0 = arith.constant 0 : i32
    %c0_i32_1 = arith.constant 0 : i32
    return %c0_i32, %c0_i32_0 : i32, i32
  }
  func.func @transform_5(%arg0: i32) -> (i32, i32) {
    %c0_i32 = arith.constant 0 : i32
    %c0_i32_0 = arith.constant 0 : i32
    %c0_i32_1 = arith.constant 0 : i32
    return %c0_i32, %c0_i32_0 : i32, i32
  }
  func.func @transform_6(%arg0: i32) -> (i32, i32) {
    %c0_i32 = arith.constant 0 : i32
    %c0_i32_0 = arith.constant 0 : i32
    %c0_i32_1 = arith.constant 0 : i32
    return %c0_i32, %c0_i32_0 : i32, i32
  }
  func.func @transform_7(%arg0: i32) -> (i32, i32) {
    %c0_i32 = arith.constant 0 : i32
    %c0_i32_0 = arith.constant 0 : i32
    %c0_i32_1 = arith.constant 0 : i32
    return %c0_i32, %c0_i32_0 : i32, i32
  }
  func.func @transform_8(%arg0: i32) -> (i32, i32) {
    %c0_i32 = arith.constant 0 : i32
    %c0_i32_0 = arith.constant 0 : i32
    %c0_i32_1 = arith.constant 0 : i32
    return %c0_i32, %c0_i32_0 : i32, i32
  }
  func.func @transform_9(%arg0: i32) -> (i32, i32) {
    %c0_i32 = arith.constant 0 : i32
    %c0_i32_0 = arith.constant 0 : i32
    %c0_i32_1 = arith.constant 0 : i32
    return %c0_i32, %c0_i32_0 : i32, i32
  }
  func.func @transform_10(%arg0: i32) -> (i32, i32) {
    %c0_i32 = arith.constant 0 : i32
    %c0_i32_0 = arith.constant 0 : i32
    %c0_i32_1 = arith.constant 0 : i32
    return %c0_i32, %c0_i32_0 : i32, i32
  }
  func.func @transform_11(%arg0: i32) -> (i32, i32) {
    %c0_i32 = arith.constant 0 : i32
    %c0_i32_0 = arith.constant 0 : i32
    %c0_i32_1 = arith.constant 0 : i32
    return %c0_i32, %c0_i32_0 : i32, i32
  }
  func.func @transform_12(%arg0: i32) -> (i32, i32) {
    %c0_i32 = arith.constant 0 : i32
    %c0_i32_0 = arith.constant 0 : i32
    %c0_i32_1 = arith.constant 0 : i32
    return %c0_i32, %c0_i32_0 : i32, i32
  }
  func.func @transform_13(%arg0: i32) -> (i32, i32) {
    %c0_i32 = arith.constant 0 : i32
    %c0_i32_0 = arith.constant 0 : i32
    %c0_i32_1 = arith.constant 0 : i32
    return %c0_i32, %c0_i32_0 : i32, i32
  }
  func.func @transform_14(%arg0: i32) -> (i32, i32) {
    %c0_i32 = arith.constant 0 : i32
    %c0_i32_0 = arith.constant 0 : i32
    %c0_i32_1 = arith.constant 0 : i32
    return %c0_i32, %c0_i32_0 : i32, i32
  }
  func.func @transform_15(%arg0: i32) -> (i32, i32) {
    %c0_i32 = arith.constant 0 : i32
    %c0_i32_0 = arith.constant 0 : i32
    %c0_i32_1 = arith.constant 0 : i32
    return %c0_i32, %c0_i32_0 : i32, i32
  }
  func.func @transform_16(%arg0: i32) -> (i32, i32) {
    %c0_i32 = arith.constant 0 : i32
    %c0_i32_0 = arith.constant 0 : i32
    %c0_i32_1 = arith.constant 0 : i32
    return %c0_i32, %c0_i32_0 : i32, i32
  }
  func.func @transform_17(%arg0: i32) -> (i32, i32) {
    %c0_i32 = arith.constant 0 : i32
    %c0_i32_0 = arith.constant 0 : i32
    return %arg0, %c0_i32 : i32, i32
  }
  func.func @transform_18(%arg0: i32) -> (i32, i32) {
    %c0_i32 = arith.constant 0 : i32
    %c0_i32_0 = arith.constant 0 : i32
    return %arg0, %c0_i32 : i32, i32
  }
}

</mosaic_0001>

<bundles_post_ra>
// kernel: autoencoder_forward.1
= control target key start
LH: loop header
LB: loop body
LE: loop exit
PB: predicated region body
PF: predicated region fallthrough
CT: control target
= control target key end

     0   :  { %s5155_s27 = smov 0   ;;  %s6587_s0 = inlined_call_operand.vmem [shape: f32[384,784], index: 0, kind: input, shape index: {}]   ;;  %s6588_s1 = inlined_call_operand.vmem [shape: bf16[784,128], index: 1, kind: input, shape index: {}]   ;;  %s6589_s2 = inlined_call_operand.vmem [shape: f32[1,128], index: 2, kind: input, shape index: {}]   ;;  %s6590_s3 = inlined_call_operand.vmem [shape: f32[128,64], index: 3, kind: input, shape index: {}]   ;;  %s6591_s4 = inlined_call_operand.vmem [shape: f32[1,64], index: 4, kind: input, shape index: {}]   ;;  %s6592_s5 = inlined_call_operand.vmem [shape: f32[64,16], index: 5, kind: input, shape index: {}]   ;;  %s6593_s6 = inlined_call_operand.vmem [shape: f32[1,16], index: 6, kind: input, shape index: {}]   ;;  %s6594_s7 = inlined_call_operand.vmem [shape: f32[16,128], index: 7, kind: input, shape index: {}]   ;;  %s6595_s8 = inlined_call_operand.vmem [shape: f32[1,128], index: 8, kind: input, shape index: {}]   ;;  %s6596_s9 = inlined_call_operand.vmem [shape: f32[128,16], index: 9, kind: input, shape index: {}]   ;;  %s6597_s10 = inlined_call_operand.vmem [shape: f32[1,16], index: 10, kind: input, shape index: {}]   ;;  %s6598_s11 = inlined_call_operand.vmem [shape: f32[16,64], index: 11, kind: input, shape index: {}]   ;;  %s6599_s12 = inlined_call_operand.vmem [shape: f32[1,64], index: 12, kind: input, shape index: {}]   ;;  %s6600_s13 = inlined_call_operand.vmem [shape: f32[64,128], index: 13, kind: input, shape index: {}]   ;;  %s6601_s14 = inlined_call_operand.vmem [shape: f32[1,128], index: 14, kind: input, shape index: {}]   ;;  %s6602_s15 = inlined_call_operand.vmem [shape: bf16[128,896], index: 15, kind: input, shape index: {}]   ;;  %s6603_s16 = inlined_call_operand.vmem [shape: f32[1,896], index: 16, kind: input, shape index: {}]   ;;  %s6604_s17 = inlined_call_operand.vmem [shape: f32[384,128], index: 17, kind: output, shape index: {0}]   ;;  %s6605_s18 = inlined_call_operand.vmem [shape: f32[384,896], index: 18, kind: output, shape index: {1}]  }
   0x1   :  { %6607 = sst [smem:[#allocation2_spill]] %s6587_s0 }
   0x2   :  { %6608 = sst [smem:[#allocation3_spill]] %s6588_s1 }
   0x3   :  { %6609 = sst [smem:[#allocation4_spill]] %s6589_s2 }
   0x4 LB: > { %s3785_s28 = sadd.s32 4294967295, %s5058_s27   ;;  %p3789_p0 = scmp.ge.s32.totalorder %s5058_s27, 1  ;;  %s5058_s27 = sphi %s5155_s27, %s29_s27  }
   0x5   : > { %p517_p1 = scmp.lt.s32.totalorder %s5058_s27, 4 }
   0x7   : > { %p518_p2 = pnand %p3789_p0, %p517_p1 }
   0x8   : > { %s6610_s0 = sld [smem:[#allocation3_spill]] (!%p518_p2)  ;;  %s3790_s29 = sshll.u32 (!%p518_p2), %s3785_s28, 4 }
   0x9   : > { %521 = sbr.rel (%p518_p2) target bundleno = 1553 (0x611), region = 88  ;;  %p579_p3 = scmp.lt.s32.totalorder (!%p518_p2), %s3790_s29, 47 }
   0xa   : > { %s6611_s23 = sld [smem:[#allocation2_spill]] (!%p518_p2) }
   0xb   : > { %s6612_s30 = sld [smem:[#allocation4_spill]] (!%p518_p2) }
   0xe   : > { %v4297_v0 = vld [vmem:[%s6610_s0 + $0x38] sm:$0xff]  ;;  %v4296_v4 = vld [vmem:[%s6610_s0 + $0x30] sm:$0xff]  ;;  %v4295_v8 = vld [vmem:[%s6610_s0 + $0x28] sm:$0xff]  ;;  %s6614_s29 = smov (!%p579_p3, %s3790_s29), 47  ;;  %vm1163_vm0 = vcmask 130048   ;;  %vm1660_vm1 = vcmask 523264  }
   0xf   : > { %v4305_v1 = vld [vmem:[%s6610_s0 + $0x78] sm:$0xff]  ;;  %1188 = vmatpush.bf16.msra.mxu0 %v4297_v0  ;;  %v4304_v5 = vld [vmem:[%s6610_s0 + $0x70] sm:$0xff]  ;;  %v4303_v9 = vld [vmem:[%s6610_s0 + $0x68] sm:$0xff]  ;;  %s4395_s25 = smul.u32 56, %s6614_s29  ;;  %s3793_s19 = sshll.u32 %s6614_s29, 3 }
  0x10   : > { %v4313_v2 = vld [vmem:[%s6610_s0 + $0xb8] sm:$0xff]  ;;  %1237 = vmatpush.bf16.msra.mxu1 %v4305_v1  ;;  %v4312_v6 = vld [vmem:[%s6610_s0 + $0xb0] sm:$0xff]  ;;  %v4311_v10 = vld [vmem:[%s6610_s0 + $0xa8] sm:$0xff]  ;;  %s5769_s2 = scalar_lea.vmem %s6604_s17, %s3793_s19 }
  0x11   : > { %v4321_v3 = vld [vmem:[%s6610_s0 + $0xf8] sm:$0xff]  ;;  %1286 = vmatpush.bf16.msra.mxu2 %v4313_v2  ;;  %v4320_v7 = vld [vmem:[%s6610_s0 + $0xf0] sm:$0xff]  ;;  %v4319_v11 = vld [vmem:[%s6610_s0 + $0xe8] sm:$0xff]  ;;  %s5249_s28 = scalar_lea.vmem %s6611_s23, %s4395_s25 }
  0x12   : > { %1335 = vmatpush.bf16.msra.mxu3 %v4321_v3  ;;  %v4294_v12 = vld [vmem:[%s6610_s0 + $0x20] sm:$0xff]  ;;  %v4293_v16 = vld [vmem:[%s6610_s0 + $0x18] sm:$0xff]  ;;  %v4292_v20 = vld [vmem:[%s6610_s0 + $0x10] sm:$0xff] }
  0x13   : > { %1189 = vmatpush.bf16.msra.mxu0 %v4296_v4  ;;  %v4302_v13 = vld [vmem:[%s6610_s0 + $0x60] sm:$0xff]  ;;  %v4301_v17 = vld [vmem:[%s6610_s0 + $0x58] sm:$0xff]  ;;  %v4300_v21 = vld [vmem:[%s6610_s0 + $0x50] sm:$0xff] }
  0x14   : > { %1238 = vmatpush.bf16.msra.mxu1 %v4304_v5  ;;  %v4310_v14 = vld [vmem:[%s6610_s0 + $0xa0] sm:$0xff]  ;;  %v4309_v18 = vld [vmem:[%s6610_s0 + $0x98] sm:$0xff]  ;;  %v4308_v22 = vld [vmem:[%s6610_s0 + $0x90] sm:$0xff] }
  0x15   : > { %1287 = vmatpush.bf16.msra.mxu2 %v4312_v6  ;;  %v4318_v15 = vld [vmem:[%s6610_s0 + $0xe0] sm:$0xff]  ;;  %v4317_v19 = vld [vmem:[%s6610_s0 + $0xd8] sm:$0xff]  ;;  %v4316_v23 = vld [vmem:[%s6610_s0 + $0xd0] sm:$0xff] }
  0x16   : > { %1336 = vmatpush.bf16.msra.mxu3 %v4320_v7  ;;  %v4291_v24 = vld [vmem:[%s6610_s0 + $0x8] sm:$0xff]  ;;  %v4290_v28 = vld [vmem:[%s6610_s0] sm:$0xff]  ;;  %v606_v33 = vld [vmem:[%s5249_s28 + $0x38] sm:$0xff] }
  0x17   : > { %1190 = vmatpush.bf16.msra.mxu0 %v4295_v8  ;;  %v4299_v25 = vld [vmem:[%s6610_s0 + $0x48] sm:$0xff]  ;;  %v4298_v29 = vld [vmem:[%s6610_s0 + $0x40] sm:$0xff]  ;;  %v601_v36 = vld [vmem:[%s5249_s28 + $0x10] sm:$0xff] }
  0x18   : > { %1239 = vmatpush.bf16.msra.mxu1 %v4303_v9  ;;  %v4307_v26 = vld [vmem:[%s6610_s0 + $0x88] sm:$0xff]  ;;  %v4306_v30 = vld [vmem:[%s6610_s0 + $0x80] sm:$0xff]  ;;  %v602_v38 = vld [vmem:[%s5249_s28 + $0x18] sm:$0xff] }
  0x19   : > { %1288 = vmatpush.bf16.msra.mxu2 %v4311_v10  ;;  %v4315_v27 = vld [vmem:[%s6610_s0 + $0xc8] sm:$0xff]  ;;  %v4314_v31 = vld [vmem:[%s6610_s0 + $0xc0] sm:$0xff]  ;;  %v609_v39 = vld [vmem:[%s5249_s28 + $0x50] sm:$0xff] }
  0x1a   : > { %1337 = vmatpush.bf16.msra.mxu3 %v4319_v11  ;;  %v599_v32 = vld [vmem:[%s5249_s28] sm:$0xff]  ;;  %v600_v34 = vld [vmem:[%s5249_s28 + $0x8] sm:$0xff]  ;;  %v4329_v41 = vld [vmem:[%s6610_s0 + $0x138] sm:$0xff]  ;;  %v714_v45 = vpack.c.bf16 %v609_v39, %v602_v38 }
  0x1b   : > { %1191 = vmatpush.bf16.msra.mxu0 %v4294_v12  ;;  %v607_v35 = vld [vmem:[%s5249_s28 + $0x40] sm:$0xff]  ;;  %v608_v37 = vld [vmem:[%s5249_s28 + $0x48] sm:$0xff]  ;;  %v711_v42 = vpack.c.bf16 %v606_v33, %v599_v32  ;;  %v4337_v46 = vld [vmem:[%s6610_s0 + $0x178] sm:$0xff] }
  0x1c   : > { %1240 = vmatpush.bf16.msra.mxu1 %v4302_v13  ;;  %v4338_v40 = vld [vmem:[%s6610_s0 + $0x180] sm:$0xff]  ;;  %v712_v43 = vpack.c.bf16 %v607_v35, %v600_v34  ;;  %v713_v44 = vpack.c.bf16 %v608_v37, %v601_v36  ;;  %v4328_v47 = vld [vmem:[%s6610_s0 + $0x130] sm:$0xff]  ;;  %v4327_v49 = vld [vmem:[%s6610_s0 + $0x128] sm:$0xff] }
  0x1d   : > { %1289 = vmatpush.bf16.msra.mxu2 %v4310_v14  ;;  %v4336_v48 = vld [vmem:[%s6610_s0 + $0x170] sm:$0xff]  ;;  %v4335_v50 = vld [vmem:[%s6610_s0 + $0x168] sm:$0xff]  ;;  %v614_v53 = vld [vmem:[%s5249_s28 + $0x78] sm:$0xff] }
  0x1e   : > { %1338 = vmatpush.bf16.msra.mxu3 %v4318_v15  ;;  %v613_v51 = vld [vmem:[%s5249_s28 + $0x70] sm:$0xff]  ;;  %v620_v52 = vld [vmem:[%s5249_s28 + $0xa8] sm:$0xff]  ;;  %v615_v55 = vld [vmem:[%s5249_s28 + $0x80] sm:$0xff] }
  0x1f   : > { %1192 = vmatpush.bf16.msra.mxu0 %v4293_v16  ;;  %v621_v54 = vld [vmem:[%s5249_s28 + $0xb0] sm:$0xff]  ;;  %v622_v56 = vld [vmem:[%s5249_s28 + $0xb8] sm:$0xff]  ;;  %v616_v57 = vld [vmem:[%s5249_s28 + $0x88] sm:$0xff]  ;;  %v718_v59 = vpack.c.bf16 %v620_v52, %v613_v51 }
  0x20   : > { %1241 = vmatpush.bf16.msra.mxu1 %v4301_v17  ;;  %v623_v58 = vld [vmem:[%s5249_s28 + $0xc0] sm:$0xff]  ;;  %v719_v60 = vpack.c.bf16 %v621_v54, %v614_v53  ;;  %v720_v61 = vpack.c.bf16 %v622_v56, %v615_v55  ;;  %v634_v2 = vld [vmem:[%s5249_s28 + $0x118] sm:$0xff]  ;;  %v628_v3 = vld [vmem:[%s5249_s28 + $0xe8] sm:$0xff] }
  0x21   : > { %1290 = vmatpush.bf16.msra.mxu2 %v4309_v18  ;;  %v721_v62 = vpack.c.bf16 %v623_v58, %v616_v57  ;;  %v4326_v63 = vld [vmem:[%s6610_s0 + $0x120] sm:$0xff]  ;;  %v629_v5 = vld [vmem:[%s5249_s28 + $0xf0] sm:$0xff]  ;;  %v636_v6 = vld [vmem:[%s5249_s28 + $0x128] sm:$0xff] }
  0x22   : > { %1339 = vmatpush.bf16.msra.mxu3 %v4317_v19  ;;  %v4334_v0 = vld [vmem:[%s6610_s0 + $0x160] sm:$0xff]  ;;  %v630_v7 = vld [vmem:[%s5249_s28 + $0xf8] sm:$0xff]  ;;  %v637_v8 = vld [vmem:[%s5249_s28 + $0x130] sm:$0xff]  ;;  %v727_v11 = vpack.c.bf16 %v636_v6, %v629_v5 }
  0x23   : > { %1193 = vmatpush.bf16.msra.mxu0 %v4292_v20  ;;  %v627_v1 = vld [vmem:[%s5249_s28 + $0xe0] sm:$0xff]  ;;  %v728_v12 = vpack.c.bf16 %v637_v8, %v630_v7  ;;  %v4325_v13 = vld [vmem:[%s6610_s0 + $0x118] sm:$0xff]  ;;  %v641_v15 = vld [vmem:[%s5249_s28 + $0x150] sm:$0xff] }
  0x24   : > { %1242 = vmatpush.bf16.msra.mxu1 %v4300_v21  ;;  %v635_v4 = vld [vmem:[%s5249_s28 + $0x120] sm:$0xff]  ;;  %v725_v9 = vpack.c.bf16 %v634_v2, %v627_v1  ;;  %v4333_v14 = vld [vmem:[%s6610_s0 + $0x158] sm:$0xff]  ;;  %v648_v16 = vld [vmem:[%s5249_s28 + $0x188] sm:$0xff] }
  0x25   : > { %1291 = vmatpush.bf16.msra.mxu2 %v4308_v22  ;;  %v726_v10 = vpack.c.bf16 %v635_v4, %v628_v3  ;;  %v642_v17 = vld [vmem:[%s5249_s28 + $0x158] sm:$0xff]  ;;  %v649_v18 = vld [vmem:[%s5249_s28 + $0x190] sm:$0xff]  ;;  %v643_v19 = vld [vmem:[%s5249_s28 + $0x160] sm:$0xff] }
  0x26   : > { %1340 = vmatpush.bf16.msra.mxu3 %v4316_v23  ;;  %v650_v20 = vld [vmem:[%s5249_s28 + $0x198] sm:$0xff]  ;;  %v644_v21 = vld [vmem:[%s5249_s28 + $0x168] sm:$0xff]  ;;  %v651_v22 = vld [vmem:[%s5249_s28 + $0x1a0] sm:$0xff]  ;;  %v732_v23 = vpack.c.bf16 %v648_v16, %v641_v15 }
  0x27   : > { %1194 = vmatpush.bf16.msra.mxu0 %v4291_v24  ;;  %v733_v24 = vpack.c.bf16 %v649_v18, %v642_v17  ;;  %v663_v32 = vld [vmem:[%s5249_s28 + $0x200] sm:$0xff]  ;;  %v657_v33 = vld [vmem:[%s5249_s28 + $0x1d0] sm:$0xff]  ;;  %v664_v34 = vld [vmem:[%s5249_s28 + $0x208] sm:$0xff] }
  0x28   : > { %1243 = vmatpush.bf16.msra.mxu1 %v4299_v25  ;;  %v734_v25 = vpack.c.bf16 %v650_v20, %v643_v19  ;;  %v658_v35 = vld [vmem:[%s5249_s28 + $0x1d8] sm:$0xff]  ;;  %v665_v36 = vld [vmem:[%s5249_s28 + $0x210] sm:$0xff]  ;;  %v741_v39 = vpack.c.bf16 %v664_v34, %v657_v33  ;;  %v4322_v55 = vld [vmem:[%s6610_s0 + $0x100] sm:$0xff] }
  0x29   : > { %1292 = vmatpush.bf16.msra.mxu2 %v4307_v26  ;;  %v735_v26 = vpack.c.bf16 %v651_v22, %v644_v21  ;;  %v4330_v56 = vld [vmem:[%s6610_s0 + $0x140] sm:$0xff]  ;;  %v690_v58 = vld [vmem:[%s5249_s28 + $0x2d8] sm:$0xff]  ;;  %v697_v5 = vld [vmem:[%s5249_s28 + $0x310] sm:$0xff] }
  0x2a   : > { %1341 = vmatpush.bf16.msra.mxu3 %v4315_v27  ;;  %v4324_v27 = vld [vmem:[%s6610_s0 + $0x110] sm:$0xff]  ;;  %v683_v57 = vld [vmem:[%s5249_s28 + $0x2a0] sm:$0xff]  ;;  %v704_v6 = vld [vmem:[%s5249_s28 + $0x348] sm:$0xff] }
  0x2b   : > { %1195 = vmatpush.bf16.msra.mxu0 %v4290_v28  ;;  %v4332_v28 = vld [vmem:[%s6610_s0 + $0x150] sm:$0xff]  ;;  %v753_v1 = vpack.c.bf16 %v690_v58, %v683_v57  ;;  %v698_v7 = vld [vmem:[%s5249_s28 + $0x318] sm:$0xff]  ;;  %v603_v18 = vld [vmem:[%s5249_s28 + $0x20] sm:$0xff] }
  0x2c   : > { %1244 = vmatpush.bf16.msra.mxu1 %v4298_v29  ;;  %v655_v29 = vld [vmem:[%s5249_s28 + $0x1c0] sm:$0xff]  ;;  %v705_v8 = vld [vmem:[%s5249_s28 + $0x350] sm:$0xff]  ;;  %v1562_v17 = vld [vmem:[%s6590_s3 + $0x78] sm:$0xff] }
  0x2d   : > { %1293 = vmatpush.bf16.msra.mxu2 %v4306_v30  ;;  %v662_v30 = vld [vmem:[%s5249_s28 + $0x1f8] sm:$0xff]  ;;  %v1561_v19 = vld [vmem:[%s6590_s3 + $0x70] sm:$0xff]  ;;  %v604_v21 = vld [vmem:[%s5249_s28 + $0x28] sm:$0xff] }
  0x2e   : > { %1342 = vmatpush.bf16.msra.mxu3 %v4314_v31  ;;  %1196 = vmatmul.bf16.vlgmr.msra.gmra.mxu0 %v711_v42  ;;  %v656_v31 = vld [vmem:[%s5249_s28 + $0x1c8] sm:$0xff]  ;;  %v739_v37 = vpack.c.bf16 %v662_v30, %v655_v29  ;;  %v610_v20 = vld [vmem:[%s5249_s28 + $0x58] sm:$0xff]  ;;  %v611_v22 = vld [vmem:[%s5249_s28 + $0x60] sm:$0xff] }
  0x2f   : > { %1384 = vmatpush.bf16.msrb.mxu0 %v4329_v41  ;;  %1245 = vmatmul.bf16.vlgmr.msra.gmra.mxu1 %v712_v43  ;;  %v740_v38 = vpack.c.bf16 %v663_v32, %v656_v31  ;;  %v4323_v41 = vld [vmem:[%s6610_s0 + $0x108] sm:$0xff]  ;;  %v669_v43 = vld [vmem:[%s5249_s28 + $0x230] sm:$0xff] }
  0x30   : > { %1294 = vmatmul.bf16.vlgmr.msra.gmra.mxu2 %v713_v44  ;;  %1433 = vmatpush.bf16.msrb.mxu1 %v4337_v46  ;;  %v4331_v42 = vld [vmem:[%s6610_s0 + $0x148] sm:$0xff]  ;;  %v677_v46 = vld [vmem:[%s5249_s28 + $0x270] sm:$0xff] }
  0x31   : > { %1489 = vmatpush.bf16.msrb.mxu2 %v4338_v40  ;;  %1343 = vmatmul.bf16.vlgmr.msra.gmra.mxu3 %v714_v45  ;;  %v742_v40 = vpack.c.bf16 %v665_v36, %v658_v35  ;;  %v676_v44 = vld [vmem:[%s5249_s28 + $0x268] sm:$0xff]  ;;  %v670_v45 = vld [vmem:[%s5249_s28 + $0x238] sm:$0xff] }
  0x32   : > { %v746_v51 = vpack.c.bf16 %v676_v44, %v669_v43  ;;  %v747_v52 = vpack.c.bf16 %v677_v46, %v670_v45  ;;  %1567 = vmatpush.msrb.mxu3 %v1562_v17  ;;  %v1560_v33 = vld [vmem:[%s6590_s3 + $0x68] sm:$0xff]  ;;  %v618_v43 = vld [vmem:[%s5249_s28 + $0x98] sm:$0xff]  ;;  %v625_v44 = vld [vmem:[%s5249_s28 + $0xd0] sm:$0xff] }
  0x33   : > { %1385 = vmatpush.bf16.msrb.mxu0 %v4328_v47  ;;  %v671_v47 = vld [vmem:[%s5249_s28 + $0x240] sm:$0xff]  ;;  %v626_v46 = vld [vmem:[%s5249_s28 + $0xd8] sm:$0xff] }
  0x34   : > { %1434 = vmatpush.bf16.msrb.mxu1 %v4336_v48  ;;  %v678_v48 = vld [vmem:[%s5249_s28 + $0x278] sm:$0xff]  ;;  %1568 = vmatpush.msrb.mxu3 %v1561_v19  ;;  %v619_v45 = vld [vmem:[%s5249_s28 + $0xa0] sm:$0xff] }
  0x35   : > { %v748_v53 = vpack.c.bf16 %v678_v48, %v671_v47 }
  0x36   : > { %1569 = vmatpush.msrb.mxu3 %v1560_v33 }
  0x37   : > { %1386 = vmatpush.bf16.msrb.mxu0 %v4327_v49  ;;  %v672_v49 = vld [vmem:[%s5249_s28 + $0x248] sm:$0xff] }
  0x38   : > { %1435 = vmatpush.bf16.msrb.mxu1 %v4335_v50  ;;  %v679_v50 = vld [vmem:[%s5249_s28 + $0x280] sm:$0xff] }
  0x39   : > { %v749_v54 = vpack.c.bf16 %v679_v50, %v672_v49  ;;  %v723_v49 = vpack.c.bf16 %v625_v44, %v618_v43 }
  0x3b   : > { %1387 = vmatpush.bf16.msrb.mxu0 %v4326_v63  ;;  %v686_v63 = vld [vmem:[%s5249_s28 + $0x2b8] sm:$0xff] }
  0x3c   : > { %1436 = vmatpush.bf16.msrb.mxu1 %v4334_v0  ;;  %v693_v0 = vld [vmem:[%s5249_s28 + $0x2f0] sm:$0xff] }
  0x3d   : > { %v756_v4 = vpack.c.bf16 %v693_v0, %v686_v63  ;;  %v631_v63 = vld [vmem:[%s5249_s28 + $0x100] sm:$0xff]  ;;  %v1557_v0 = vld [vmem:[%s6590_s3 + $0x50] sm:$0xff] }
  0x3e   : > { %1201 = vmatmul.bf16.gmra.mxu0 %v718_v59  ;;  %v684_v59 = vld [vmem:[%s5249_s28 + $0x2a8] sm:$0xff] }
  0x3f   : > { %1250 = vmatmul.bf16.gmra.mxu1 %v719_v60  ;;  %1388 = vmatpush.bf16.msrb.mxu0 %v4325_v13  ;;  %v691_v60 = vld [vmem:[%s5249_s28 + $0x2e0] sm:$0xff]  ;;  %v760_v13 = vpack.c.bf16 %v704_v6, %v697_v5  ;;  %v640_v5 = vld [vmem:[%s5249_s28 + $0x148] sm:$0xff] }
  0x40   : > { %1299 = vmatmul.bf16.gmra.mxu2 %v720_v61  ;;  %1437 = vmatpush.bf16.msrb.mxu1 %v4333_v14  ;;  %v685_v61 = vld [vmem:[%s5249_s28 + $0x2b0] sm:$0xff]  ;;  %v754_v2 = vpack.c.bf16 %v691_v60, %v684_v59  ;;  %v761_v14 = vpack.c.bf16 %v705_v8, %v698_v7 }
  0x41   : > { %1348 = vmatmul.bf16.gmra.mxu3 %v721_v62  ;;  %v692_v62 = vld [vmem:[%s5249_s28 + $0x2e8] sm:$0xff] }
  0x42   : > { %v755_v3 = vpack.c.bf16 %v692_v62, %v685_v61 }
  0x43   : > { %1389 = vmatpush.bf16.msrb.mxu0 %v4324_v27  ;;  %v716_v27 = vpack.c.bf16 %v611_v22, %v604_v21  ;;  %v645_v22 = vld [vmem:[%s5249_s28 + $0x170] sm:$0xff] }
  0x44   : > { %1438 = vmatpush.bf16.msrb.mxu1 %v4332_v28 }
  0x47   : > { %1390 = vmatpush.bf16.msrb.mxu0 %v4323_v41  ;;  %v1559_v41 = vld [vmem:[%s6590_s3 + $0x60] sm:$0xff] }
  0x48   : > { %1439 = vmatpush.bf16.msrb.mxu1 %v4331_v42  ;;  %v624_v42 = vld [vmem:[%s5249_s28 + $0xc8] sm:$0xff]  ;;  %1570 = vmatpush.msrb.mxu3 %v1559_v41 }
  0x4b   : > { %1391 = vmatpush.bf16.msrb.mxu0 %v4322_v55 }
  0x4c   : > { %1440 = vmatpush.bf16.msrb.mxu1 %v4330_v56  ;;  %v1558_v56 = vld [vmem:[%s6590_s3 + $0x58] sm:$0xff] }
  0x4d   : > { %1571 = vmatpush.msrb.mxu3 %v1558_v56 }
  0x4e   : > { %1206 = vmatmul.bf16.gmra.mxu0 %v725_v9  ;;  %v699_v9 = vld [vmem:[%s5249_s28 + $0x320] sm:$0xff] }
  0x4f   : > { %1255 = vmatmul.bf16.gmra.mxu1 %v726_v10  ;;  %v706_v10 = vld [vmem:[%s5249_s28 + $0x358] sm:$0xff]  ;;  %1572 = vmatpush.msrb.mxu3 %v1557_v0 }
  0x50   : > { %1304 = vmatmul.bf16.gmra.mxu2 %v727_v11  ;;  %v700_v11 = vld [vmem:[%s5249_s28 + $0x328] sm:$0xff]  ;;  %v762_v15 = vpack.c.bf16 %v706_v10, %v699_v9 }
  0x51   : > { %1353 = vmatmul.bf16.gmra.mxu3 %v728_v12  ;;  %v707_v12 = vld [vmem:[%s5249_s28 + $0x360] sm:$0xff] }
  0x52   : > { %v763_v16 = vpack.c.bf16 %v707_v12, %v700_v11 }
  0x5e   : > { %1211 = vmatmul.bf16.gmra.mxu0 %v732_v23  ;;  %v5397_v23 = vld [vmem:[%s6612_s30] ss:$0 sm:$0xff] }
  0x5f   : > { %1260 = vmatmul.bf16.gmra.mxu1 %v733_v24  ;;  %v605_v24 = vld [vmem:[%s5249_s28 + $0x30] sm:$0xff] }
  0x60   : > { %1309 = vmatmul.bf16.gmra.mxu2 %v734_v25  ;;  %v612_v25 = vld [vmem:[%s5249_s28 + $0x68] sm:$0xff] }
  0x61   : > { %1358 = vmatmul.bf16.gmra.mxu3 %v735_v26  ;;  %v715_v26 = vpack.c.bf16 %v610_v20, %v603_v18  ;;  %v717_v30 = vpack.c.bf16 %v612_v25, %v605_v24  ;;  %v1555_v24 = vld [vmem:[%s6590_s3 + $0x40] sm:$0xff]  ;;  %v652_v25 = vld [vmem:[%s5249_s28 + $0x1a8] sm:$0xff] }
  0x6e   : > { %1216 = vmatmul.bf16.gmra.mxu0 %v739_v37 }
  0x6f   : > { %1265 = vmatmul.bf16.gmra.mxu1 %v740_v38 }
  0x70   : > { %1314 = vmatmul.bf16.gmra.mxu2 %v741_v39 }
  0x71   : > { %1363 = vmatmul.bf16.gmra.mxu3 %v742_v40  ;;  %v617_v40 = vld [vmem:[%s5249_s28 + $0x90] sm:$0xff] }
  0x72   : > { %v722_v48 = vpack.c.bf16 %v624_v42, %v617_v40  ;;  %v1554_v40 = vld [vmem:[%s6590_s3 + $0x38] sm:$0xff] }
  0x7e   : > { %1221 = vmatmul.bf16.gmra.mxu0 %v746_v51 }
  0x7f   : > { %1270 = vmatmul.bf16.gmra.mxu1 %v747_v52 }
  0x80   : > { %1319 = vmatmul.bf16.gmra.mxu2 %v748_v53  ;;  %v724_v53 = vpack.c.bf16 %v626_v46, %v619_v45 }
  0x81   : > { %1368 = vmatmul.bf16.gmra.mxu3 %v749_v54 }
  0x8e   : > { %1226 = vmatmul.bf16.gmra.mxu0 %v753_v1  ;;  %v638_v1 = vld [vmem:[%s5249_s28 + $0x138] sm:$0xff] }
  0x8f   : > { %1275 = vmatmul.bf16.gmra.mxu1 %v754_v2  ;;  %v632_v2 = vld [vmem:[%s5249_s28 + $0x108] sm:$0xff]  ;;  %v729_v7 = vpack.c.bf16 %v638_v1, %v631_v63 }
  0x90   : > { %1324 = vmatmul.bf16.gmra.mxu2 %v755_v3  ;;  %v639_v3 = vld [vmem:[%s5249_s28 + $0x140] sm:$0xff]  ;;  %v1552_v63 = vld [vmem:[%s6590_s3 + $0x28] sm:$0xff] }
  0x91   : > { %1373 = vmatmul.bf16.gmra.mxu3 %v756_v4  ;;  %v633_v4 = vld [vmem:[%s5249_s28 + $0x110] sm:$0xff]  ;;  %v730_v8 = vpack.c.bf16 %v639_v3, %v632_v2 }
  0x92   : > { %v731_v12 = vpack.c.bf16 %v640_v5, %v633_v4  ;;  %v673_v3 = vld [vmem:[%s5249_s28 + $0x250] sm:$0xff]  ;;  %v1551_v4 = vld [vmem:[%s6590_s3 + $0x20] sm:$0xff]  ;;  %v680_v5 = vld [vmem:[%s5249_s28 + $0x288] sm:$0xff] }
  0x9e   : > { %1231 = vmatmul.bf16.gmra.mxu0 %v760_v13 }
  0x9f   : > { %1280 = vmatmul.bf16.gmra.mxu1 %v761_v14 }
  0xa0   : > { %1329 = vmatmul.bf16.gmra.mxu2 %v762_v15  ;;  %v1556_v15 = vld [vmem:[%s6590_s3 + $0x48] sm:$0xff] }
  0xa1   : > { %1378 = vmatmul.bf16.gmra.mxu3 %v763_v16 }
  0xa2   : > { %1573 = vmatpush.msrb.mxu3 %v1556_v15 }
  0xa4   : > { %1574 = vmatpush.msrb.mxu3 %v1555_v24  ;;  %v1549_v24 = vld [vmem:[%s6590_s3 + $0x10] sm:$0xff] }
  0xa6   : > { %1575 = vmatpush.msrb.mxu3 %v1554_v40 }
  0xab   : > { %v1197_v28 = vpop.f32.mrf.mxu0 }
  0xac   : > { %v1246_v29 = vpop.f32.mrf.mxu1  ;;  %v1198_v31 = vadd.f32 %v5397_v23, %v1197_v28  ;;  %v647_v28 = vld [vmem:[%s5249_s28 + $0x180] sm:$0xff] }
  0xae   : > { %v1247_v32 = vadd.f32 %v1246_v29, %v1198_v31  ;;  %1392 = vmatmul.bf16.vlgmr.msrb.gmra.mxu0 %v715_v26  ;;  %v646_v26 = vld [vmem:[%s5249_s28 + $0x178] sm:$0xff]  ;;  %v736_v31 = vpack.c.bf16 %v652_v25, %v645_v22  ;;  %v687_v22 = vld [vmem:[%s5249_s28 + $0x2c0] sm:$0xff] }
  0xaf   : > { %1441 = vmatmul.bf16.vlgmr.msrb.gmra.mxu1 %v716_v27  ;;  %v653_v27 = vld [vmem:[%s5249_s28 + $0x1b0] sm:$0xff]  ;;  %v654_v29 = vld [vmem:[%s5249_s28 + $0x1b8] sm:$0xff] }
  0xb0   : > { %3992 = vmatmul.msk.bf16.vlgmr.msrb.gmra.mxu2 %vm1163_vm0, %v717_v30  ;;  %v694_v25 = vld [vmem:[%s5249_s28 + $0x2f8] sm:$0xff] }
  0xb3   : > { %v1295_v34 = vpop.f32.mrf.mxu2  ;;  %v1199_v36 = vpop.f32.mrf.mxu0 }
  0xb4   : > { %v5406_v35 = vadd.f32 %v1295_v34, %v1247_v32  ;;  %v1248_v37 = vpop.f32.mrf.mxu1  ;;  %v1200_v38 = vadd.f32 %v5397_v23, %v1199_v36  ;;  %v737_v32 = vpack.c.bf16 %v653_v27, %v646_v26  ;;  %v688_v26 = vld [vmem:[%s5249_s28 + $0x2c8] sm:$0xff]  ;;  %v695_v27 = vld [vmem:[%s5249_s28 + $0x300] sm:$0xff] }
  0xb6   : > { %v1249_v39 = vadd.f32 %v1248_v37, %v1200_v38  ;;  %v738_v37 = vpack.c.bf16 %v654_v29, %v647_v28  ;;  %v689_v28 = vld [vmem:[%s5249_s28 + $0x2d0] sm:$0xff]  ;;  %v696_v29 = vld [vmem:[%s5249_s28 + $0x308] sm:$0xff] }
  0xbb   : > { %v1297_v47 = vpop.f32.mrf.mxu2  ;;  %v1202_v51 = vpop.f32.mrf.mxu0 }
  0xbc   : > { %v5418_v50 = vadd.f32 %v1297_v47, %v1249_v39  ;;  %v1251_v52 = vpop.f32.mrf.mxu1  ;;  %v1203_v54 = vadd.f32 %v5397_v23, %v1202_v51  ;;  %v659_v47 = vld [vmem:[%s5249_s28 + $0x1e0] sm:$0xff]  ;;  %v660_v51 = vld [vmem:[%s5249_s28 + $0x1e8] sm:$0xff] }
  0xbe   : > { %v1252_v55 = vadd.f32 %v1251_v52, %v1203_v54  ;;  %1397 = vmatmul.bf16.gmra.mxu0 %v722_v48  ;;  %v1553_v48 = vld [vmem:[%s6590_s3 + $0x30] sm:$0xff]  ;;  %v667_v52 = vld [vmem:[%s5249_s28 + $0x220] sm:$0xff]  ;;  %v668_v54 = vld [vmem:[%s5249_s28 + $0x228] sm:$0xff] }
  0xbf   : > { %1446 = vmatmul.bf16.gmra.mxu1 %v723_v49  ;;  %v666_v49 = vld [vmem:[%s5249_s28 + $0x218] sm:$0xff]  ;;  %1576 = vmatpush.msrb.mxu3 %v1553_v48 }
  0xc0   : > { %3993 = vmatmul.msk.bf16.gmra.mxu2 %vm1163_vm0, %v724_v53  ;;  %v661_v53 = vld [vmem:[%s5249_s28 + $0x1f0] sm:$0xff]  ;;  %v743_v56 = vpack.c.bf16 %v666_v49, %v659_v47  ;;  %v708_v47 = vld [vmem:[%s5249_s28 + $0x368] sm:$0xff]  ;;  %v702_v48 = vld [vmem:[%s5249_s28 + $0x338] sm:$0xff] }
  0xc1   : > { %1577 = vmatpush.msrb.mxu3 %v1552_v63  ;;  %v709_v49 = vld [vmem:[%s5249_s28 + $0x370] sm:$0xff] }
  0xc3   : > { %v1300_v57 = vpop.f32.mrf.mxu2  ;;  %v1204_v59 = vpop.f32.mrf.mxu0  ;;  %1578 = vmatpush.msrb.mxu3 %v1551_v4 }
  0xc4   : > { %v5425_v58 = vadd.f32 %v1300_v57, %v1252_v55  ;;  %v1253_v60 = vpop.f32.mrf.mxu1  ;;  %v1205_v61 = vadd.f32 %v5397_v23, %v1204_v59  ;;  %v744_v57 = vpack.c.bf16 %v667_v52, %v660_v51  ;;  %v703_v51 = vld [vmem:[%s5249_s28 + $0x340] sm:$0xff]  ;;  %v710_v52 = vld [vmem:[%s5249_s28 + $0x378] sm:$0xff] }
  0xc6   : > { %v1254_v62 = vadd.f32 %v1253_v60, %v1205_v61 }
  0xcb   : > { %v1302_v6 = vpop.f32.mrf.mxu2  ;;  %v1207_v10 = vpop.f32.mrf.mxu0 }
  0xcc   : > { %v5437_v9 = vadd.f32 %v1302_v6, %v1254_v62  ;;  %v1256_v11 = vpop.f32.mrf.mxu1  ;;  %v1208_v13 = vadd.f32 %v5397_v23, %v1207_v10  ;;  %v745_v62 = vpack.c.bf16 %v668_v54, %v661_v53  ;;  %v674_v6 = vld [vmem:[%s5249_s28 + $0x258] sm:$0xff] }
  0xcd   : > { %v682_v10 = vld [vmem:[%s5249_s28 + $0x298] sm:$0xff] }
  0xce   : > { %v1257_v14 = vadd.f32 %v1256_v11, %v1208_v13  ;;  %1402 = vmatmul.bf16.gmra.mxu0 %v729_v7  ;;  %v681_v7 = vld [vmem:[%s5249_s28 + $0x290] sm:$0xff] }
  0xcf   : > { %1451 = vmatmul.bf16.gmra.mxu1 %v730_v8  ;;  %v675_v8 = vld [vmem:[%s5249_s28 + $0x260] sm:$0xff]  ;;  %v751_v13 = vpack.c.bf16 %v681_v7, %v674_v6  ;;  %v1655_v6 = vld [vmem:[%s6592_s5 + $0x38] sm:$0xff] }
  0xd0   : > { %3994 = vmatmul.msk.bf16.gmra.mxu2 %vm1163_vm0, %v731_v12  ;;  %v750_v12 = vpack.c.bf16 %v680_v5, %v673_v3  ;;  %1717 = vmatpush.msra.mxu0 %v1655_v6 }
  0xd3   : > { %v1305_v16 = vpop.f32.mrf.mxu2  ;;  %v1209_v18 = vpop.f32.mrf.mxu0 }
  0xd4   : > { %v5444_v17 = vadd.f32 %v1305_v16, %v1257_v14  ;;  %v1258_v19 = vpop.f32.mrf.mxu1  ;;  %v1210_v20 = vadd.f32 %v5397_v23, %v1209_v18  ;;  %v752_v16 = vpack.c.bf16 %v682_v10, %v675_v8  ;;  %v1550_v18 = vld [vmem:[%s6590_s3 + $0x18] sm:$0xff] }
  0xd5   : > { %1579 = vmatpush.msrb.mxu3 %v1550_v18 }
  0xd6   : > { %v1259_v21 = vadd.f32 %v1258_v19, %v1210_v20 }
  0xd7   : > { %1580 = vmatpush.msrb.mxu3 %v1549_v24 }
  0xdb   : > { %v1307_v30 = vpop.f32.mrf.mxu2  ;;  %v1212_v34 = vpop.f32.mrf.mxu0 }
  0xdc   : > { %v5456_v33 = vadd.f32 %v1307_v30, %v1259_v21  ;;  %v1261_v36 = vpop.f32.mrf.mxu1  ;;  %v1213_v38 = vadd.f32 %v5397_v23, %v1212_v34  ;;  %v1344_v30 = vpop.f32.mrf.mxu3  ;;  %v758_v34 = vpack.c.bf16 %v695_v27, %v688_v26 }
  0xdd   : > { %v1345_v10 = vadd.f32 %v1344_v30, %v5406_v35 }
  0xde   : > { %v1262_v39 = vadd.f32 %v1261_v36, %v1213_v38  ;;  %1407 = vmatmul.bf16.gmra.mxu0 %v736_v31  ;;  %v759_v38 = vpack.c.bf16 %v696_v29, %v689_v28 }
  0xdf   : > { %1456 = vmatmul.bf16.gmra.mxu1 %v737_v32  ;;  %v757_v32 = vpack.c.bf16 %v694_v25, %v687_v22 }
  0xe0   : > { %3995 = vmatmul.msk.bf16.gmra.mxu2 %vm1163_vm0, %v738_v37 }
  0xe3   : > { %v1310_v41 = vpop.f32.mrf.mxu2  ;;  %v1214_v43 = vpop.f32.mrf.mxu0 }
  0xe4   : > { %v5463_v42 = vadd.f32 %v1310_v41, %v1262_v39  ;;  %v1263_v44 = vpop.f32.mrf.mxu1  ;;  %v1215_v45 = vadd.f32 %v5397_v23, %v1214_v43  ;;  %v1548_v39 = vld [vmem:[%s6590_s3 + $0x8] sm:$0xff] }
  0xe5   : > { %1581 = vmatpush.msrb.mxu3 %v1548_v39 }
  0xe6   : > { %v1264_v46 = vadd.f32 %v1263_v44, %v1215_v45  ;;  %v1346_v44 = vpop.f32.mrf.mxu3  ;;  %v701_v45 = vld [vmem:[%s5249_s28 + $0x330] sm:$0xff] }
  0xe7   : > { %v764_v54 = vpack.c.bf16 %v708_v47, %v701_v45  ;;  %v1347_v25 = vadd.f32 %v1346_v44, %v5418_v50 }
  0xeb   : > { %v1312_v55 = vpop.f32.mrf.mxu2  ;;  %v5477_v60 = vpop.f32.mrf.mxu0 }
  0xec   : > { %v5475_v59 = vadd.f32 %v1312_v55, %v1264_v46  ;;  %v5479_v61 = vpop.f32.mrf.mxu1  ;;  %v1547_v46 = vld [vmem:[%s6590_s3] sm:$0xff]  ;;  %v765_v55 = vpack.c.bf16 %v709_v49, %v702_v48 }
  0xed   : > { %1582 = vmatpush.msrb.mxu3 %v1547_v46 }
  0xee   : > { %1412 = vmatmul.bf16.gmra.mxu0 %v743_v56  ;;  %v1349_v63 = vpop.f32.mrf.mxu3 }
  0xef   : > { %1461 = vmatmul.bf16.gmra.mxu1 %v744_v57 }
  0xf0   : > { %3996 = vmatmul.msk.bf16.gmra.mxu2 %vm1163_vm0, %v745_v62  ;;  %v766_v62 = vpack.c.bf16 %v710_v52, %v703_v51 }
  0xf3   : > { %v5485_v0 = vpop.f32.mrf.mxu2  ;;  %v5487_v1 = vpop.f32.mrf.mxu0 }
  0xf4   : > { %v5489_v2 = vpop.f32.mrf.mxu1 }
  0xf6   : > { %v1351_v7 = vpop.f32.mrf.mxu3 }
  0xf7   : > { %v1352_v51 = vadd.f32 %v1351_v7, %v5437_v9 }
  0xfb   : > { %v5500_v11 = vpop.f32.mrf.mxu2  ;;  %v5502_v14 = vpop.f32.mrf.mxu0 }
  0xfc   : > { %v5504_v15 = vpop.f32.mrf.mxu1 }
  0xfe   : > { %1417 = vmatmul.bf16.gmra.mxu0 %v750_v12  ;;  %v1354_v22 = vpop.f32.mrf.mxu3 }
  0xff   : > { %1466 = vmatmul.bf16.gmra.mxu1 %v751_v13 }
 0x100   : > { %3997 = vmatmul.msk.bf16.gmra.mxu2 %vm1163_vm0, %v752_v16 }
 0x103   : > { %v5510_v19 = vpop.f32.mrf.mxu2  ;;  %v5512_v20 = vpop.f32.mrf.mxu0 }
 0x104   : > { %v5514_v21 = vpop.f32.mrf.mxu1 }
 0x106   : > { %v1356_v47 = vpop.f32.mrf.mxu3 }
 0x10b   : > { %v5525_v31 = vpop.f32.mrf.mxu2  ;;  %v5527_v36 = vpop.f32.mrf.mxu0 }
 0x10c   : > { %v5529_v37 = vpop.f32.mrf.mxu1 }
 0x10e   : > { %1422 = vmatmul.bf16.gmra.mxu0 %v757_v32  ;;  %v1654_v32 = vld [vmem:[%s6592_s5 + $0x30] sm:$0xff]  ;;  %v1359_v6 = vpop.f32.mrf.mxu3 }
 0x10f   : > { %1471 = vmatmul.bf16.gmra.mxu1 %v758_v34  ;;  %1718 = vmatpush.msra.mxu0 %v1654_v32 }
 0x110   : > { %3998 = vmatmul.msk.bf16.gmra.mxu2 %vm1163_vm0, %v759_v38  ;;  %v1350_v38 = vadd.f32 %v1349_v63, %v5425_v58  ;;  %v1653_v58 = vld [vmem:[%s6592_s5 + $0x28] sm:$0xff] }
 0x111   : > { %1719 = vmatpush.msra.mxu0 %v1653_v58 }
 0x113   : > { %v5535_v40 = vpop.f32.mrf.mxu2  ;;  %v5537_v41 = vpop.f32.mrf.mxu0 }
 0x114   : > { %v5539_v43 = vpop.f32.mrf.mxu1 }
 0x11b   : > { %v5550_v53 = vpop.f32.mrf.mxu2  ;;  %v5552_v56 = vpop.f32.mrf.mxu0 }
 0x11c   : > { %v5554_v57 = vpop.f32.mrf.mxu1 }
 0x11e   : > { %1427 = vmatmul.bf16.gmra.mxu0 %v764_v54 }
 0x11f   : > { %1476 = vmatmul.bf16.gmra.mxu1 %v765_v55 }
 0x120   : > { %3999 = vmatmul.msk.bf16.gmra.mxu2 %vm1163_vm0, %v766_v62 }
 0x123   : > { %v5557_v3 = vpop.f32.mrf.mxu2  ;;  %v5559_v4 = vpop.f32.mrf.mxu0 }
 0x124   : > { %v5561_v5 = vpop.f32.mrf.mxu1 }
 0x12b   : > { %v5566_v8 = vpop.f32.mrf.mxu2  ;;  %v1393_v12 = vpop.f32.mrf.mxu0 }
 0x12c   : > { %v1442_v13 = vpop.f32.mrf.mxu1  ;;  %v1394_v16 = vadd.f32 %v1393_v12, %v1345_v10 }
 0x12e   : > { %v1443_v18 = vadd.f32 %v1442_v13, %v1394_v16  ;;  %v1355_v13 = vadd.f32 %v1354_v22, %v5444_v17  ;;  %v1652_v17 = vld [vmem:[%s6592_s5 + $0x20] sm:$0xff] }
 0x12f   : > { %1720 = vmatpush.msra.mxu0 %v1652_v17 }
 0x133   : > { %v1491_v24 = vpop.f32.mrf.mxu2  ;;  %v1395_v27 = vpop.f32.mrf.mxu0 }
 0x134   : > { %v1492_v26 = vadd.f32 %v1491_v24, %v1443_v18  ;;  %v1444_v28 = vpop.f32.mrf.mxu1  ;;  %v1396_v29 = vadd.f32 %v1395_v27, %v1347_v25  ;;  %v1361_v24 = vpop.f32.mrf.mxu3 }
 0x136   : > { %4411 = vtanh.f32 %v1492_v26  ;;  %v1445_v34 = vadd.f32 %v1444_v28, %v1396_v29  ;;  %v1357_v28 = vadd.f32 %v1356_v47, %v5456_v33 }
 0x13b   : > { %v1493_v35 = vpop.f32.mrf.mxu2  ;;  %v1398_v45 = vpop.f32.mrf.mxu0 }
 0x13c   : > { %v4412_v30 = vpop.eup %4411  ;;  %v1494_v39 = vadd.f32 %v1493_v35, %v1445_v34  ;;  %v1447_v46 = vpop.f32.mrf.mxu1  ;;  %v1399_v50 = vadd.f32 %v1398_v45, %v1350_v38  ;;  %v1360_v45 = vadd.f32 %v1359_v6, %v5463_v42 }
 0x13d   : > { %1583 = vmatmul.f32.vlgmr.msrb.gmra.mxu3 %v4412_v30  ;;  %v1364_v30 = vpop.f32.mrf.mxu3 }
 0x13e   : > { %4413 = vtanh.f32 %v1494_v39  ;;  %v1448_v44 = vadd.f32 %v1447_v46, %v1399_v50 }
 0x143   : > { %v1496_v48 = vpop.f32.mrf.mxu2  ;;  %v1400_v54 = vpop.f32.mrf.mxu0 }
 0x144   : > { %v4414_v49 = vpop.eup %4413  ;;  %v1497_v52 = vadd.f32 %v1496_v48, %v1448_v44  ;;  %v1449_v55 = vpop.f32.mrf.mxu1  ;;  %v1401_v62 = vadd.f32 %v1400_v54, %v1352_v51  ;;  %v1218_v44 = vadd.f32 %v5397_v23, %v5477_v60  ;;  %v1362_v54 = vadd.f32 %v1361_v24, %v5475_v59 }
 0x145   : > { %1586 = vmatmul.f32.gmra.mxu3 %v4414_v49  ;;  %v1366_v42 = vpop.f32.mrf.mxu3 }
 0x146   : > { %4415 = vtanh.f32 %v1497_v52  ;;  %v1450_v63 = vadd.f32 %v1449_v55, %v1401_v62  ;;  %v1267_v52 = vadd.f32 %v5479_v61, %v1218_v44 }
 0x148   : > { %v1316_v60 = vadd.f32 %v5485_v0, %v1267_v52  ;;  %v1223_v0 = vadd.f32 %v5397_v23, %v5502_v14 }
 0x14b   : > { %v1498_v10 = vpop.f32.mrf.mxu2  ;;  %v1403_v18 = vpop.f32.mrf.mxu0 }
 0x14c   : > { %v4416_v12 = vpop.eup %4415  ;;  %v1499_v16 = vadd.f32 %v1498_v10, %v1450_v63  ;;  %v1452_v9 = vpop.f32.mrf.mxu1  ;;  %v1404_v7 = vadd.f32 %v1403_v18, %v1355_v13  ;;  %v1651_v63 = vld [vmem:[%s6592_s5 + $0x18] sm:$0xff]  ;;  %v1220_v10 = vadd.f32 %v5397_v23, %v5487_v1  ;;  %v1365_v13 = vadd.f32 %v1364_v30, %v1316_v60 }
 0x14d   : > { %1589 = vmatmul.f32.gmra.mxu3 %v4416_v12  ;;  %1721 = vmatpush.msra.mxu0 %v1651_v63  ;;  %v1225_v30 = vadd.f32 %v5397_v23, %v5512_v20 }
 0x14e   : > { %4417 = vtanh.f32 %v1499_v16  ;;  %v1453_v25 = vadd.f32 %v1452_v9, %v1404_v7  ;;  %v1269_v7 = vadd.f32 %v5489_v2, %v1220_v10 }
 0x153   : > { %v1501_v26 = vpop.f32.mrf.mxu2  ;;  %v1405_v32 = vpop.f32.mrf.mxu0 }
 0x154   : > { %v4418_v27 = vpop.eup %4417  ;;  %v1502_v29 = vadd.f32 %v1501_v26, %v1453_v25  ;;  %v1454_v34 = vpop.f32.mrf.mxu1  ;;  %v1406_v35 = vadd.f32 %v1405_v32, %v1357_v28  ;;  %v1318_v26 = vadd.f32 %v5500_v11, %v1269_v7 }
 0x155   : > { %1592 = vmatmul.f32.gmra.mxu3 %v4418_v27  ;;  %v1369_v25 = vpop.f32.mrf.mxu3 }
 0x156   : > { %4419 = vtanh.f32 %v1502_v29  ;;  %v1455_v22 = vadd.f32 %v1454_v34, %v1406_v35  ;;  %v1272_v29 = vadd.f32 %v5504_v15, %v1223_v0  ;;  %v1367_v32 = vadd.f32 %v1366_v42, %v1318_v26 }
 0x158   : > { %v1321_v11 = vadd.f32 %v5510_v19, %v1272_v29  ;;  %v1228_v19 = vadd.f32 %v5397_v23, %v5527_v36  ;;  %v1230_v36 = vadd.f32 %v5397_v23, %v5537_v41  ;;  %v1235_v29 = vadd.f32 %v5397_v23, %v5559_v4 }
 0x15b   : > { %v1503_v38 = vpop.f32.mrf.mxu2  ;;  %v1408_v50 = vpop.f32.mrf.mxu0 }
 0x15c   : > { %v4420_v39 = vpop.eup %4419  ;;  %v1504_v46 = vadd.f32 %v1503_v38, %v1455_v22  ;;  %v1457_v33 = vpop.f32.mrf.mxu1  ;;  %v1409_v47 = vadd.f32 %v1408_v50, %v1360_v45  ;;  %v1650_v22 = vld [vmem:[%s6592_s5 + $0x10] sm:$0xff]  ;;  %v1370_v45 = vadd.f32 %v1369_v25, %v1321_v11 }
 0x15d   : > { %1595 = vmatmul.f32.gmra.mxu3 %v4420_v39  ;;  %1722 = vmatpush.msra.mxu0 %v1650_v22  ;;  %v1371_v14 = vpop.f32.mrf.mxu3  ;;  %v1284_v22 = vadd.f32 %v5561_v5, %v1235_v29 }
 0x15e   : > { %4421 = vtanh.f32 %v1504_v46  ;;  %v1458_v48 = vadd.f32 %v1457_v33, %v1409_v47  ;;  %v1274_v47 = vadd.f32 %v5514_v21, %v1225_v30 }
 0x15f   : > { %v1333_v30 = vadd.f32 %v5566_v8, %v1284_v22  ;;  %v1791_v8 = vld [vmem:[%s6594_s7 + $0x8] sm:$0xff] }
 0x160   : > { %1858 = vmatpush.msra.mxu1 %v1791_v8 }
 0x163   : > { %v1506_v49 = vpop.f32.mrf.mxu2  ;;  %v1410_v62 = vpop.f32.mrf.mxu0 }
 0x164   : > { %v4422_v51 = vpop.eup %4421  ;;  %v1507_v55 = vadd.f32 %v1506_v49, %v1458_v48  ;;  %v1459_v58 = vpop.f32.mrf.mxu1  ;;  %v1411_v6 = vadd.f32 %v1410_v62, %v1362_v54  ;;  %v1323_v48 = vadd.f32 %v5525_v31, %v1274_v47  ;;  %v1277_v54 = vadd.f32 %v5529_v37, %v1228_v19  ;;  %v1649_v31 = vld [vmem:[%s6592_s5 + $0x8] sm:$0xff]  ;;  %v5635_v19 = vld [vmem:[%s6591_s4] ss:$0 sm:$0xff] }
 0x165   : > { %1598 = vmatmul.f32.gmra.mxu3 %v4422_v51  ;;  %v1374_v51 = vpop.f32.mrf.mxu3  ;;  %1723 = vmatpush.msra.mxu0 %v1649_v31 }
 0x166   : > { %4423 = vtanh.f32 %v1507_v55  ;;  %v1460_v61 = vadd.f32 %v1459_v58, %v1411_v6  ;;  %v1372_v55 = vadd.f32 %v1371_v14, %v1323_v48  ;;  %v1326_v6 = vadd.f32 %v5535_v40, %v1277_v54 }
 0x167   : > { %v1233_v40 = vadd.f32 %v5397_v23, %v5552_v56 }
 0x168   : > { %v1375_v10 = vadd.f32 %v1374_v51, %v1326_v6 }
 0x169   : > { %v1282_v25 = vadd.f32 %v5554_v57, %v1233_v40 }
 0x16b   : > { %v1508_v12 = vpop.f32.mrf.mxu2  ;;  %v1413_v18 = vpop.f32.mrf.mxu0  ;;  %v1331_v56 = vadd.f32 %v5557_v3, %v1282_v25 }
 0x16c   : > { %v4424_v59 = vpop.eup %4423  ;;  %v1509_v16 = vadd.f32 %v1508_v12, %v1460_v61  ;;  %v1462_v9 = vpop.f32.mrf.mxu1  ;;  %v1414_v24 = vadd.f32 %v1413_v18, %v1365_v13 }
 0x16d   : > { %1601 = vmatmul.f32.gmra.mxu3 %v4424_v59  ;;  %v1376_v13 = vpop.f32.mrf.mxu3 }
 0x16e   : > { %4425 = vtanh.f32 %v1509_v16  ;;  %v1463_v27 = vadd.f32 %v1462_v9, %v1414_v24  ;;  %v1279_v16 = vadd.f32 %v5539_v43, %v1230_v36  ;;  %v1648_v43 = vld [vmem:[%s6592_s5] sm:$0xff] }
 0x16f   : > { %1724 = vmatpush.msra.mxu0 %v1648_v43 }
 0x170   : > { %v1328_v9 = vadd.f32 %v5550_v53, %v1279_v16 }
 0x172   : > { %v1377_v26 = vadd.f32 %v1376_v13, %v1328_v9  ;;  %v1790_v13 = vld [vmem:[%s6594_s7] sm:$0xff] }
 0x173   : > { %v1511_v1 = vpop.f32.mrf.mxu2  ;;  %v1415_v35 = vpop.f32.mrf.mxu0  ;;  %1859 = vmatpush.msra.mxu1 %v1790_v13 }
 0x174   : > { %v4426_v28 = vpop.eup %4425  ;;  %v1512_v34 = vadd.f32 %v1511_v1, %v1463_v27  ;;  %v1464_v17 = vpop.f32.mrf.mxu1  ;;  %v1416_v2 = vadd.f32 %v1415_v35, %v1367_v32 }
 0x175   : > { %1604 = vmatmul.f32.gmra.mxu3 %v4426_v28  ;;  %v1379_v53 = vpop.f32.mrf.mxu3 }
 0x176   : > { %4427 = vtanh.f32 %v1512_v34  ;;  %v1465_v38 = vadd.f32 %v1464_v17, %v1416_v2  ;;  %v1380_v35 = vadd.f32 %v1379_v53, %v1331_v56 }
 0x17b   : > { %v1513_v15 = vpop.f32.mrf.mxu2  ;;  %v1418_v50 = vpop.f32.mrf.mxu0 }
 0x17c   : > { %v4428_v39 = vpop.eup %4427  ;;  %v1514_v46 = vadd.f32 %v1513_v15, %v1465_v38  ;;  %v1467_v33 = vpop.f32.mrf.mxu1  ;;  %v1419_v44 = vadd.f32 %v1418_v50, %v1370_v45 }
 0x17d   : > { %1607 = vmatmul.f32.gmra.mxu3 %v4428_v39  ;;  %v1381_v38 = vpop.f32.mrf.mxu3 }
 0x17e   : > { %4429 = vtanh.f32 %v1514_v46  ;;  %v1468_v49 = vadd.f32 %v1467_v33, %v1419_v44  ;;  %v1382_v45 = vadd.f32 %v1381_v38, %v1333_v30 }
 0x183   : > { %v1516_v20 = vpop.f32.mrf.mxu2  ;;  %v1420_v58 = vpop.f32.mrf.mxu0 }
 0x184   : > { %v4430_v52 = vpop.eup %4429  ;;  %v1517_v62 = vadd.f32 %v1516_v20, %v1468_v49  ;;  %v1469_v42 = vpop.f32.mrf.mxu1  ;;  %v1421_v21 = vadd.f32 %v1420_v58, %v1372_v55 }
 0x185   : > { %1610 = vmatmul.f32.gmra.mxu3 %v4430_v52 }
 0x186   : > { %4431 = vtanh.f32 %v1517_v62  ;;  %v1470_v63 = vadd.f32 %v1469_v42, %v1421_v21 }
 0x18b   : > { %v1518_v60 = vpop.f32.mrf.mxu2  ;;  %v1423_v12 = vpop.f32.mrf.mxu0 }
 0x18c   : > { %v4432_v37 = vpop.eup %4431  ;;  %v1519_v61 = vadd.f32 %v1518_v60, %v1470_v63  ;;  %v1472_v59 = vpop.f32.mrf.mxu1  ;;  %v1424_v18 = vadd.f32 %v1423_v12, %v1375_v10 }
 0x18d   : > { %1613 = vmatmul.f32.gmra.mxu3 %v4432_v37 }
 0x18e   : > { %4433 = vtanh.f32 %v1519_v61  ;;  %v1473_v7 = vadd.f32 %v1472_v59, %v1424_v18 }
 0x193   : > { %v1521_v41 = vpop.f32.mrf.mxu2  ;;  %v1425_v27 = vpop.f32.mrf.mxu0 }
 0x194   : > { %v4434_v24 = vpop.eup %4433  ;;  %v1522_v0 = vadd.f32 %v1521_v41, %v1473_v7  ;;  %v1474_v1 = vpop.f32.mrf.mxu1  ;;  %v1426_v28 = vadd.f32 %v1425_v27, %v1377_v26 }
 0x195   : > { %1616 = vmatmul.f32.gmra.mxu3 %v4434_v24 }
 0x196   : > { %4435 = vtanh.f32 %v1522_v0  ;;  %v1475_v32 = vadd.f32 %v1474_v1, %v1426_v28 }
 0x19b   : > { %v1523_v57 = vpop.f32.mrf.mxu2  ;;  %v1428_v2 = vpop.f32.mrf.mxu0 }
 0x19c   : > { %v4436_v34 = vpop.eup %4435  ;;  %v1524_v17 = vadd.f32 %v1523_v57, %v1475_v32  ;;  %v1429_v11 = vadd.f32 %v1428_v2, %v1380_v35  ;;  %v1477_v14 = vpop.f32.mrf.mxu1 }
 0x19d   : > { %1619 = vmatmul.f32.gmra.mxu3 %v4436_v34 }
 0x19e   : > { %4437 = vtanh.f32 %v1524_v17  ;;  %v1478_v15 = vadd.f32 %v1477_v14, %v1429_v11  ;;  %v1940_v11 = vld [vmem:[%s6596_s9 + $0x78] sm:$0xff] }
 0x19f   : > { %1945 = vmatpush.msra.mxu2 %v1940_v11 }
 0x1a3   : > { %v1526_v3 = vpop.f32.mrf.mxu2  ;;  %v1430_v4 = vpop.f32.mrf.mxu0 }
 0x1a4   : > { %v4438_v39 = vpop.eup %4437  ;;  %v1527_v23 = vadd.f32 %v1526_v3, %v1478_v15  ;;  %v1431_v46 = vadd.f32 %v1430_v4, %v1382_v45  ;;  %v1479_v50 = vpop.f32.mrf.mxu1  ;;  %v1939_v15 = vld [vmem:[%s6596_s9 + $0x70] sm:$0xff]  ;;  %v5684_v45 = vld [vmem:[%s6593_s6] ss:$0 sm:$0xff] }
 0x1a5   : > { %1622 = vmatmul.f32.gmra.mxu3 %v4438_v39  ;;  %1946 = vmatpush.msra.mxu2 %v1939_v15  ;;  %v1938_v39 = vld [vmem:[%s6596_s9 + $0x68] sm:$0xff] }
 0x1a6   : > { %4439 = vtanh.f32 %v1527_v23  ;;  %v1480_v33 = vadd.f32 %v1479_v50, %v1431_v46  ;;  %v1937_v46 = vld [vmem:[%s6596_s9 + $0x60] sm:$0xff]  ;;  %v2027_v15 = vld [vmem:[%s6598_s11 + $0x8] sm:$0xff] }
 0x1a7   : > { %1947 = vmatpush.msra.mxu2 %v1938_v39  ;;  %2094 = vmatpush.msra.mxu3 %v2027_v15  ;;  %v5764_v39 = vld [vmem:[%s6595_s8] ss:$0 sm:$0xff] }
 0x1a9   : > { %1948 = vmatpush.msra.mxu2 %v1937_v46 }
 0x1ab   : > { %v1528_v47 = vpop.f32.mrf.mxu2 }
 0x1ac   : > { %v4440_v44 = vpop.eup %4439  ;;  %v1529_v5 = vadd.f32 %v1528_v47, %v1480_v33 }
 0x1ad   : > { %1625 = vmatmul.f32.gmra.mxu3 %v4440_v44  ;;  %v1936_v44 = vld [vmem:[%s6596_s9 + $0x58] sm:$0xff] }
 0x1ae   : > { %4441 = vtanh.f32 %v1529_v5  ;;  %1949 = vmatpush.msra.mxu2 %v1936_v44 }
 0x1b4   : > { %v4442_v48 = vpop.eup %4441 }
 0x1b5   : > { %1628 = vmatmul.f32.gmra.mxu3 %v4442_v48 }
 0x1c0   : > { %v1584_v49 = vpop.f32.mrf.mxu3 }
 0x1c1   : > { %v1585_v51 = vadd.f32 %v5635_v19, %v1584_v49 }
 0x1c3   : > { %4443 = vtanh.f32 %v1585_v51 }
 0x1c8   : > { %v1587_v20 = vpop.f32.mrf.mxu3 }
 0x1c9   : > { %v4444_v52 = vpop.eup %4443  ;;  %v1588_v54 = vadd.f32 %v5635_v19, %v1587_v20 }
 0x1ca   : > { %4000 = vmatmul.msk.f32.vlgmr.msra.gmra.mxu0 %vm1660_vm1, %v4444_v52  ;;  %v1934_v52 = vld [vmem:[%s6596_s9 + $0x48] sm:$0xff] }
 0x1cb   : > { %4445 = vtanh.f32 %v1588_v54 }
 0x1d0   : > { %v1590_v55 = vpop.f32.mrf.mxu3 }
 0x1d1   : > { %v4446_v62 = vpop.eup %4445  ;;  %v1591_v58 = vadd.f32 %v5635_v19, %v1590_v55 }
 0x1d2   : > { %4001 = vmatmul.msk.f32.gmra.mxu0 %vm1660_vm1, %v4446_v62 }
 0x1d3   : > { %4447 = vtanh.f32 %v1591_v58  ;;  %v1933_v58 = vld [vmem:[%s6596_s9 + $0x40] sm:$0xff] }
 0x1d8   : > { %v1593_v42 = vpop.f32.mrf.mxu3 }
 0x1d9   : > { %v4448_v21 = vpop.eup %4447  ;;  %v1594_v31 = vadd.f32 %v5635_v19, %v1593_v42 }
 0x1da   : > { %4002 = vmatmul.msk.f32.gmra.mxu0 %vm1660_vm1, %v4448_v21 }
 0x1db   : > { %4449 = vtanh.f32 %v1594_v31 }
 0x1e0   : > { %v1596_v6 = vpop.f32.mrf.mxu3 }
 0x1e1   : > { %v4450_v36 = vpop.eup %4449  ;;  %v1597_v63 = vadd.f32 %v5635_v19, %v1596_v6  ;;  %v1932_v6 = vld [vmem:[%s6596_s9 + $0x38] sm:$0xff] }
 0x1e2   : > { %4003 = vmatmul.msk.f32.gmra.mxu0 %vm1660_vm1, %v4450_v36 }
 0x1e3   : > { %4451 = vtanh.f32 %v1597_v63 }
 0x1e8   : > { %v1599_v60 = vpop.f32.mrf.mxu3 }
 0x1e9   : > { %v4452_v37 = vpop.eup %4451  ;;  %v1600_v10 = vadd.f32 %v5635_v19, %v1599_v60 }
 0x1ea   : > { %4004 = vmatmul.msk.f32.gmra.mxu0 %vm1660_vm1, %v4452_v37  ;;  %v1931_v37 = vld [vmem:[%s6596_s9 + $0x30] sm:$0xff] }
 0x1eb   : > { %4453 = vtanh.f32 %v1600_v10 }
 0x1f0   : > { %v1602_v61 = vpop.f32.mrf.mxu3 }
 0x1f1   : > { %v4454_v12 = vpop.eup %4453  ;;  %v1603_v59 = vadd.f32 %v5635_v19, %v1602_v61 }
 0x1f2   : > { %4005 = vmatmul.msk.f32.gmra.mxu0 %vm1660_vm1, %v4454_v12 }
 0x1f3   : > { %4455 = vtanh.f32 %v1603_v59  ;;  %v1930_v59 = vld [vmem:[%s6596_s9 + $0x28] sm:$0xff] }
 0x1f8   : > { %v1605_v16 = vpop.f32.mrf.mxu3 }
 0x1f9   : > { %v4456_v18 = vpop.eup %4455  ;;  %v1606_v9 = vadd.f32 %v5635_v19, %v1605_v16 }
 0x1fa   : > { %4006 = vmatmul.msk.f32.gmra.mxu0 %vm1660_vm1, %v4456_v18 }
 0x1fb   : > { %4457 = vtanh.f32 %v1606_v9  ;;  %v1929_v9 = vld [vmem:[%s6596_s9 + $0x20] sm:$0xff] }
 0x200   : > { %v1608_v40 = vpop.f32.mrf.mxu3 }
 0x201   : > { %v4458_v7 = vpop.eup %4457  ;;  %v1609_v41 = vadd.f32 %v5635_v19, %v1608_v40 }
 0x202   : > { %4007 = vmatmul.msk.f32.gmra.mxu0 %vm1660_vm1, %v4458_v7 }
 0x203   : > { %4459 = vtanh.f32 %v1609_v41 }
 0x208   : > { %v1611_v24 = vpop.f32.mrf.mxu3 }
 0x209   : > { %v4460_v25 = vpop.eup %4459  ;;  %v1612_v26 = vadd.f32 %v5635_v19, %v1611_v24  ;;  %v1928_v24 = vld [vmem:[%s6596_s9 + $0x18] sm:$0xff] }
 0x20a   : > { %4008 = vmatmul.msk.f32.gmra.mxu0 %vm1660_vm1, %v4460_v25 }
 0x20b   : > { %4461 = vtanh.f32 %v1612_v26 }
 0x210   : > { %v1614_v0 = vpop.f32.mrf.mxu3 }
 0x211   : > { %v4462_v27 = vpop.eup %4461  ;;  %v1615_v1 = vadd.f32 %v5635_v19, %v1614_v0 }
 0x212   : > { %4009 = vmatmul.msk.f32.gmra.mxu0 %vm1660_vm1, %v4462_v27  ;;  %v1927_v27 = vld [vmem:[%s6596_s9 + $0x10] sm:$0xff] }
 0x213   : > { %4463 = vtanh.f32 %v1615_v1 }
 0x218   : > { %v1617_v43 = vpop.f32.mrf.mxu3 }
 0x219   : > { %v4464_v28 = vpop.eup %4463  ;;  %v1618_v53 = vadd.f32 %v5635_v19, %v1617_v43 }
 0x21a   : > { %4010 = vmatmul.msk.f32.gmra.mxu0 %vm1660_vm1, %v4464_v28 }
 0x21b   : > { %4465 = vtanh.f32 %v1618_v53  ;;  %v1926_v53 = vld [vmem:[%s6596_s9 + $0x8] sm:$0xff] }
 0x220   : > { %v1620_v56 = vpop.f32.mrf.mxu3 }
 0x221   : > { %v4466_v29 = vpop.eup %4465  ;;  %v1621_v32 = vadd.f32 %v5635_v19, %v1620_v56 }
 0x222   : > { %4011 = vmatmul.msk.f32.gmra.mxu0 %vm1660_vm1, %v4466_v29 }
 0x223   : > { %4467 = vtanh.f32 %v1621_v32 }
 0x228   : > { %v1623_v57 = vpop.f32.mrf.mxu3 }
 0x229   : > { %v4468_v34 = vpop.eup %4467  ;;  %v1624_v35 = vadd.f32 %v5635_v19, %v1623_v57  ;;  %v1925_v57 = vld [vmem:[%s6596_s9] sm:$0xff] }
 0x22a   : > { %4012 = vmatmul.msk.f32.gmra.mxu0 %vm1660_vm1, %v4468_v34 }
 0x22b   : > { %4469 = vtanh.f32 %v1624_v35 }
 0x230   : > { %v1626_v17 = vpop.f32.mrf.mxu3 }
 0x231   : > { %v4470_v2 = vpop.eup %4469  ;;  %v1627_v22 = vadd.f32 %v5635_v19, %v1626_v17 }
 0x232   : > { %4013 = vmatmul.msk.f32.gmra.mxu0 %vm1660_vm1, %v4470_v2 }
 0x233   : > { %4471 = vtanh.f32 %v1627_v22 }
 0x238   : > { %v1629_v14 = vpop.f32.mrf.mxu3 }
 0x239   : > { %v4472_v30 = vpop.eup %4471  ;;  %v1630_v38 = vadd.f32 %v5635_v19, %v1629_v14  ;;  %v1935_v19 = vld [vmem:[%s6596_s9 + $0x50] sm:$0xff] }
 0x23a   : > { %4014 = vmatmul.msk.f32.gmra.mxu0 %vm1660_vm1, %v4472_v30  ;;  %1950 = vmatpush.msra.mxu2 %v1935_v19 }
 0x23b   : > { %4473 = vtanh.f32 %v1630_v38 }
 0x23c   : > { %1951 = vmatpush.msra.mxu2 %v1934_v52 }
 0x23e   : > { %1952 = vmatpush.msra.mxu2 %v1933_v58 }
 0x240   : > { %1953 = vmatpush.msra.mxu2 %v1932_v6 }
 0x241   : > { %v4474_v3 = vpop.eup %4473 }
 0x242   : > { %4015 = vmatmul.msk.f32.gmra.mxu0 %vm1660_vm1, %v4474_v3  ;;  %1954 = vmatpush.msra.mxu2 %v1931_v37 }
 0x244   : > { %1955 = vmatpush.msra.mxu2 %v1930_v59 }
 0x246   : > { %1956 = vmatpush.msra.mxu2 %v1929_v9 }
 0x247   : > { %v1726_v23 = vpop.f32.mrf.mxu0 }
 0x248   : > { %v1727_v4 = vadd.f32 %v5684_v45, %v1726_v23  ;;  %1957 = vmatpush.msra.mxu2 %v1928_v24 }
 0x24a   : > { %4475 = vtanh.f32 %v1727_v4  ;;  %1958 = vmatpush.msra.mxu2 %v1927_v27 }
 0x24c   : > { %1959 = vmatpush.msra.mxu2 %v1926_v53 }
 0x24e   : > { %1960 = vmatpush.msra.mxu2 %v1925_v57  ;;  %v2165_v57 = vld [vmem:[%s6600_s13 + $0x20] sm:$0xff] }
 0x24f   : > { %v1729_v50 = vpop.f32.mrf.mxu0 }
 0x250   : > { %v4476_v33 = vpop.eup %4475  ;;  %v1730_v47 = vadd.f32 %v5684_v45, %v1729_v50 }
 0x251   : > { %4016 = vmatmul.msk.f32.vlgmr.msra.gmra.mxu1 %vm1163_vm0, %v4476_v33 }
 0x252   : > { %4477 = vtanh.f32 %v1730_v47 }
 0x257   : > { %v1732_v5 = vpop.f32.mrf.mxu0 }
 0x258   : > { %v4478_v8 = vpop.eup %4477  ;;  %v1733_v48 = vadd.f32 %v5684_v45, %v1732_v5 }
 0x259   : > { %4017 = vmatmul.msk.f32.gmra.mxu1 %vm1163_vm0, %v4478_v8 }
 0x25a   : > { %4479 = vtanh.f32 %v1733_v48 }
 0x25f   : > { %v1735_v49 = vpop.f32.mrf.mxu0 }
 0x260   : > { %v4480_v51 = vpop.eup %4479  ;;  %v1736_v20 = vadd.f32 %v5684_v45, %v1735_v49 }
 0x261   : > { %4018 = vmatmul.msk.f32.gmra.mxu1 %vm1163_vm0, %v4480_v51 }
 0x262   : > { %4481 = vtanh.f32 %v1736_v20  ;;  %v2026_v20 = vld [vmem:[%s6598_s11] sm:$0xff] }
 0x263   : > { %2095 = vmatpush.msra.mxu3 %v2026_v20 }
 0x267   : > { %v1738_v54 = vpop.f32.mrf.mxu0 }
 0x268   : > { %v4482_v55 = vpop.eup %4481  ;;  %v1739_v62 = vadd.f32 %v5684_v45, %v1738_v54 }
 0x269   : > { %4019 = vmatmul.msk.f32.gmra.mxu1 %vm1163_vm0, %v4482_v55 }
 0x26a   : > { %4483 = vtanh.f32 %v1739_v62 }
 0x26f   : > { %v1741_v42 = vpop.f32.mrf.mxu0 }
 0x270   : > { %v4484_v21 = vpop.eup %4483  ;;  %v1742_v31 = vadd.f32 %v5684_v45, %v1741_v42 }
 0x271   : > { %4020 = vmatmul.msk.f32.gmra.mxu1 %vm1163_vm0, %v4484_v21 }
 0x272   : > { %4485 = vtanh.f32 %v1742_v31 }
 0x277   : > { %v1744_v36 = vpop.f32.mrf.mxu0 }
 0x278   : > { %v4486_v63 = vpop.eup %4485  ;;  %v1745_v60 = vadd.f32 %v5684_v45, %v1744_v36 }
 0x279   : > { %4021 = vmatmul.msk.f32.gmra.mxu1 %vm1163_vm0, %v4486_v63 }
 0x27a   : > { %4487 = vtanh.f32 %v1745_v60 }
 0x27f   : > { %v1747_v10 = vpop.f32.mrf.mxu0 }
 0x280   : > { %v4488_v61 = vpop.eup %4487  ;;  %v1748_v12 = vadd.f32 %v5684_v45, %v1747_v10 }
 0x281   : > { %4022 = vmatmul.msk.f32.gmra.mxu1 %vm1163_vm0, %v4488_v61 }
 0x282   : > { %4489 = vtanh.f32 %v1748_v12 }
 0x287   : > { %v1750_v13 = vpop.f32.mrf.mxu0 }
 0x288   : > { %v4490_v16 = vpop.eup %4489  ;;  %v1751_v18 = vadd.f32 %v5684_v45, %v1750_v13 }
 0x289   : > { %4023 = vmatmul.msk.f32.gmra.mxu1 %vm1163_vm0, %v4490_v16  ;;  %v2168_v16 = vld [vmem:[%s6600_s13 + $0x38] sm:$0xff] }
 0x28a   : > { %4491 = vtanh.f32 %v1751_v18  ;;  %2229 = vmatpush.msrb.mxu0 %v2168_v16  ;;  %v5812_v18 = vld [vmem:[%s6597_s10] ss:$0 sm:$0xff] }
 0x28f   : > { %v1753_v40 = vpop.f32.mrf.mxu0 }
 0x290   : > { %v4492_v7 = vpop.eup %4491  ;;  %v1754_v41 = vadd.f32 %v5684_v45, %v1753_v40 }
 0x291   : > { %4024 = vmatmul.msk.f32.gmra.mxu1 %vm1163_vm0, %v4492_v7  ;;  %v2167_v7 = vld [vmem:[%s6600_s13 + $0x30] sm:$0xff] }
 0x292   : > { %4493 = vtanh.f32 %v1754_v41  ;;  %2230 = vmatpush.msrb.mxu0 %v2167_v7 }
 0x297   : > { %v1756_v25 = vpop.f32.mrf.mxu0 }
 0x298   : > { %v4494_v26 = vpop.eup %4493  ;;  %v1757_v0 = vadd.f32 %v5684_v45, %v1756_v25 }
 0x299   : > { %4025 = vmatmul.msk.f32.gmra.mxu1 %vm1163_vm0, %v4494_v26 }
 0x29a   : > { %4495 = vtanh.f32 %v1757_v0 }
 0x29f   : > { %v1759_v1 = vpop.f32.mrf.mxu0 }
 0x2a0   : > { %v4496_v43 = vpop.eup %4495  ;;  %v1760_v28 = vadd.f32 %v5684_v45, %v1759_v1  ;;  %v2166_v1 = vld [vmem:[%s6600_s13 + $0x28] sm:$0xff] }
 0x2a1   : > { %4026 = vmatmul.msk.f32.gmra.mxu1 %vm1163_vm0, %v4496_v43  ;;  %2231 = vmatpush.msrb.mxu0 %v2166_v1 }
 0x2a2   : > { %4497 = vtanh.f32 %v1760_v28 }
 0x2a3   : > { %2232 = vmatpush.msrb.mxu0 %v2165_v57  ;;  %v4384_v57 = vld [vmem:[%s6602_s15 + $0x168] sm:$0xf0] }
 0x2a7   : > { %v1762_v56 = vpop.f32.mrf.mxu0 }
 0x2a8   : > { %v4498_v29 = vpop.eup %4497  ;;  %v1763_v32 = vadd.f32 %v5684_v45, %v1762_v56 }
 0x2a9   : > { %4027 = vmatmul.msk.f32.gmra.mxu1 %vm1163_vm0, %v4498_v29 }
 0x2aa   : > { %4499 = vtanh.f32 %v1763_v32 }
 0x2af   : > { %v1765_v34 = vpop.f32.mrf.mxu0 }
 0x2b0   : > { %v4500_v35 = vpop.eup %4499  ;;  %v1766_v17 = vadd.f32 %v5684_v45, %v1765_v34 }
 0x2b1   : > { %4028 = vmatmul.msk.f32.gmra.mxu1 %vm1163_vm0, %v4500_v35 }
 0x2b2   : > { %4501 = vtanh.f32 %v1766_v17 }
 0x2b7   : > { %v1768_v2 = vpop.f32.mrf.mxu0 }
 0x2b8   : > { %v4502_v22 = vpop.eup %4501  ;;  %v1769_v11 = vadd.f32 %v5684_v45, %v1768_v2 }
 0x2b9   : > { %4029 = vmatmul.msk.f32.gmra.mxu1 %vm1163_vm0, %v4502_v22 }
 0x2ba   : > { %4503 = vtanh.f32 %v1769_v11 }
 0x2bf   : > { %v1771_v14 = vpop.f32.mrf.mxu0 }
 0x2c0   : > { %v4504_v30 = vpop.eup %4503  ;;  %v1772_v38 = vadd.f32 %v5684_v45, %v1771_v14  ;;  %v2164_v14 = vld [vmem:[%s6600_s13 + $0x18] sm:$0xff] }
 0x2c1   : > { %4030 = vmatmul.msk.f32.gmra.mxu1 %vm1163_vm0, %v4504_v30  ;;  %2233 = vmatpush.msrb.mxu0 %v2164_v14  ;;  %v4214_v14 = vld [vmem:[%s6602_s15 + $0x120] sm:$0xf] }
 0x2c2   : > { %4505 = vtanh.f32 %v1772_v38 }
 0x2c8   : > { %v4506_v3 = vpop.eup %4505 }
 0x2c9   : > { %4031 = vmatmul.msk.f32.gmra.mxu1 %vm1163_vm0, %v4506_v3 }
 0x2ce   : > { %v1861_v45 = vpop.f32.mrf.mxu1 }
 0x2cf   : > { %v1862_v23 = vadd.f32 %v5764_v39, %v1861_v45 }
 0x2d1   : > { %1909 = vst [vmem:[%s5769_s2] sm:$0xff] %v1862_v23  ;;  %1961 = vmatmul.f32.vlgmr.msra.gmra.mxu2 %v1862_v23  ;;  %v2163_v23 = vld [vmem:[%s6600_s13 + $0x10] sm:$0xff] }
 0x2d2   : > { %2234 = vmatpush.msrb.mxu0 %v2163_v23  ;;  %v4206_v23 = vld [vmem:[%s6602_s15 + $0x118] sm:$0xf] }
 0x2d6   : > { %v1864_v4 = vpop.f32.mrf.mxu1 }
 0x2d7   : > { %v1865_v46 = vadd.f32 %v5764_v39, %v1864_v4 }
 0x2d9   : > { %1910 = vst [vmem:[%s5769_s2 + $0x8] sm:$0xff] %v1865_v46  ;;  %1964 = vmatmul.f32.gmra.mxu2 %v1865_v46 }
 0x2de   : > { %v1867_v50 = vpop.f32.mrf.mxu1 }
 0x2df   : > { %v1868_v33 = vadd.f32 %v5764_v39, %v1867_v50 }
 0x2e1   : > { %1911 = vst [vmem:[%s5769_s2 + $0x10] sm:$0xff] %v1868_v33  ;;  %1967 = vmatmul.f32.gmra.mxu2 %v1868_v33 }
 0x2e6   : > { %v1870_v47 = vpop.f32.mrf.mxu1 }
 0x2e7   : > { %v1871_v44 = vadd.f32 %v5764_v39, %v1870_v47 }
 0x2e9   : > { %1912 = vst [vmem:[%s5769_s2 + $0x18] sm:$0xff] %v1871_v44  ;;  %1970 = vmatmul.f32.gmra.mxu2 %v1871_v44 }
 0x2ee   : > { %v1873_v5 = vpop.f32.mrf.mxu1 }
 0x2ef   : > { %v1874_v8 = vadd.f32 %v5764_v39, %v1873_v5  ;;  %v2162_v5 = vld [vmem:[%s6600_s13 + $0x8] sm:$0xff] }
 0x2f0   : > { %2235 = vmatpush.msrb.mxu0 %v2162_v5  ;;  %v4180_v5 = vld [vmem:[%s6602_s15 + $0xfc] sm:$0xf0] }
 0x2f1   : > { %1913 = vst [vmem:[%s5769_s2 + $0x20] sm:$0xff] %v1874_v8  ;;  %1973 = vmatmul.f32.gmra.mxu2 %v1874_v8 }
 0x2f6   : > { %v1876_v48 = vpop.f32.mrf.mxu1 }
 0x2f7   : > { %v1877_v19 = vadd.f32 %v5764_v39, %v1876_v48 }
 0x2f9   : > { %1914 = vst [vmem:[%s5769_s2 + $0x28] sm:$0xff] %v1877_v19  ;;  %1976 = vmatmul.f32.gmra.mxu2 %v1877_v19 }
 0x2fe   : > { %v1879_v49 = vpop.f32.mrf.mxu1 }
 0x2ff   : > { %v1880_v51 = vadd.f32 %v5764_v39, %v1879_v49 }
 0x301   : > { %1915 = vst [vmem:[%s5769_s2 + $0x30] sm:$0xff] %v1880_v51  ;;  %1979 = vmatmul.f32.gmra.mxu2 %v1880_v51 }
 0x306   : > { %v1882_v52 = vpop.f32.mrf.mxu1 }
 0x307   : > { %v1883_v54 = vadd.f32 %v5764_v39, %v1882_v52  ;;  %v2161_v52 = vld [vmem:[%s6600_s13] sm:$0xff] }
 0x308   : > { %2236 = vmatpush.msrb.mxu0 %v2161_v52 }
 0x309   : > { %1916 = vst [vmem:[%s5769_s2 + $0x38] sm:$0xff] %v1883_v54  ;;  %1982 = vmatmul.f32.gmra.mxu2 %v1883_v54 }
 0x30e   : > { %v1885_v55 = vpop.f32.mrf.mxu1 }
 0x30f   : > { %v1886_v62 = vadd.f32 %v5764_v39, %v1885_v55 }
 0x311   : > { %1917 = vst [vmem:[%s5769_s2 + $0x40] sm:$0xff] %v1886_v62  ;;  %1985 = vmatmul.f32.gmra.mxu2 %v1886_v62 }
 0x316   : > { %v1888_v58 = vpop.f32.mrf.mxu1 }
 0x317   : > { %v1889_v42 = vadd.f32 %v5764_v39, %v1888_v58 }
 0x319   : > { %1918 = vst [vmem:[%s5769_s2 + $0x48] sm:$0xff] %v1889_v42  ;;  %1988 = vmatmul.f32.gmra.mxu2 %v1889_v42 }
 0x31e   : > { %v1891_v21 = vpop.f32.mrf.mxu1 }
 0x31f   : > { %v1892_v31 = vadd.f32 %v5764_v39, %v1891_v21 }
 0x321   : > { %1919 = vst [vmem:[%s5769_s2 + $0x50] sm:$0xff] %v1892_v31  ;;  %1991 = vmatmul.f32.gmra.mxu2 %v1892_v31 }
 0x326   : > { %v1894_v6 = vpop.f32.mrf.mxu1 }
 0x327   : > { %v1895_v36 = vadd.f32 %v5764_v39, %v1894_v6 }
 0x329   : > { %1920 = vst [vmem:[%s5769_s2 + $0x58] sm:$0xff] %v1895_v36  ;;  %1994 = vmatmul.f32.gmra.mxu2 %v1895_v36 }
 0x32e   : > { %v1897_v63 = vpop.f32.mrf.mxu1 }
 0x32f   : > { %v1898_v60 = vadd.f32 %v5764_v39, %v1897_v63 }
 0x331   : > { %1921 = vst [vmem:[%s5769_s2 + $0x60] sm:$0xff] %v1898_v60  ;;  %1997 = vmatmul.f32.gmra.mxu2 %v1898_v60  ;;  %v4388_v60 = vld [vmem:[%s6602_s15 + $0x18c] sm:$0xf] }
 0x336   : > { %v1900_v37 = vpop.f32.mrf.mxu1 }
 0x337   : > { %v1901_v10 = vadd.f32 %v5764_v39, %v1900_v37  ;;  %v4264_v37 = vld [vmem:[%s6602_s15 + $0x1a4] sm:$0xf0] }
 0x339   : > { %1922 = vst [vmem:[%s5769_s2 + $0x68] sm:$0xff] %v1901_v10  ;;  %2000 = vmatmul.f32.gmra.mxu2 %v1901_v10  ;;  %v4270_v10 = vld [vmem:[%s6602_s15 + $0x190] sm:$0xf] }
 0x33e   : > { %v1903_v61 = vpop.f32.mrf.mxu1 }
 0x33f   : > { %v1904_v12 = vadd.f32 %v5764_v39, %v1903_v61  ;;  %v4267_v61 = vor.u32 %v4388_v60, %v4264_v37  ;;  %v4364_v60 = vld [vmem:[%s6602_s15 + $0xc8] sm:$0xf0] }
 0x341   : > { %1923 = vst [vmem:[%s5769_s2 + $0x70] sm:$0xff] %v1904_v12  ;;  %2003 = vmatmul.f32.gmra.mxu2 %v1904_v12  ;;  %v4392_v12 = vld [vmem:[%s6602_s15 + $0x1a8] sm:$0xf0] }
 0x342   : > { %2727 = vmatpush.bf16.msrb.mxu2 %v4267_v61 }
 0x346   : > { %v1906_v59 = vpop.f32.mrf.mxu1 }
 0x347   : > { %v1907_v13 = vadd.f32 %v5764_v39, %v1906_v59  ;;  %v5882_v59 = vld [vmem:[%s6599_s12] ss:$0 sm:$0xff] }
 0x349   : > { %1924 = vst [vmem:[%s5769_s2 + $0x78] sm:$0xff] %v1907_v13  ;;  %2006 = vmatmul.f32.gmra.mxu2 %v1907_v13  ;;  %v4271_v13 = vor.u32 %v4392_v12, %v4270_v10  ;;  %s6340_s2 = scalar_lea.vmem %s6605_s18, %s4395_s25 }
 0x34b   : > { %2776 = vmatpush.bf16.msrb.mxu3 %v4271_v13  ;;  %v4150_v13 = vld [vmem:[%s6602_s15 + $0xa8] sm:$0xf] }
 0x354   : > { %v1962_v9 = vpop.f32.mrf.mxu2 }
 0x355   : > { %v1963_v40 = vadd.f32 %v5812_v18, %v1962_v9  ;;  %v4262_v9 = vld [vmem:[%s6602_s15 + $0x188] sm:$0xf] }
 0x357   : > { %4507 = vtanh.f32 %v1963_v40  ;;  %v4391_v40 = vld [vmem:[%s6602_s15 + $0x1a0] sm:$0xf0] }
 0x358   : > { %v4263_v7 = vor.u32 %v4391_v40, %v4262_v9 }
 0x35a   : > { %2678 = vmatpush.bf16.msrb.mxu1 %v4263_v7 }
 0x35c   : > { %v1965_v41 = vpop.f32.mrf.mxu2 }
 0x35d   : > { %v4508_v24 = vpop.eup %4507  ;;  %v1966_v25 = vadd.f32 %v5812_v18, %v1965_v41 }
 0x35e   : > { %4032 = vmatmul.msk.f32.vlgmr.msra.gmra.mxu3 %vm1163_vm0, %v4508_v24 }
 0x35f   : > { %4509 = vtanh.f32 %v1966_v25 }
 0x364   : > { %v1968_v26 = vpop.f32.mrf.mxu2 }
 0x365   : > { %v4510_v0 = vpop.eup %4509  ;;  %v1969_v27 = vadd.f32 %v5812_v18, %v1968_v26  ;;  %v4381_v26 = vld [vmem:[%s6602_s15 + $0x154] sm:$0xf] }
 0x366   : > { %4033 = vmatmul.msk.f32.gmra.mxu3 %vm1163_vm0, %v4510_v0  ;;  %v4236_v0 = vld [vmem:[%s6602_s15 + $0x16c] sm:$0xf0] }
 0x367   : > { %4511 = vtanh.f32 %v1969_v27  ;;  %v4242_v27 = vld [vmem:[%s6602_s15 + $0x158] sm:$0xf]  ;;  %v4239_v1 = vor.u32 %v4381_v26, %v4236_v0  ;;  %v4357_v0 = vld [vmem:[%s6602_s15 + $0x90] sm:$0xf0] }
 0x369   : > { %2728 = vmatpush.bf16.msrb.mxu2 %v4239_v1 }
 0x36c   : > { %v1971_v43 = vpop.f32.mrf.mxu2 }
 0x36d   : > { %v4512_v28 = vpop.eup %4511  ;;  %v1972_v53 = vadd.f32 %v5812_v18, %v1971_v43  ;;  %v4385_v43 = vld [vmem:[%s6602_s15 + $0x170] sm:$0xf0] }
 0x36e   : > { %4034 = vmatmul.msk.f32.gmra.mxu3 %vm1163_vm0, %v4512_v28  ;;  %v4243_v28 = vor.u32 %v4385_v43, %v4242_v27 }
 0x36f   : > { %4513 = vtanh.f32 %v1972_v53 }
 0x370   : > { %2777 = vmatpush.bf16.msrb.mxu3 %v4243_v28 }
 0x374   : > { %v1974_v56 = vpop.f32.mrf.mxu2 }
 0x375   : > { %v4514_v29 = vpop.eup %4513  ;;  %v1975_v32 = vadd.f32 %v5812_v18, %v1974_v56 }
 0x376   : > { %4035 = vmatmul.msk.f32.gmra.mxu3 %vm1163_vm0, %v4514_v29 }
 0x377   : > { %4515 = vtanh.f32 %v1975_v32  ;;  %v4234_v32 = vld [vmem:[%s6602_s15 + $0x150] sm:$0xf] }
 0x37c   : > { %v1977_v34 = vpop.f32.mrf.mxu2 }
 0x37d   : > { %v4516_v35 = vpop.eup %4515  ;;  %v1978_v17 = vadd.f32 %v5812_v18, %v1977_v34  ;;  %v4235_v34 = vor.u32 %v4384_v57, %v4234_v32 }
 0x37e   : > { %4036 = vmatmul.msk.f32.gmra.mxu3 %vm1163_vm0, %v4516_v35 }
 0x37f   : > { %4517 = vtanh.f32 %v1978_v17  ;;  %2679 = vmatpush.bf16.msrb.mxu1 %v4235_v34 }
 0x384   : > { %v1980_v2 = vpop.f32.mrf.mxu2 }
 0x385   : > { %v4518_v22 = vpop.eup %4517  ;;  %v1981_v11 = vadd.f32 %v5812_v18, %v1980_v2 }
 0x386   : > { %4037 = vmatmul.msk.f32.gmra.mxu3 %vm1163_vm0, %v4518_v22  ;;  %v4374_v22 = vld [vmem:[%s6602_s15 + $0x11c] sm:$0xf] }
 0x387   : > { %4519 = vtanh.f32 %v1981_v11  ;;  %v4208_v11 = vld [vmem:[%s6602_s15 + $0x134] sm:$0xf0] }
 0x38c   : > { %v1983_v30 = vpop.f32.mrf.mxu2 }
 0x38d   : > { %v4520_v38 = vpop.eup %4519  ;;  %v1984_v15 = vadd.f32 %v5812_v18, %v1983_v30  ;;  %v4211_v30 = vor.u32 %v4374_v22, %v4208_v11  ;;  %v4346_v22 = vld [vmem:[%s6602_s15 + $0x3c] sm:$0xf]  ;;  %v4096_v11 = vld [vmem:[%s6602_s15 + $0x54] sm:$0xf0] }
 0x38e   : > { %4038 = vmatmul.msk.f32.gmra.mxu3 %vm1163_vm0, %v4520_v38  ;;  %v4378_v38 = vld [vmem:[%s6602_s15 + $0x138] sm:$0xf0] }
 0x38f   : > { %4521 = vtanh.f32 %v1984_v15  ;;  %v4215_v15 = vor.u32 %v4378_v38, %v4214_v14  ;;  %2729 = vmatpush.bf16.msrb.mxu2 %v4211_v30  ;;  %v4102_v14 = vld [vmem:[%s6602_s15 + $0x40] sm:$0xf]  ;;  %v4099_v30 = vor.u32 %v4346_v22, %v4096_v11  ;;  %v4350_v38 = vld [vmem:[%s6602_s15 + $0x58] sm:$0xf0]  ;;  %v4258_v11 = vld [vmem:[%s6602_s15 + $0x168] sm:$0xf] }
 0x390   : > { %v4252_v22 = vld [vmem:[%s6602_s15 + $0x17c] sm:$0xf0] }
 0x391   : > { %2778 = vmatpush.bf16.msrb.mxu3 %v4215_v15  ;;  %v4382_v15 = vld [vmem:[%s6602_s15 + $0x15c] sm:$0xf] }
 0x394   : > { %v1986_v3 = vpop.f32.mrf.mxu2 }
 0x395   : > { %v4522_v39 = vpop.eup %4521  ;;  %v1987_v45 = vadd.f32 %v5812_v18, %v1986_v3 }
 0x396   : > { %4039 = vmatmul.msk.f32.gmra.mxu3 %vm1163_vm0, %v4522_v39 }
 0x397   : > { %4523 = vtanh.f32 %v1987_v45 }
 0x39c   : > { %v1989_v4 = vpop.f32.mrf.mxu2 }
 0x39d   : > { %v4524_v46 = vpop.eup %4523  ;;  %v1990_v50 = vadd.f32 %v5812_v18, %v1989_v4  ;;  %v4377_v4 = vld [vmem:[%s6602_s15 + $0x130] sm:$0xf0] }
 0x39e   : > { %4040 = vmatmul.msk.f32.gmra.mxu3 %vm1163_vm0, %v4524_v46  ;;  %v4207_v46 = vor.u32 %v4377_v4, %v4206_v23  ;;  %v4094_v23 = vld [vmem:[%s6602_s15 + $0x38] sm:$0xf]  ;;  %v4349_v4 = vld [vmem:[%s6602_s15 + $0x50] sm:$0xf0] }
 0x39f   : > { %4525 = vtanh.f32 %v1990_v50 }
 0x3a0   : > { %2680 = vmatpush.bf16.msrb.mxu1 %v4207_v46  ;;  %v4095_v46 = vor.u32 %v4349_v4, %v4094_v23 }
 0x3a4   : > { %v1992_v33 = vpop.f32.mrf.mxu2 }
 0x3a5   : > { %v4526_v47 = vpop.eup %4525  ;;  %v1993_v44 = vadd.f32 %v5812_v18, %v1992_v33 }
 0x3a6   : > { %4041 = vmatmul.msk.f32.gmra.mxu3 %vm1163_vm0, %v4526_v47 }
 0x3a7   : > { %4527 = vtanh.f32 %v1993_v44  ;;  %v4367_v44 = vld [vmem:[%s6602_s15 + $0xe4] sm:$0xf] }
 0x3ac   : > { %v1995_v8 = vpop.f32.mrf.mxu2 }
 0x3ad   : > { %v4528_v48 = vpop.eup %4527  ;;  %v1996_v19 = vadd.f32 %v5812_v18, %v1995_v8  ;;  %v4186_v8 = vld [vmem:[%s6602_s15 + $0xe8] sm:$0xf] }
 0x3ae   : > { %4042 = vmatmul.msk.f32.gmra.mxu3 %vm1163_vm0, %v4528_v48  ;;  %v4183_v48 = vor.u32 %v4367_v44, %v4180_v5  ;;  %v4375_v44 = vld [vmem:[%s6602_s15 + $0x124] sm:$0xf]  ;;  %v4216_v5 = vld [vmem:[%s6602_s15 + $0x13c] sm:$0xf0] }
 0x3af   : > { %4529 = vtanh.f32 %v1996_v19  ;;  %v4371_v19 = vld [vmem:[%s6602_s15 + $0x100] sm:$0xf0] }
 0x3b0   : > { %2730 = vmatpush.bf16.msrb.mxu2 %v4183_v48  ;;  %v4368_v48 = vld [vmem:[%s6602_s15 + $0xec] sm:$0xf] }
 0x3b4   : > { %v1998_v49 = vpop.f32.mrf.mxu2 }
 0x3b5   : > { %v4530_v51 = vpop.eup %4529  ;;  %v1999_v20 = vadd.f32 %v5812_v18, %v1998_v49  ;;  %v4187_v49 = vor.u32 %v4371_v19, %v4186_v8  ;;  %v4219_v8 = vor.u32 %v4375_v44, %v4216_v5  ;;  %v4188_v19 = vld [vmem:[%s6602_s15 + $0x104] sm:$0xf0]  ;;  %v4376_v44 = vld [vmem:[%s6602_s15 + $0x12c] sm:$0xf] }
 0x3b6   : > { %4043 = vmatmul.msk.f32.gmra.mxu3 %vm1163_vm0, %v4530_v51  ;;  %v4224_v5 = vld [vmem:[%s6602_s15 + $0x144] sm:$0xf0] }
 0x3b7   : > { %4531 = vtanh.f32 %v1999_v20  ;;  %2779 = vmatpush.bf16.msrb.mxu3 %v4187_v49  ;;  %v4191_v49 = vor.u32 %v4368_v48, %v4188_v19  ;;  %v4227_v19 = vor.u32 %v4376_v44, %v4224_v5  ;;  %v4358_v44 = vld [vmem:[%s6602_s15 + $0x98] sm:$0xf0] }
 0x3bc   : > { %v2001_v54 = vpop.f32.mrf.mxu2 }
 0x3bd   : > { %v4532_v55 = vpop.eup %4531  ;;  %v2002_v62 = vadd.f32 %v5812_v18, %v2001_v54  ;;  %v4178_v54 = vld [vmem:[%s6602_s15 + $0xe0] sm:$0xf] }
 0x3be   : > { %4044 = vmatmul.msk.f32.gmra.mxu3 %vm1163_vm0, %v4532_v55  ;;  %v4370_v55 = vld [vmem:[%s6602_s15 + $0xf8] sm:$0xf0] }
 0x3bf   : > { %4533 = vtanh.f32 %v2002_v62  ;;  %v4179_v62 = vor.u32 %v4370_v55, %v4178_v54  ;;  %v4361_v54 = vld [vmem:[%s6602_s15 + $0xb4] sm:$0xf]  ;;  %v4160_v55 = vld [vmem:[%s6602_s15 + $0xcc] sm:$0xf0] }
 0x3c1   : > { %2681 = vmatpush.bf16.msrb.mxu1 %v4179_v62  ;;  %v4339_v62 = vld [vmem:[%s6602_s15 + $0x4] sm:$0xf] }
 0x3c4   : > { %v2004_v58 = vpop.f32.mrf.mxu2 }
 0x3c5   : > { %v4534_v42 = vpop.eup %4533  ;;  %v2005_v21 = vadd.f32 %v5812_v18, %v2004_v58 }
 0x3c6   : > { %4045 = vmatmul.msk.f32.gmra.mxu3 %vm1163_vm0, %v4534_v42 }
 0x3c7   : > { %4535 = vtanh.f32 %v2005_v21 }
 0x3cc   : > { %v2007_v31 = vpop.f32.mrf.mxu2 }
 0x3cd   : > { %v4536_v6 = vpop.eup %4535  ;;  %v2008_v36 = vadd.f32 %v5812_v18, %v2007_v31  ;;  %v4360_v31 = vld [vmem:[%s6602_s15 + $0xac] sm:$0xf] }
 0x3ce   : > { %4046 = vmatmul.msk.f32.gmra.mxu3 %vm1163_vm0, %v4536_v6  ;;  %v4152_v6 = vld [vmem:[%s6602_s15 + $0xc4] sm:$0xf0] }
 0x3cf   : > { %4537 = vtanh.f32 %v2008_v36  ;;  %v4158_v36 = vld [vmem:[%s6602_s15 + $0xb0] sm:$0xf] }
 0x3d0   : > { %v4159_v37 = vor.u32 %v4364_v60, %v4158_v36  ;;  %v4132_v60 = vld [vmem:[%s6602_s15 + $0x94] sm:$0xf0] }
 0x3d2   : > { %2780 = vmatpush.bf16.msrb.mxu3 %v4159_v37 }
 0x3d5   : > { %v4538_v63 = vpop.eup %4537 }
 0x3d6   : > { %4047 = vmatmul.msk.f32.gmra.mxu3 %vm1163_vm0, %v4538_v63  ;;  %v4155_v63 = vor.u32 %v4360_v31, %v4152_v6  ;;  %v4343_v6 = vld [vmem:[%s6602_s15 + $0x20] sm:$0xf0] }
 0x3d8   : > { %2731 = vmatpush.bf16.msrb.mxu2 %v4155_v63  ;;  %v4354_v63 = vld [vmem:[%s6602_s15 + $0x7c] sm:$0xf] }
 0x3d9   : > { %v4135_v37 = vor.u32 %v4354_v63, %v4132_v60  ;;  %v4202_v63 = vld [vmem:[%s6602_s15 + $0xf8] sm:$0xf] }
 0x3e1   : > { %v2097_v16 = vpop.f32.mrf.mxu3 }
 0x3e2   : > { %v2098_v18 = vadd.f32 %v5882_v59, %v2097_v16  ;;  %v4363_v16 = vld [vmem:[%s6602_s15 + $0xc0] sm:$0xf0] }
 0x3e4   : > { %4539 = vtanh.f32 %v2098_v18  ;;  %v4151_v18 = vor.u32 %v4363_v16, %v4150_v13  ;;  %v4347_v13 = vld [vmem:[%s6602_s15 + $0x44] sm:$0xf]  ;;  %v4104_v16 = vld [vmem:[%s6602_s15 + $0x5c] sm:$0xf0] }
 0x3e6   : > { %2682 = vmatpush.bf16.msrb.mxu1 %v4151_v18  ;;  %v4107_v18 = vor.u32 %v4347_v13, %v4104_v16 }
 0x3e9   : > { %v2100_v41 = vpop.f32.mrf.mxu3 }
 0x3ea   : > { %v4540_v24 = vpop.eup %4539  ;;  %v2101_v25 = vadd.f32 %v5882_v59, %v2100_v41  ;;  %v4353_v41 = vld [vmem:[%s6602_s15 + $0x74] sm:$0xf] }
 0x3eb   : > { %4048 = vmatmul.msk.f32.vlgmr.msrb.gmra.mxu0 %vm1660_vm1, %v4540_v24  ;;  %v4124_v24 = vld [vmem:[%s6602_s15 + $0x8c] sm:$0xf0] }
 0x3ec   : > { %4541 = vtanh.f32 %v2101_v25  ;;  %v4130_v25 = vld [vmem:[%s6602_s15 + $0x78] sm:$0xf]  ;;  %v4127_v26 = vor.u32 %v4353_v41, %v4124_v24  ;;  %v4076_v24 = vld [vmem:[%s6602_s15 + $0x24] sm:$0xf0] }
 0x3ed   : > { %v4131_v27 = vor.u32 %v4357_v0, %v4130_v25 }
 0x3ee   : > { %2732 = vmatpush.bf16.msrb.mxu2 %v4127_v26 }
 0x3ef   : > { %2781 = vmatpush.bf16.msrb.mxu3 %v4131_v27 }
 0x3f1   : > { %v2103_v53 = vpop.f32.mrf.mxu3 }
 0x3f2   : > { %v4542_v56 = vpop.eup %4541  ;;  %v2104_v29 = vadd.f32 %v5882_v59, %v2103_v53  ;;  %v4122_v53 = vld [vmem:[%s6602_s15 + $0x70] sm:$0xf]  ;;  %2733 = vmatpush.bf16.msrb.mxu2 %v4099_v30 }
 0x3f3   : > { %4049 = vmatmul.msk.f32.gmra.mxu0 %vm1660_vm1, %v4542_v56  ;;  %v4356_v56 = vld [vmem:[%s6602_s15 + $0x88] sm:$0xf0] }
 0x3f4   : > { %4543 = vtanh.f32 %v2104_v29  ;;  %v4123_v29 = vor.u32 %v4356_v56, %v4122_v53 }
 0x3f6   : > { %2683 = vmatpush.bf16.msrb.mxu1 %v4123_v29 }
 0x3f9   : > { %v2106_v35 = vpop.f32.mrf.mxu3 }
 0x3fa   : > { %v4544_v17 = vpop.eup %4543  ;;  %v2107_v2 = vadd.f32 %v5882_v59, %v2106_v35  ;;  %v4389_v35 = vld [vmem:[%s6602_s15 + $0x194] sm:$0xf]  ;;  %2684 = vmatpush.bf16.msrb.mxu1 %v4095_v46 }
 0x3fb   : > { %4050 = vmatmul.msk.f32.gmra.mxu0 %vm1660_vm1, %v4544_v17  ;;  %v4272_v17 = vld [vmem:[%s6602_s15 + $0x1ac] sm:$0xf0] }
 0x3fc   : > { %4545 = vtanh.f32 %v2107_v2  ;;  %v4275_v2 = vor.u32 %v4389_v35, %v4272_v17  ;;  %v4393_v35 = vld [vmem:[%s6602_s15 + $0x1b0] sm:$0xf0] }
 0x3fe   : > { %2825 = vmatpush.bf16.msra.mxu0 %v4275_v2  ;;  %v4383_v2 = vld [vmem:[%s6602_s15 + $0x164] sm:$0xf] }
 0x3ff   : > { %v4255_v30 = vor.u32 %v4383_v2, %v4252_v22  ;;  %v4355_v22 = vld [vmem:[%s6602_s15 + $0x84] sm:$0xf] }
 0x401   : > { %v2109_v3 = vpop.f32.mrf.mxu3 }
 0x402   : > { %v4546_v39 = vpop.eup %4545  ;;  %v2110_v45 = vadd.f32 %v5882_v59, %v2109_v3  ;;  %v4244_v3 = vld [vmem:[%s6602_s15 + $0x174] sm:$0xf0] }
 0x403   : > { %4051 = vmatmul.msk.f32.gmra.mxu0 %vm1660_vm1, %v4546_v39  ;;  %v4103_v39 = vor.u32 %v4350_v38, %v4102_v14  ;;  %v4387_v38 = vld [vmem:[%s6602_s15 + $0x180] sm:$0xf0] }
 0x404   : > { %4547 = vtanh.f32 %v2110_v45  ;;  %v4247_v45 = vor.u32 %v4382_v15, %v4244_v3  ;;  %v4259_v15 = vor.u32 %v4387_v38, %v4258_v11  ;;  %v4140_v11 = vld [vmem:[%s6602_s15 + $0x9c] sm:$0xf0] }
 0x405   : > { %2782 = vmatpush.bf16.msrb.mxu3 %v4103_v39  ;;  %v4143_v38 = vor.u32 %v4355_v22, %v4140_v11 }
 0x406   : > { %2826 = vmatpush.bf16.msra.mxu0 %v4247_v45 }
 0x409   : > { %v2112_v50 = vpop.f32.mrf.mxu3 }
 0x40a   : > { %v4548_v33 = vpop.eup %4547  ;;  %v2113_v47 = vadd.f32 %v5882_v59, %v2112_v50  ;;  %2827 = vmatpush.bf16.msra.mxu0 %v4219_v8  ;;  %v4230_v8 = vld [vmem:[%s6602_s15 + $0x130] sm:$0xf] }
 0x40b   : > { %4052 = vmatmul.msk.f32.gmra.mxu0 %vm1660_vm1, %v4548_v33 }
 0x40c   : > { %4549 = vtanh.f32 %v2113_v47 }
 0x40e   : > { %2828 = vmatpush.bf16.msra.mxu0 %v4191_v49  ;;  %v4380_v49 = vld [vmem:[%s6602_s15 + $0x148] sm:$0xf0] }
 0x411   : > { %v2115_v51 = vpop.f32.mrf.mxu3 }
 0x412   : > { %v4550_v20 = vpop.eup %4549  ;;  %v2116_v52 = vadd.f32 %v5882_v59, %v2115_v51 }
 0x413   : > { %4053 = vmatmul.msk.f32.gmra.mxu0 %vm1660_vm1, %v4550_v20 }
 0x414   : > { %4551 = vtanh.f32 %v2116_v52 }
 0x419   : > { %v2118_v58 = vpop.f32.mrf.mxu3 }
 0x41a   : > { %v4552_v42 = vpop.eup %4551  ;;  %v2119_v21 = vadd.f32 %v5882_v59, %v2118_v58  ;;  %v4068_v58 = vld [vmem:[%s6602_s15 + $0x1c] sm:$0xf0] }
 0x41b   : > { %4054 = vmatmul.msk.f32.gmra.mxu0 %vm1660_vm1, %v4552_v42  ;;  %v4074_v42 = vld [vmem:[%s6602_s15 + $0x8] sm:$0xf]  ;;  %v4071_v31 = vor.u32 %v4339_v62, %v4068_v58 }
 0x41c   : > { %4553 = vtanh.f32 %v2119_v21  ;;  %v4163_v21 = vor.u32 %v4361_v54, %v4160_v55  ;;  %v4075_v36 = vor.u32 %v4343_v6, %v4074_v42  ;;  %v4222_v42 = vld [vmem:[%s6602_s15 + $0x128] sm:$0xf]  ;;  %v4369_v6 = vld [vmem:[%s6602_s15 + $0xf4] sm:$0xf] }
 0x41d   : > { %2734 = vmatpush.bf16.msrb.mxu2 %v4071_v31 }
 0x41e   : > { %2829 = vmatpush.bf16.msra.mxu0 %v4163_v21  ;;  %2783 = vmatpush.bf16.msrb.mxu3 %v4075_v36  ;;  %v4379_v21 = vld [vmem:[%s6602_s15 + $0x140] sm:$0xf0]  ;;  %v4196_v36 = vld [vmem:[%s6602_s15 + $0x10c] sm:$0xf0] }
 0x41f   : > { %v4223_v31 = vor.u32 %v4379_v21, %v4222_v42 }
 0x421   : > { %v2121_v10 = vpop.f32.mrf.mxu3 }
 0x422   : > { %v4554_v61 = vpop.eup %4553  ;;  %v2122_v12 = vadd.f32 %v5882_v59, %v2121_v10  ;;  %2830 = vmatpush.bf16.msra.mxu0 %v4135_v37  ;;  %v4199_v37 = vor.u32 %v4369_v6, %v4196_v36  ;;  %v4110_v6 = vld [vmem:[%s6602_s15 + $0x48] sm:$0xf]  ;;  %v4351_v36 = vld [vmem:[%s6602_s15 + $0x60] sm:$0xf0] }
 0x423   : > { %4055 = vmatmul.msk.f32.gmra.mxu0 %vm1660_vm1, %v4554_v61 }
 0x424   : > { %4555 = vtanh.f32 %v2122_v12 }
 0x426   : > { %2831 = vmatpush.bf16.msra.mxu0 %v4107_v18 }
 0x429   : > { %v2124_v9 = vpop.f32.mrf.mxu3 }
 0x42a   : > { %v4556_v40 = vpop.eup %4555  ;;  %v2125_v7 = vadd.f32 %v5882_v59, %v2124_v9  ;;  %v4066_v9 = vld [vmem:[%s6602_s15] sm:$0xf] }
 0x42b   : > { %4056 = vmatmul.msk.f32.gmra.mxu0 %vm1660_vm1, %v4556_v40  ;;  %v4342_v40 = vld [vmem:[%s6602_s15 + $0x18] sm:$0xf0] }
 0x42c   : > { %4557 = vtanh.f32 %v2125_v7  ;;  %v4340_v7 = vld [vmem:[%s6602_s15 + $0xc] sm:$0xf]  ;;  %v4067_v41 = vor.u32 %v4342_v40, %v4066_v9 }
 0x42d   : > { %v4079_v25 = vor.u32 %v4340_v7, %v4076_v24  ;;  %v4194_v7 = vld [vmem:[%s6602_s15 + $0xf0] sm:$0xf] }
 0x42e   : > { %2685 = vmatpush.bf16.msrb.mxu1 %v4067_v41  ;;  %v4372_v41 = vld [vmem:[%s6602_s15 + $0x108] sm:$0xf0] }
 0x42f   : > { %2832 = vmatpush.bf16.msra.mxu0 %v4079_v25  ;;  %v4195_v24 = vor.u32 %v4372_v41, %v4194_v7  ;;  %v4362_v25 = vld [vmem:[%s6602_s15 + $0xbc] sm:$0xf] }
 0x431   : > { %v2127_v1 = vpop.f32.mrf.mxu3 }
 0x432   : > { %v4558_v43 = vpop.eup %4557  ;;  %v2128_v28 = vadd.f32 %v5882_v59, %v2127_v1  ;;  %v4390_v1 = vld [vmem:[%s6602_s15 + $0x19c] sm:$0xf] }
 0x433   : > { %4057 = vmatmul.msk.f32.gmra.mxu0 %vm1660_vm1, %v4558_v43  ;;  %v4280_v43 = vld [vmem:[%s6602_s15 + $0x1b4] sm:$0xf0] }
 0x434   : > { %4559 = vtanh.f32 %v2128_v28  ;;  %v4286_v28 = vld [vmem:[%s6602_s15 + $0x1a0] sm:$0xf]  ;;  %v4283_v53 = vor.u32 %v4390_v1, %v4280_v43  ;;  %v4366_v43 = vld [vmem:[%s6602_s15 + $0xd8] sm:$0xf0] }
 0x436   : > { %2923 = vmatpush.bf16.msra.mxu2 %v4283_v53 }
 0x439   : > { %v2130_v32 = vpop.f32.mrf.mxu3 }
 0x43a   : > { %v4560_v57 = vpop.eup %4559  ;;  %v2131_v34 = vadd.f32 %v5882_v59, %v2130_v32  ;;  %2924 = vmatpush.bf16.msra.mxu2 %v4255_v30 }
 0x43b   : > { %4058 = vmatmul.msk.f32.gmra.mxu0 %vm1660_vm1, %v4560_v57  ;;  %v6111_v57 = vld [vmem:[%s6601_s14] ss:$0 sm:$0xff] }
 0x43c   : > { %4561 = vtanh.f32 %v2131_v34  ;;  %v4278_v34 = vld [vmem:[%s6602_s15 + $0x198] sm:$0xf] }
 0x43d   : > { %v4279_v17 = vor.u32 %v4393_v35, %v4278_v34  ;;  %v4166_v35 = vld [vmem:[%s6602_s15 + $0xb8] sm:$0xf] }
 0x43e   : > { %2925 = vmatpush.bf16.msra.mxu2 %v4227_v19  ;;  %v4118_v19 = vld [vmem:[%s6602_s15 + $0x50] sm:$0xf] }
 0x43f   : > { %2874 = vmatpush.bf16.msra.mxu1 %v4279_v17  ;;  %v4365_v17 = vld [vmem:[%s6602_s15 + $0xd0] sm:$0xf0] }
 0x440   : > { %v4167_v2 = vor.u32 %v4365_v17, %v4166_v35 }
 0x441   : > { %v2133_v50 = vpop.f32.mrf.mxu3 }
 0x442   : > { %v4562_v33 = vpop.eup %4561  ;;  %v2134_v47 = vadd.f32 %v5882_v59, %v2133_v50  ;;  %v4250_v50 = vld [vmem:[%s6602_s15 + $0x160] sm:$0xf]  ;;  %2926 = vmatpush.bf16.msra.mxu2 %v4199_v37  ;;  %v4084_v37 = vld [vmem:[%s6602_s15 + $0x2c] sm:$0xf0] }
 0x443   : > { %4059 = vmatmul.msk.f32.gmra.mxu0 %vm1660_vm1, %v4562_v33  ;;  %v4386_v33 = vld [vmem:[%s6602_s15 + $0x178] sm:$0xf0] }
 0x444   : > { %4563 = vtanh.f32 %v2134_v47  ;;  %v4251_v47 = vor.u32 %v4386_v33, %v4250_v50 }
 0x446   : > { %2875 = vmatpush.bf16.msra.mxu1 %v4251_v47  ;;  %v4138_v47 = vld [vmem:[%s6602_s15 + $0x80] sm:$0xf] }
 0x447   : > { %v4139_v5 = vor.u32 %v4358_v44, %v4138_v47 }
 0x449   : > { %v2136_v51 = vpop.f32.mrf.mxu3 }
 0x44a   : > { %v4564_v20 = vpop.eup %4563  ;;  %v2137_v52 = vadd.f32 %v5882_v59, %v2136_v51  ;;  %v4231_v51 = vor.u32 %v4380_v49, %v4230_v8  ;;  %2876 = vmatpush.bf16.msra.mxu1 %v4223_v31  ;;  %v4348_v8 = vld [vmem:[%s6602_s15 + $0x4c] sm:$0xf] }
 0x44b   : > { %4060 = vmatmul.msk.f32.gmra.mxu0 %vm1660_vm1, %v4564_v20 }
 0x44c   : > { %4565 = vtanh.f32 %v2137_v52 }
 0x44e   : > { %2877 = vmatpush.bf16.msra.mxu1 %v4195_v24 }
 0x451   : > { %v2139_v10 = vpop.f32.mrf.mxu3 }
 0x452   : > { %v4566_v61 = vpop.eup %4565  ;;  %v2140_v12 = vadd.f32 %v5882_v59, %v2139_v10  ;;  %v4373_v10 = vld [vmem:[%s6602_s15 + $0x110] sm:$0xf0]  ;;  %2878 = vmatpush.bf16.msra.mxu1 %v4167_v2 }
 0x453   : > { %4061 = vmatmul.msk.f32.gmra.mxu0 %vm1660_vm1, %v4566_v61  ;;  %v4203_v61 = vor.u32 %v4373_v10, %v4202_v63  ;;  %v4111_v63 = vor.u32 %v4351_v36, %v4110_v6  ;;  %v4090_v10 = vld [vmem:[%s6602_s15 + $0x18] sm:$0xf] }
 0x454   : > { %4567 = vtanh.f32 %v2140_v12 }
 0x456   : > { %2879 = vmatpush.bf16.msra.mxu1 %v4139_v5 }
 0x459   : > { %v2142_v26 = vpop.f32.mrf.mxu3 }
 0x45a   : > { %v4568_v0 = vpop.eup %4567  ;;  %v2143_v27 = vadd.f32 %v5882_v59, %v2142_v26  ;;  %v4394_v59 = vld [vmem:[%s6602_s15 + $0x1b8] sm:$0xf0]  ;;  %v4168_v26 = vld [vmem:[%s6602_s15 + $0xd4] sm:$0xf0]  ;;  %2880 = vmatpush.bf16.msra.mxu1 %v4111_v63 }
 0x45b   : > { %4062 = vmatmul.msk.f32.gmra.mxu0 %vm1660_vm1, %v4568_v0  ;;  %v4287_v56 = vor.u32 %v4394_v59, %v4286_v28  ;;  %v4174_v0 = vld [vmem:[%s6602_s15 + $0xc0] sm:$0xf]  ;;  %v4171_v1 = vor.u32 %v4362_v25, %v4168_v26 }
 0x45c   : > { %4569 = vtanh.f32 %v2143_v27  ;;  %v4175_v28 = vor.u32 %v4366_v43, %v4174_v0 }
 0x45d   : > { %2972 = vmatpush.bf16.msra.mxu3 %v4287_v56  ;;  %2927 = vmatpush.bf16.msra.mxu2 %v4171_v1 }
 0x461   : > { %2973 = vmatpush.bf16.msra.mxu3 %v4259_v15  ;;  %v4359_v15 = vld [vmem:[%s6602_s15 + $0xa0] sm:$0xf0]  ;;  %2928 = vmatpush.bf16.msra.mxu2 %v4143_v38 }
 0x462   : > { %v4570_v29 = vpop.eup %4569 }
 0x463   : > { %4063 = vmatmul.msk.f32.gmra.mxu0 %vm1660_vm1, %v4570_v29 }
 0x465   : > { %2974 = vmatpush.bf16.msra.mxu3 %v4231_v51 }
 0x468   : > { %v2238_v32 = vpop.f32.mrf.mxu0 }
 0x469   : > { %v2239_v14 = vadd.f32 %v6111_v57, %v2238_v32  ;;  %2975 = vmatpush.bf16.msra.mxu3 %v4203_v61 }
 0x46b   : > { %4571 = vtanh.f32 %v2239_v14  ;;  %v4146_v14 = vld [vmem:[%s6602_s15 + $0x88] sm:$0xf] }
 0x46d   : > { %2976 = vmatpush.bf16.msra.mxu3 %v4175_v28 }
 0x470   : > { %v2241_v3 = vpop.f32.mrf.mxu0 }
 0x471   : > { %v2242_v39 = vadd.f32 %v6111_v57, %v2241_v3  ;;  %v4572_v45 = vpop.eup %4571  ;;  %v4147_v3 = vor.u32 %v4359_v15, %v4146_v14 }
 0x473   : > { %4573 = vtanh.f32 %v2242_v39  ;;  %2977 = vmatpush.bf16.msra.mxu3 %v4147_v3 }
 0x478   : > { %v2244_v23 = vpop.f32.mrf.mxu0 }
 0x479   : > { %v4574_v4 = vpop.eup %4573  ;;  %v2245_v48 = vadd.f32 %v6111_v57, %v2244_v23 }
 0x47a   : > { %v6133_v46 = vpack.c.bf16 %v4574_v4, %v4572_v45 }
 0x47b   : > { %4575 = vtanh.f32 %v2245_v48  ;;  %v4112_v48 = vld [vmem:[%s6602_s15 + $0x64] sm:$0xf0] }
 0x47c   : > { %2686 = vmatmul.bf16.vlgmr.msrb.gmra.mxu1 %v6133_v46  ;;  %2735 = vmatmul.bf16.vlgmr.msrb.gmra.mxu2 %v6133_v46  ;;  %v4115_v51 = vor.u32 %v4348_v8, %v4112_v48 }
 0x47d   : > { %2784 = vmatmul.bf16.vlgmr.msrb.gmra.mxu3 %v6133_v46  ;;  %2833 = vmatmul.bf16.vlgmr.msra.gmra.mxu0 %v6133_v46 }
 0x47e   : > { %2929 = vmatpush.bf16.msra.mxu2 %v4115_v51 }
 0x480   : > { %v2247_v20 = vpop.f32.mrf.mxu0 }
 0x481   : > { %v2248_v52 = vadd.f32 %v6111_v57, %v2247_v20  ;;  %v4576_v54 = vpop.eup %4575  ;;  %v4352_v20 = vld [vmem:[%s6602_s15 + $0x68] sm:$0xf0] }
 0x483   : > { %4577 = vtanh.f32 %v2248_v52  ;;  %v4119_v52 = vor.u32 %v4352_v20, %v4118_v19 }
 0x485   : > { %2978 = vmatpush.bf16.msra.mxu3 %v4119_v52 }
 0x488   : > { %v2250_v55 = vpop.f32.mrf.mxu0 }
 0x489   : > { %v4578_v62 = vpop.eup %4577  ;;  %v2251_v60 = vadd.f32 %v6111_v57, %v2250_v55 }
 0x48a   : > { %v6159_v58 = vpack.c.bf16 %v4578_v62, %v4576_v54 }
 0x48b   : > { %4579 = vtanh.f32 %v2251_v60  ;;  %v4341_v60 = vld [vmem:[%s6602_s15 + $0x14] sm:$0xf] }
 0x48c   : > { %2691 = vmatmul.bf16.gmra.mxu1 %v6159_v58  ;;  %2740 = vmatmul.bf16.gmra.mxu2 %v6159_v58 }
 0x48d   : > { %2789 = vmatmul.bf16.gmra.mxu3 %v6159_v58  ;;  %2838 = vmatmul.bf16.gmra.mxu0 %v6159_v58 }
 0x490   : > { %v2253_v12 = vpop.f32.mrf.mxu0 }
 0x491   : > { %v2254_v13 = vadd.f32 %v6111_v57, %v2253_v12  ;;  %v4580_v16 = vpop.eup %4579  ;;  %v4087_v12 = vor.u32 %v4341_v60, %v4084_v37 }
 0x493   : > { %4581 = vtanh.f32 %v2254_v13  ;;  %v4345_v13 = vld [vmem:[%s6602_s15 + $0x30] sm:$0xf0]  ;;  %2930 = vmatpush.bf16.msra.mxu2 %v4087_v12 }
 0x498   : > { %v2256_v18 = vpop.f32.mrf.mxu0 }
 0x499   : > { %v4582_v9 = vpop.eup %4581  ;;  %v2257_v27 = vadd.f32 %v6111_v57, %v2256_v18  ;;  %v4344_v18 = vld [vmem:[%s6602_s15 + $0x28] sm:$0xf0] }
 0x49a   : > { %v6185_v40 = vpack.c.bf16 %v4582_v9, %v4580_v16  ;;  %v4082_v16 = vld [vmem:[%s6602_s15 + $0x10] sm:$0xf]  ;;  %v4091_v9 = vor.u32 %v4345_v13, %v4090_v10 }
 0x49b   : > { %4583 = vtanh.f32 %v2257_v27  ;;  %v4083_v7 = vor.u32 %v4344_v18, %v4082_v16 }
 0x49c   : > { %2696 = vmatmul.bf16.gmra.mxu1 %v6185_v40  ;;  %2745 = vmatmul.bf16.gmra.mxu2 %v6185_v40 }
 0x49d   : > { %2794 = vmatmul.bf16.gmra.mxu3 %v6185_v40  ;;  %2843 = vmatmul.bf16.gmra.mxu0 %v6185_v40 }
 0x49e   : > { %2979 = vmatpush.bf16.msra.mxu3 %v4091_v9  ;;  %2881 = vmatpush.bf16.msra.mxu1 %v4083_v7 }
 0x4a0   : > { %v2259_v53 = vpop.f32.mrf.mxu0 }
 0x4a1   : > { %v2260_v59 = vadd.f32 %v6111_v57, %v2259_v53  ;;  %v4584_v56 = vpop.eup %4583 }
 0x4a3   : > { %4585 = vtanh.f32 %v2260_v59 }
 0x4a8   : > { %v2262_v29 = vpop.f32.mrf.mxu0 }
 0x4a9   : > { %v4586_v32 = vpop.eup %4585  ;;  %v2263_v30 = vadd.f32 %v6111_v57, %v2262_v29  ;;  %v2374_v29 = vld [vmem:[%s6603_s16] sm:$0xff] }
 0x4aa   : > { %v6211_v34 = vpack.c.bf16 %v4586_v32, %v4584_v56  ;;  %v6312_v32 = vperm.slane %v2374_v29, 0  ;;  %v6320_v14 = vperm.slane %v2374_v29, 1  ;;  %v6323_v38 = vperm.slane %v2374_v29, 2 }
 0x4ab   : > { %4587 = vtanh.f32 %v2263_v30 }
 0x4ac   : > { %2701 = vmatmul.bf16.gmra.mxu1 %v6211_v34  ;;  %2750 = vmatmul.bf16.gmra.mxu2 %v6211_v34 }
 0x4ad   : > { %2799 = vmatmul.bf16.gmra.mxu3 %v6211_v34  ;;  %2848 = vmatmul.bf16.gmra.mxu0 %v6211_v34 }
 0x4b0   : > { %v2265_v39 = vpop.f32.mrf.mxu0 }
 0x4b1   : > { %v2266_v45 = vadd.f32 %v6111_v57, %v2265_v39  ;;  %v4588_v23 = vpop.eup %4587 }
 0x4b3   : > { %4589 = vtanh.f32 %v2266_v45 }
 0x4b8   : > { %v2268_v4 = vpop.f32.mrf.mxu0 }
 0x4b9   : > { %v4590_v50 = vpop.eup %4589  ;;  %v2269_v49 = vadd.f32 %v6111_v57, %v2268_v4 }
 0x4ba   : > { %v6237_v33 = vpack.c.bf16 %v4590_v50, %v4588_v23 }
 0x4bb   : > { %4591 = vtanh.f32 %v2269_v49 }
 0x4bc   : > { %2706 = vmatmul.bf16.gmra.mxu1 %v6237_v33  ;;  %2755 = vmatmul.bf16.gmra.mxu2 %v6237_v33 }
 0x4bd   : > { %2804 = vmatmul.bf16.gmra.mxu3 %v6237_v33  ;;  %2853 = vmatmul.bf16.gmra.mxu0 %v6237_v33 }
 0x4c0   : > { %v2271_v54 = vpop.f32.mrf.mxu0 }
 0x4c1   : > { %v2272_v55 = vadd.f32 %v6111_v57, %v2271_v54  ;;  %v4592_v62 = vpop.eup %4591 }
 0x4c3   : > { %4593 = vtanh.f32 %v2272_v55 }
 0x4c8   : > { %v2274_v42 = vpop.f32.mrf.mxu0 }
 0x4c9   : > { %v4594_v21 = vpop.eup %4593  ;;  %v2275_v61 = vadd.f32 %v6111_v57, %v2274_v42 }
 0x4ca   : > { %v6263_v31 = vpack.c.bf16 %v4594_v21, %v4592_v62 }
 0x4cb   : > { %4595 = vtanh.f32 %v2275_v61 }
 0x4cc   : > { %2711 = vmatmul.bf16.gmra.mxu1 %v6263_v31  ;;  %2760 = vmatmul.bf16.gmra.mxu2 %v6263_v31 }
 0x4cd   : > { %2809 = vmatmul.bf16.gmra.mxu3 %v6263_v31  ;;  %2858 = vmatmul.bf16.gmra.mxu0 %v6263_v31 }
 0x4d0   : > { %v2277_v41 = vpop.f32.mrf.mxu0 }
 0x4d1   : > { %v2278_v24 = vadd.f32 %v6111_v57, %v2277_v41  ;;  %v4596_v25 = vpop.eup %4595 }
 0x4d3   : > { %4597 = vtanh.f32 %v2278_v24 }
 0x4d8   : > { %v2280_v26 = vpop.f32.mrf.mxu0 }
 0x4d9   : > { %v4598_v0 = vpop.eup %4597  ;;  %v2281_v1 = vadd.f32 %v6111_v57, %v2280_v26 }
 0x4da   : > { %v6295_v27 = vpack.c.bf16 %v4598_v0, %v4596_v25 }
 0x4db   : > { %4599 = vtanh.f32 %v2281_v1 }
 0x4dc   : > { %2716 = vmatmul.bf16.gmra.mxu1 %v6295_v27  ;;  %2765 = vmatmul.bf16.gmra.mxu2 %v6295_v27 }
 0x4dd   : > { %2814 = vmatmul.bf16.gmra.mxu3 %v6295_v27  ;;  %2863 = vmatmul.bf16.gmra.mxu0 %v6295_v27 }
 0x4e0   : > { %v2283_v43 = vpop.f32.mrf.mxu0 }
 0x4e1   : > { %v2284_v28 = vadd.f32 %v6111_v57, %v2283_v43  ;;  %v4600_v53 = vpop.eup %4599  ;;  %v6314_v57 = vperm.slane %v2374_v29, 3 }
 0x4e3   : > { %4601 = vtanh.f32 %v2284_v28 }
 0x4e9   : > { %v4602_v59 = vpop.eup %4601 }
 0x4ea   : > { %v6303_v56 = vpack.c.bf16 %v4602_v59, %v4600_v53 }
 0x4ec   : > { %2721 = vmatmul.bf16.gmra.mxu1 %v6303_v56  ;;  %2770 = vmatmul.bf16.gmra.mxu2 %v6303_v56 }
 0x4ed   : > { %2819 = vmatmul.bf16.gmra.mxu3 %v6303_v56  ;;  %2868 = vmatmul.bf16.gmra.mxu0 %v6303_v56 }
 0x4f9   : > { %v2687_v35 = vpop.f32.mrf.mxu1 }
 0x4fa   : > { %v2688_v17 = vadd.f32 %v2687_v35, %v6312_v32  ;;  %v2834_v2 = vpop.f32.mrf.mxu0 }
 0x4fb   : > { %v2835_v22 = vadd.f32 %v2834_v2, %v6314_v57 }
 0x4fc   : > { %v3021_v11 = vsub.f32 0.0, %v2688_v17  ;;  %2882 = vmatmul.bf16.vlgmr.msra.gmra.mxu1 %v6133_v46  ;;  %2931 = vmatmul.bf16.vlgmr.msra.gmra.mxu2 %v6133_v46 }
 0x4fd   : > { %v3024_v30 = vsub.f32 0.0, %v2835_v22  ;;  %2980 = vmatmul.bf16.vlgmr.msra.gmra.mxu3 %v6133_v46 }
 0x4fe   : > { %v3133_v15 = vmul.f32 1.442695, %v3021_v11 }
 0x4ff   : > { %v3139_v3 = vmul.f32 1.442695, %v3024_v30  ;;  %v2736_v39 = vpop.f32.mrf.mxu2 }
 0x500   : > { %4603 = vpow2.f32 %v3133_v15  ;;  %v2737_v45 = vadd.f32 %v2736_v39, %v6320_v14  ;;  %v2785_v23 = vpop.f32.mrf.mxu3 }
 0x501   : > { %4605 = vpow2.f32 %v3139_v3  ;;  %v2786_v4 = vadd.f32 %v2785_v23, %v6323_v38  ;;  %v2689_v50 = vpop.f32.mrf.mxu1 }
 0x502   : > { %v3022_v47 = vsub.f32 0.0, %v2737_v45  ;;  %v2690_v44 = vadd.f32 %v2689_v50, %v6312_v32  ;;  %v2836_v5 = vpop.f32.mrf.mxu0 }
 0x503   : > { %v3023_v8 = vsub.f32 0.0, %v2786_v4  ;;  %v2837_v46 = vadd.f32 %v2836_v5, %v6314_v57 }
 0x504   : > { %v3135_v48 = vmul.f32 1.442695, %v3022_v47  ;;  %v3028_v19 = vsub.f32 0.0, %v2690_v44 }
 0x505   : > { %v3137_v49 = vmul.f32 1.442695, %v3023_v8  ;;  %v3031_v51 = vsub.f32 0.0, %v2837_v46 }
 0x506   : > { %v4604_v20 = vpop.eup %4603  ;;  %4607 = vpow2.f32 %v3135_v48  ;;  %v3147_v52 = vmul.f32 1.442695, %v3028_v19 }
 0x507   : > { %v4606_v54 = vpop.eup %4605  ;;  %v3357_v55 = vadd.f32 1.0, %v4604_v20  ;;  %4609 = vpow2.f32 %v3137_v49  ;;  %v3153_v62 = vmul.f32 1.442695, %v3031_v51  ;;  %v2738_v42 = vpop.f32.mrf.mxu2 }
 0x508   : > { %v3360_v21 = vadd.f32 1.0, %v4606_v54  ;;  %4611 = vpow2.f32 %v3147_v52  ;;  %v2739_v6 = vadd.f32 %v2738_v42, %v6320_v14  ;;  %v2787_v36 = vpop.f32.mrf.mxu3 }
 0x509   : > { %4613 = vrcp.f32 %v3357_v55  ;;  %v2788_v63 = vadd.f32 %v2787_v36, %v6323_v38  ;;  %v2692_v60 = vpop.f32.mrf.mxu1 }
 0x50a   : > { %4615 = vrcp.f32 %v3360_v21  ;;  %v3029_v37 = vsub.f32 0.0, %v2739_v6  ;;  %v2693_v10 = vadd.f32 %v2692_v60, %v6312_v32  ;;  %v2839_v61 = vpop.f32.mrf.mxu0 }
 0x50b   : > { %4617 = vpow2.f32 %v3153_v62  ;;  %v3030_v12 = vsub.f32 0.0, %v2788_v63  ;;  %v2840_v13 = vadd.f32 %v2839_v61, %v6314_v57 }
 0x50c   : > { %v4608_v16 = vpop.eup %4607  ;;  %v3149_v18 = vmul.f32 1.442695, %v3029_v37  ;;  %v3035_v9 = vsub.f32 0.0, %v2693_v10  ;;  %2887 = vmatmul.bf16.gmra.mxu1 %v6159_v58  ;;  %2936 = vmatmul.bf16.gmra.mxu2 %v6159_v58 }
 0x50d   : > { %v4610_v7 = vpop.eup %4609  ;;  %v3358_v41 = vadd.f32 1.0, %v4608_v16  ;;  %v3038_v24 = vsub.f32 0.0, %v2840_v13  ;;  %2985 = vmatmul.bf16.gmra.mxu3 %v6159_v58  ;;  %v3151_v0 = vmul.f32 1.442695, %v3030_v12 }
 0x50e   : > { %v4612_v25 = vpop.eup %4611  ;;  %v3359_v26 = vadd.f32 1.0, %v4610_v7  ;;  %4619 = vpow2.f32 %v3149_v18  ;;  %v3161_v28 = vmul.f32 1.442695, %v3035_v9 }
 0x50f   : > { %v4614_v1 = vpop.eup %4613  ;;  %4621 = vrcp.f32 %v3358_v41  ;;  %v3364_v43 = vadd.f32 1.0, %v4612_v25  ;;  %v2741_v53 = vpop.f32.mrf.mxu2  ;;  %v3167_v58 = vmul.f32 1.442695, %v3038_v24 }
 0x510   : > { %v4616_v59 = vpop.eup %4615  ;;  %3581 = vst [vmem:[%s6340_s2] sm:$0xff] %v4614_v1  ;;  %4623 = vrcp.f32 %v3359_v26  ;;  %v2742_v29 = vadd.f32 %v2741_v53, %v6320_v14  ;;  %v2790_v35 = vpop.f32.mrf.mxu3 }
 0x511   : > { %v4618_v17 = vpop.eup %4617  ;;  %3584 = vst [vmem:[%s6340_s2 + $0x18] sm:$0xff] %v4616_v59  ;;  %4625 = vrcp.f32 %v3364_v43  ;;  %v2791_v2 = vadd.f32 %v2790_v35, %v6323_v38  ;;  %v2694_v22 = vpop.f32.mrf.mxu1 }
 0x512   : > { %v3367_v11 = vadd.f32 1.0, %v4618_v17  ;;  %4627 = vpow2.f32 %v3151_v0  ;;  %v3036_v30 = vsub.f32 0.0, %v2742_v29  ;;  %v2695_v15 = vadd.f32 %v2694_v22, %v6312_v32  ;;  %v2841_v3 = vpop.f32.mrf.mxu0 }
 0x513   : > { %4629 = vpow2.f32 %v3161_v28  ;;  %v3037_v39 = vsub.f32 0.0, %v2791_v2  ;;  %v2842_v45 = vadd.f32 %v2841_v3, %v6314_v57 }
 0x514   : > { %v4620_v23 = vpop.eup %4619  ;;  %4631 = vrcp.f32 %v3367_v11  ;;  %v3163_v4 = vmul.f32 1.442695, %v3036_v30  ;;  %v3042_v50 = vsub.f32 0.0, %v2695_v15 }
 0x515   : > { %v4622_v47 = vpop.eup %4621  ;;  %v3365_v44 = vadd.f32 1.0, %v4620_v23  ;;  %4633 = vpow2.f32 %v3167_v58  ;;  %v3165_v5 = vmul.f32 1.442695, %v3037_v39  ;;  %v3045_v8 = vsub.f32 0.0, %v2842_v45 }
 0x516   : > { %v4624_v46 = vpop.eup %4623  ;;  %3582 = vst [vmem:[%s6340_s2 + $0x8] sm:$0xff] %v4622_v47  ;;  %4635 = vpow2.f32 %v3163_v4  ;;  %v3175_v48 = vmul.f32 1.442695, %v3042_v50 }
 0x517   : > { %v4626_v19 = vpop.eup %4625  ;;  %3583 = vst [vmem:[%s6340_s2 + $0x10] sm:$0xff] %v4624_v46  ;;  %4637 = vrcp.f32 %v3365_v44  ;;  %v3181_v49 = vmul.f32 1.442695, %v3045_v8  ;;  %v2743_v51 = vpop.f32.mrf.mxu2 }
 0x518   : > { %v4628_v20 = vpop.eup %4627  ;;  %3588 = vst [vmem:[%s6340_s2 + $0x38] sm:$0xff] %v4626_v19  ;;  %4639 = vpow2.f32 %v3165_v5  ;;  %v2744_v52 = vadd.f32 %v2743_v51, %v6320_v14  ;;  %v2792_v54 = vpop.f32.mrf.mxu3 }
 0x519   : > { %v4630_v55 = vpop.eup %4629  ;;  %v3366_v62 = vadd.f32 1.0, %v4628_v20  ;;  %4641 = vpow2.f32 %v3175_v48  ;;  %v2793_v42 = vadd.f32 %v2792_v54, %v6323_v38  ;;  %v2697_v21 = vpop.f32.mrf.mxu1 }
 0x51a   : > { %v4632_v6 = vpop.eup %4631  ;;  %v3371_v36 = vadd.f32 1.0, %v4630_v55  ;;  %4643 = vpow2.f32 %v3181_v49  ;;  %v3043_v63 = vsub.f32 0.0, %v2744_v52  ;;  %v2698_v60 = vadd.f32 %v2697_v21, %v6312_v32  ;;  %v2844_v37 = vpop.f32.mrf.mxu0 }
 0x51b   : > { %v4634_v10 = vpop.eup %4633  ;;  %3591 = vst [vmem:[%s6340_s2 + $0x50] sm:$0xff] %v4632_v6  ;;  %4645 = vrcp.f32 %v3366_v62  ;;  %v2845_v61 = vadd.f32 %v2844_v37, %v6314_v57  ;;  %v3044_v18 = vsub.f32 0.0, %v2793_v42 }
 0x51c   : > { %v4636_v12 = vpop.eup %4635  ;;  %4647 = vrcp.f32 %v3371_v36  ;;  %v3374_v13 = vadd.f32 1.0, %v4634_v10  ;;  %v3177_v16 = vmul.f32 1.442695, %v3043_v63  ;;  %2892 = vmatmul.bf16.gmra.mxu1 %v6185_v40  ;;  %2941 = vmatmul.bf16.gmra.mxu2 %v6185_v40  ;;  %v3049_v41 = vsub.f32 0.0, %v2698_v60 }
 0x51d   : > { %v4638_v9 = vpop.eup %4637  ;;  %v3372_v7 = vadd.f32 1.0, %v4636_v12  ;;  %2990 = vmatmul.bf16.gmra.mxu3 %v6185_v40  ;;  %v3052_v25 = vsub.f32 0.0, %v2845_v61  ;;  %v3179_v53 = vmul.f32 1.442695, %v3044_v18 }
 0x51e   : > { %v4640_v24 = vpop.eup %4639  ;;  %3589 = vst [vmem:[%s6340_s2 + $0x40] sm:$0xff] %v4638_v9  ;;  %4649 = vrcp.f32 %v3374_v13  ;;  %v3189_v17 = vmul.f32 1.442695, %v3049_v41 }
 0x51f   : > { %v4642_v26 = vpop.eup %4641  ;;  %4651 = vrcp.f32 %v3372_v7  ;;  %v3373_v0 = vadd.f32 1.0, %v4640_v24  ;;  %v2746_v1 = vpop.f32.mrf.mxu2  ;;  %v3195_v11 = vmul.f32 1.442695, %v3052_v25 }
 0x520   : > { %v4644_v43 = vpop.eup %4643  ;;  %v3378_v28 = vadd.f32 1.0, %v4642_v26  ;;  %4653 = vpow2.f32 %v3177_v16  ;;  %v2747_v59 = vadd.f32 %v2746_v1, %v6320_v14  ;;  %v2795_v29 = vpop.f32.mrf.mxu3 }
 0x521   : > { %v4646_v35 = vpop.eup %4645  ;;  %4655 = vrcp.f32 %v3373_v0  ;;  %v3381_v40 = vadd.f32 1.0, %v4644_v43  ;;  %v2796_v58 = vadd.f32 %v2795_v29, %v6323_v38  ;;  %v2699_v2 = vpop.f32.mrf.mxu1 }
 0x522   : > { %v4648_v22 = vpop.eup %4647  ;;  %3590 = vst [vmem:[%s6340_s2 + $0x48] sm:$0xff] %v4646_v35  ;;  %4657 = vrcp.f32 %v3378_v28  ;;  %v3050_v30 = vsub.f32 0.0, %v2747_v59  ;;  %v2700_v15 = vadd.f32 %v2699_v2, %v6312_v32  ;;  %v2846_v3 = vpop.f32.mrf.mxu0 }
 0x523   : > { %3595 = vst [vmem:[%s6340_s2 + $0x70] sm:$0xff] %v4648_v22  ;;  %4659 = vrcp.f32 %v3381_v40  ;;  %v3051_v39 = vsub.f32 0.0, %v2796_v58  ;;  %v2847_v45 = vadd.f32 %v2846_v3, %v6314_v57 }
 0x524   : > { %v4650_v23 = vpop.eup %4649  ;;  %4661 = vpow2.f32 %v3179_v53  ;;  %v3191_v4 = vmul.f32 1.442695, %v3050_v30  ;;  %v3056_v50 = vsub.f32 0.0, %v2700_v15 }
 0x525   : > { %v4652_v47 = vpop.eup %4651  ;;  %3598 = vst [vmem:[%s6340_s2 + $0x88] sm:$0xff] %v4650_v23  ;;  %4663 = vpow2.f32 %v3189_v17  ;;  %v3193_v44 = vmul.f32 1.442695, %v3051_v39  ;;  %v3059_v5 = vsub.f32 0.0, %v2847_v45 }
 0x526   : > { %v4654_v8 = vpop.eup %4653  ;;  %3596 = vst [vmem:[%s6340_s2 + $0x78] sm:$0xff] %v4652_v47  ;;  %4665 = vpow2.f32 %v3195_v11  ;;  %v3203_v46 = vmul.f32 1.442695, %v3056_v50 }
 0x527   : > { %v4656_v48 = vpop.eup %4655  ;;  %v3379_v19 = vadd.f32 1.0, %v4654_v8  ;;  %4667 = vpow2.f32 %v3191_v4  ;;  %v3209_v49 = vmul.f32 1.442695, %v3059_v5  ;;  %v2748_v51 = vpop.f32.mrf.mxu2 }
 0x528   : > { %v4658_v20 = vpop.eup %4657  ;;  %3597 = vst [vmem:[%s6340_s2 + $0x80] sm:$0xff] %v4656_v48  ;;  %4669 = vpow2.f32 %v3193_v44  ;;  %v2749_v52 = vadd.f32 %v2748_v51, %v6320_v14  ;;  %v2797_v54 = vpop.f32.mrf.mxu3 }
 0x529   : > { %v4660_v55 = vpop.eup %4659  ;;  %3602 = vst [vmem:[%s6340_s2 + $0xa8] sm:$0xff] %v4658_v20  ;;  %4671 = vrcp.f32 %v3379_v19  ;;  %v2798_v62 = vadd.f32 %v2797_v54, %v6323_v38  ;;  %v2702_v42 = vpop.f32.mrf.mxu1 }
 0x52a   : > { %v4662_v21 = vpop.eup %4661  ;;  %3605 = vst [vmem:[%s6340_s2 + $0xc0] sm:$0xff] %v4660_v55  ;;  %4673 = vpow2.f32 %v3203_v46  ;;  %v3057_v6 = vsub.f32 0.0, %v2749_v52  ;;  %v2703_v36 = vadd.f32 %v2702_v42, %v6312_v32  ;;  %v2849_v63 = vpop.f32.mrf.mxu0 }
 0x52b   : > { %v4664_v60 = vpop.eup %4663  ;;  %v3380_v37 = vadd.f32 1.0, %v4662_v21  ;;  %4675 = vpow2.f32 %v3209_v49  ;;  %v2850_v10 = vadd.f32 %v2849_v63, %v6314_v57  ;;  %v3058_v13 = vsub.f32 0.0, %v2798_v62 }
 0x52c   : > { %v4666_v61 = vpop.eup %4665  ;;  %v3385_v12 = vadd.f32 1.0, %v4664_v60  ;;  %2897 = vmatmul.bf16.gmra.mxu1 %v6211_v34  ;;  %2946 = vmatmul.bf16.gmra.mxu2 %v6211_v34  ;;  %v3063_v9 = vsub.f32 0.0, %v2703_v36  ;;  %v3205_v24 = vmul.f32 1.442695, %v3057_v6 }
 0x52d   : > { %v4668_v16 = vpop.eup %4667  ;;  %4677 = vrcp.f32 %v3380_v37  ;;  %v3388_v18 = vadd.f32 1.0, %v4666_v61  ;;  %2995 = vmatmul.bf16.gmra.mxu3 %v6211_v34  ;;  %v3066_v0 = vsub.f32 0.0, %v2850_v10  ;;  %v3207_v28 = vmul.f32 1.442695, %v3058_v13 }
 0x52e   : > { %v4670_v7 = vpop.eup %4669  ;;  %4679 = vrcp.f32 %v3385_v12  ;;  %v3386_v41 = vadd.f32 1.0, %v4668_v16  ;;  %v3217_v35 = vmul.f32 1.442695, %v3063_v9 }
 0x52f   : > { %v4672_v25 = vpop.eup %4671  ;;  %4681 = vrcp.f32 %v3388_v18  ;;  %v3387_v26 = vadd.f32 1.0, %v4670_v7  ;;  %v2751_v1 = vpop.f32.mrf.mxu2  ;;  %v3223_v15 = vmul.f32 1.442695, %v3066_v0 }
 0x530   : > { %v4674_v43 = vpop.eup %4673  ;;  %3603 = vst [vmem:[%s6340_s2 + $0xb0] sm:$0xff] %v4672_v25  ;;  %4683 = vrcp.f32 %v3386_v41  ;;  %v2752_v53 = vadd.f32 %v2751_v1, %v6320_v14  ;;  %v2800_v59 = vpop.f32.mrf.mxu3 }
 0x531   : > { %v4676_v29 = vpop.eup %4675  ;;  %4685 = vrcp.f32 %v3387_v26  ;;  %v3392_v34 = vadd.f32 1.0, %v4674_v43  ;;  %v2801_v40 = vadd.f32 %v2800_v59, %v6323_v38  ;;  %v2704_v17 = vpop.f32.mrf.mxu1 }
 0x532   : > { %v3395_v58 = vadd.f32 1.0, %v4676_v29  ;;  %4687 = vpow2.f32 %v3205_v24  ;;  %v3064_v2 = vsub.f32 0.0, %v2752_v53  ;;  %v2705_v22 = vadd.f32 %v2704_v17, %v6312_v32  ;;  %v2851_v11 = vpop.f32.mrf.mxu0 }
 0x533   : > { %v4678_v30 = vpop.eup %4677  ;;  %4689 = vrcp.f32 %v3392_v34  ;;  %v3065_v3 = vsub.f32 0.0, %v2801_v40  ;;  %v2852_v39 = vadd.f32 %v2851_v11, %v6314_v57 }
 0x534   : > { %v4680_v45 = vpop.eup %4679  ;;  %3604 = vst [vmem:[%s6340_s2 + $0xb8] sm:$0xff] %v4678_v30  ;;  %4691 = vrcp.f32 %v3395_v58  ;;  %v3219_v23 = vmul.f32 1.442695, %v3064_v2  ;;  %v3070_v4 = vsub.f32 0.0, %v2705_v22 }
 0x535   : > { %v4682_v50 = vpop.eup %4681  ;;  %3609 = vst [vmem:[%s6340_s2 + $0xe0] sm:$0xff] %v4680_v45  ;;  %4693 = vpow2.f32 %v3207_v28  ;;  %v3221_v47 = vmul.f32 1.442695, %v3065_v3  ;;  %v3073_v44 = vsub.f32 0.0, %v2852_v39 }
 0x536   : > { %v4684_v5 = vpop.eup %4683  ;;  %3612 = vst [vmem:[%s6340_s2 + $0xf8] sm:$0xff] %v4682_v50  ;;  %4695 = vpow2.f32 %v3217_v35  ;;  %v3231_v8 = vmul.f32 1.442695, %v3070_v4 }
 0x537   : > { %v4686_v46 = vpop.eup %4685  ;;  %3610 = vst [vmem:[%s6340_s2 + $0xe8] sm:$0xff] %v4684_v5  ;;  %4697 = vpow2.f32 %v3223_v15  ;;  %v2753_v48 = vpop.f32.mrf.mxu2  ;;  %v3237_v49 = vmul.f32 1.442695, %v3073_v44 }
 0x538   : > { %v4688_v19 = vpop.eup %4687  ;;  %3611 = vst [vmem:[%s6340_s2 + $0xf0] sm:$0xff] %v4686_v46  ;;  %4699 = vpow2.f32 %v3219_v23  ;;  %v2754_v51 = vadd.f32 %v2753_v48, %v6320_v14  ;;  %v2802_v20 = vpop.f32.mrf.mxu3 }
 0x539   : > { %v4690_v52 = vpop.eup %4689  ;;  %v3393_v54 = vadd.f32 1.0, %v4688_v19  ;;  %4701 = vpow2.f32 %v3221_v47  ;;  %v2803_v55 = vadd.f32 %v2802_v20, %v6323_v38  ;;  %v2707_v62 = vpop.f32.mrf.mxu1 }
 0x53a   : > { %v4692_v42 = vpop.eup %4691  ;;  %3616 = vst [vmem:[%s6340_s2 + $0x118] sm:$0xff] %v4690_v52  ;;  %4703 = vpow2.f32 %v3231_v8  ;;  %v2708_v21 = vadd.f32 %v2707_v62, %v6312_v32  ;;  %v2854_v6 = vpop.f32.mrf.mxu0  ;;  %v3071_v63 = vsub.f32 0.0, %v2754_v51 }
 0x53b   : > { %v4694_v36 = vpop.eup %4693  ;;  %3619 = vst [vmem:[%s6340_s2 + $0x130] sm:$0xff] %v4692_v42  ;;  %4705 = vrcp.f32 %v3393_v54  ;;  %v2855_v10 = vadd.f32 %v2854_v6, %v6314_v57  ;;  %v3072_v13 = vsub.f32 0.0, %v2803_v55 }
 0x53c   : > { %v4696_v60 = vpop.eup %4695  ;;  %v3394_v37 = vadd.f32 1.0, %v4694_v36  ;;  %4707 = vpow2.f32 %v3237_v49  ;;  %2902 = vmatmul.bf16.gmra.mxu1 %v6237_v33  ;;  %2951 = vmatmul.bf16.gmra.mxu2 %v6237_v33  ;;  %v3077_v9 = vsub.f32 0.0, %v2708_v21  ;;  %v3233_v24 = vmul.f32 1.442695, %v3071_v63 }
 0x53d   : > { %v4698_v61 = vpop.eup %4697  ;;  %v3399_v12 = vadd.f32 1.0, %v4696_v60  ;;  %3000 = vmatmul.bf16.gmra.mxu3 %v6237_v33  ;;  %v3080_v1 = vsub.f32 0.0, %v2855_v10  ;;  %v3235_v59 = vmul.f32 1.442695, %v3072_v13 }
 0x53e   : > { %v4700_v16 = vpop.eup %4699  ;;  %4709 = vrcp.f32 %v3394_v37  ;;  %v3402_v18 = vadd.f32 1.0, %v4698_v61  ;;  %v3245_v40 = vmul.f32 1.442695, %v3077_v9 }
 0x53f   : > { %v4702_v7 = vpop.eup %4701  ;;  %4711 = vrcp.f32 %v3399_v12  ;;  %v3400_v41 = vadd.f32 1.0, %v4700_v16  ;;  %v2756_v25 = vpop.f32.mrf.mxu2  ;;  %v3251_v3 = vmul.f32 1.442695, %v3080_v1 }
 0x540   : > { %v4704_v26 = vpop.eup %4703  ;;  %4713 = vrcp.f32 %v3402_v18  ;;  %v3401_v0 = vadd.f32 1.0, %v4702_v7  ;;  %v2757_v43 = vadd.f32 %v2756_v25, %v6320_v14  ;;  %v2805_v28 = vpop.f32.mrf.mxu3 }
 0x541   : > { %v4706_v53 = vpop.eup %4705  ;;  %4715 = vrcp.f32 %v3400_v41  ;;  %v3406_v33 = vadd.f32 1.0, %v4704_v26  ;;  %v2806_v29 = vadd.f32 %v2805_v28, %v6323_v38  ;;  %v2709_v34 = vpop.f32.mrf.mxu1 }
 0x542   : > { %v4708_v35 = vpop.eup %4707  ;;  %3617 = vst [vmem:[%s6340_s2 + $0x120] sm:$0xff] %v4706_v53  ;;  %4717 = vrcp.f32 %v3401_v0  ;;  %v3078_v17 = vsub.f32 0.0, %v2757_v43  ;;  %v2710_v58 = vadd.f32 %v2709_v34, %v6312_v32  ;;  %v2856_v2 = vpop.f32.mrf.mxu0 }
 0x543   : > { %4719 = vrcp.f32 %v3406_v33  ;;  %v3409_v22 = vadd.f32 1.0, %v4708_v35  ;;  %v3079_v11 = vsub.f32 0.0, %v2806_v29  ;;  %v2857_v30 = vadd.f32 %v2856_v2, %v6314_v57 }
 0x544   : > { %v4710_v15 = vpop.eup %4709  ;;  %4721 = vpow2.f32 %v3233_v24  ;;  %v3084_v39 = vsub.f32 0.0, %v2710_v58  ;;  %v3247_v23 = vmul.f32 1.442695, %v3078_v17 }
 0x545   : > { %v4712_v45 = vpop.eup %4711  ;;  %3618 = vst [vmem:[%s6340_s2 + $0x128] sm:$0xff] %v4710_v15  ;;  %4723 = vrcp.f32 %v3409_v22  ;;  %v3087_v4 = vsub.f32 0.0, %v2857_v30  ;;  %v3249_v47 = vmul.f32 1.442695, %v3079_v11 }
 0x546   : > { %v4714_v50 = vpop.eup %4713  ;;  %3623 = vst [vmem:[%s6340_s2 + $0x150] sm:$0xff] %v4712_v45  ;;  %4725 = vpow2.f32 %v3235_v59  ;;  %v3259_v5 = vmul.f32 1.442695, %v3084_v39 }
 0x547   : > { %v4716_v44 = vpop.eup %4715  ;;  %3626 = vst [vmem:[%s6340_s2 + $0x168] sm:$0xff] %v4714_v50  ;;  %4727 = vpow2.f32 %v3245_v40  ;;  %v2758_v8 = vpop.f32.mrf.mxu2  ;;  %v3265_v48 = vmul.f32 1.442695, %v3087_v4 }
 0x548   : > { %v4718_v46 = vpop.eup %4717  ;;  %3624 = vst [vmem:[%s6340_s2 + $0x158] sm:$0xff] %v4716_v44  ;;  %4729 = vpow2.f32 %v3251_v3  ;;  %v2759_v19 = vadd.f32 %v2758_v8, %v6320_v14  ;;  %v2807_v49 = vpop.f32.mrf.mxu3 }
 0x549   : > { %v4720_v51 = vpop.eup %4719  ;;  %3625 = vst [vmem:[%s6340_s2 + $0x160] sm:$0xff] %v4718_v46  ;;  %4731 = vpow2.f32 %v3247_v23  ;;  %v2808_v20 = vadd.f32 %v2807_v49, %v6323_v38  ;;  %v2712_v52 = vpop.f32.mrf.mxu1 }
 0x54a   : > { %v4722_v54 = vpop.eup %4721  ;;  %3630 = vst [vmem:[%s6340_s2 + $0x188] sm:$0xff] %v4720_v51  ;;  %4733 = vpow2.f32 %v3249_v47  ;;  %v3085_v55 = vsub.f32 0.0, %v2759_v19  ;;  %v2859_v62 = vpop.f32.mrf.mxu0  ;;  %v2713_v6 = vadd.f32 %v2712_v52, %v6312_v32 }
 0x54b   : > { %v4724_v42 = vpop.eup %4723  ;;  %v3407_v21 = vadd.f32 1.0, %v4722_v54  ;;  %4735 = vpow2.f32 %v3259_v5  ;;  %v3086_v60 = vsub.f32 0.0, %v2808_v20  ;;  %v2860_v61 = vadd.f32 %v2859_v62, %v6314_v57 }
 0x54c   : > { %v4726_v36 = vpop.eup %4725  ;;  %3633 = vst [vmem:[%s6340_s2 + $0x1a0] sm:$0xff] %v4724_v42  ;;  %4737 = vpow2.f32 %v3265_v48  ;;  %v3261_v63 = vmul.f32 1.442695, %v3085_v55  ;;  %2907 = vmatmul.bf16.gmra.mxu1 %v6263_v31  ;;  %2956 = vmatmul.bf16.gmra.mxu2 %v6263_v31  ;;  %v3091_v9 = vsub.f32 0.0, %v2713_v6 }
 0x54d   : > { %v4728_v37 = vpop.eup %4727  ;;  %4739 = vrcp.f32 %v3407_v21  ;;  %v3408_v10 = vadd.f32 1.0, %v4726_v36  ;;  %3005 = vmatmul.bf16.gmra.mxu3 %v6263_v31  ;;  %v3263_v25 = vmul.f32 1.442695, %v3086_v60  ;;  %v3094_v31 = vsub.f32 0.0, %v2860_v61 }
 0x54e   : > { %v4730_v12 = vpop.eup %4729  ;;  %v3413_v13 = vadd.f32 1.0, %v4728_v37  ;;  %4741 = vpow2.f32 %v3261_v63  ;;  %v3273_v11 = vmul.f32 1.442695, %v3091_v9 }
 0x54f   : > { %v4732_v16 = vpop.eup %4731  ;;  %4743 = vrcp.f32 %v3408_v10  ;;  %v3416_v18 = vadd.f32 1.0, %v4730_v12  ;;  %v2761_v7 = vpop.f32.mrf.mxu2  ;;  %v3279_v39 = vmul.f32 1.442695, %v3094_v31 }
 0x550   : > { %v4734_v41 = vpop.eup %4733  ;;  %4745 = vrcp.f32 %v3413_v13  ;;  %v3414_v24 = vadd.f32 1.0, %v4732_v16  ;;  %v2762_v26 = vadd.f32 %v2761_v7, %v6320_v14  ;;  %v2810_v0 = vpop.f32.mrf.mxu3 }
 0x551   : > { %v4736_v1 = vpop.eup %4735  ;;  %4747 = vrcp.f32 %v3416_v18  ;;  %v3415_v43 = vadd.f32 1.0, %v4734_v41  ;;  %v2811_v28 = vadd.f32 %v2810_v0, %v6323_v38  ;;  %v2714_v53 = vpop.f32.mrf.mxu1 }
 0x552   : > { %v4738_v33 = vpop.eup %4737  ;;  %4749 = vrcp.f32 %v3414_v24  ;;  %v3420_v59 = vadd.f32 1.0, %v4736_v1  ;;  %v3092_v29 = vsub.f32 0.0, %v2762_v26  ;;  %v2715_v34 = vadd.f32 %v2714_v53, %v6312_v32  ;;  %v2861_v35 = vpop.f32.mrf.mxu0 }
 0x553   : > { %v4740_v40 = vpop.eup %4739  ;;  %4751 = vrcp.f32 %v3415_v43  ;;  %v3423_v17 = vadd.f32 1.0, %v4738_v33  ;;  %v3093_v58 = vsub.f32 0.0, %v2811_v28  ;;  %v2862_v2 = vadd.f32 %v2861_v35, %v6314_v57 }
 0x554   : > { %v4742_v22 = vpop.eup %4741  ;;  %3631 = vst [vmem:[%s6340_s2 + $0x190] sm:$0xff] %v4740_v40  ;;  %4753 = vrcp.f32 %v3420_v59  ;;  %v3098_v30 = vsub.f32 0.0, %v2715_v34  ;;  %v3275_v4 = vmul.f32 1.442695, %v3092_v29 }
 0x555   : > { %v4744_v15 = vpop.eup %4743  ;;  %4755 = vrcp.f32 %v3423_v17  ;;  %v3421_v3 = vadd.f32 1.0, %v4742_v22  ;;  %v3101_v45 = vsub.f32 0.0, %v2862_v2  ;;  %v3277_v47 = vmul.f32 1.442695, %v3093_v58 }
 0x556   : > { %v4746_v23 = vpop.eup %4745  ;;  %3632 = vst [vmem:[%s6340_s2 + $0x198] sm:$0xff] %v4744_v15  ;;  %4757 = vpow2.f32 %v3263_v25  ;;  %v3287_v8 = vmul.f32 1.442695, %v3098_v30 }
 0x557   : > { %v4748_v50 = vpop.eup %4747  ;;  %3637 = vst [vmem:[%s6340_s2 + $0x1c0] sm:$0xff] %v4746_v23  ;;  %4759 = vrcp.f32 %v3421_v3  ;;  %v2763_v44 = vpop.f32.mrf.mxu2  ;;  %v3293_v49 = vmul.f32 1.442695, %v3101_v45 }
 0x558   : > { %v4750_v5 = vpop.eup %4749  ;;  %3640 = vst [vmem:[%s6340_s2 + $0x1d8] sm:$0xff] %v4748_v50  ;;  %4761 = vpow2.f32 %v3273_v11  ;;  %v2764_v46 = vadd.f32 %v2763_v44, %v6320_v14  ;;  %v2812_v48 = vpop.f32.mrf.mxu3 }
 0x559   : > { %v4752_v19 = vpop.eup %4751  ;;  %3638 = vst [vmem:[%s6340_s2 + $0x1c8] sm:$0xff] %v4750_v5  ;;  %4763 = vpow2.f32 %v3279_v39  ;;  %v2813_v51 = vadd.f32 %v2812_v48, %v6323_v38  ;;  %v2717_v20 = vpop.f32.mrf.mxu1 }
 0x55a   : > { %v4754_v52 = vpop.eup %4753  ;;  %3639 = vst [vmem:[%s6340_s2 + $0x1d0] sm:$0xff] %v4752_v19  ;;  %4765 = vpow2.f32 %v3275_v4  ;;  %v3099_v54 = vsub.f32 0.0, %v2764_v46  ;;  %v2864_v55 = vpop.f32.mrf.mxu0  ;;  %v2718_v36 = vadd.f32 %v2717_v20, %v6312_v32 }
 0x55b   : > { %v4756_v62 = vpop.eup %4755  ;;  %3644 = vst [vmem:[%s6340_s2 + $0x1f8] sm:$0xff] %v4754_v52  ;;  %4767 = vpow2.f32 %v3277_v47  ;;  %v3100_v42 = vsub.f32 0.0, %v2813_v51  ;;  %v2865_v61 = vadd.f32 %v2864_v55, %v6314_v57 }
 0x55c   : > { %v4758_v21 = vpop.eup %4757  ;;  %3647 = vst [vmem:[%s6340_s2 + $0x210] sm:$0xff] %v4756_v62  ;;  %4769 = vpow2.f32 %v3287_v8  ;;  %v3289_v6 = vmul.f32 1.442695, %v3099_v54  ;;  %2912 = vmatmul.bf16.gmra.mxu1 %v6295_v27  ;;  %2961 = vmatmul.bf16.gmra.mxu2 %v6295_v27  ;;  %v3105_v7 = vsub.f32 0.0, %v2718_v36 }
 0x55d   : > { %v4760_v63 = vpop.eup %4759  ;;  %v3422_v60 = vadd.f32 1.0, %v4758_v21  ;;  %4771 = vpow2.f32 %v3293_v49  ;;  %v3291_v37 = vmul.f32 1.442695, %v3100_v42  ;;  %3010 = vmatmul.bf16.gmra.mxu3 %v6295_v27  ;;  %v3108_v31 = vsub.f32 0.0, %v2865_v61 }
 0x55e   : > { %v4762_v10 = vpop.eup %4761  ;;  %3645 = vst [vmem:[%s6340_s2 + $0x200] sm:$0xff] %v4760_v63  ;;  %4773 = vpow2.f32 %v3289_v6  ;;  %v3301_v17 = vmul.f32 1.442695, %v3105_v7 }
 0x55f   : > { %v4764_v12 = vpop.eup %4763  ;;  %4775 = vrcp.f32 %v3422_v60  ;;  %v3427_v13 = vadd.f32 1.0, %v4762_v10  ;;  %v2766_v16 = vpop.f32.mrf.mxu2  ;;  %v3307_v15 = vmul.f32 1.442695, %v3108_v31 }
 0x560   : > { %v4766_v18 = vpop.eup %4765  ;;  %v3430_v9 = vadd.f32 1.0, %v4764_v12  ;;  %4777 = vpow2.f32 %v3291_v37  ;;  %v2767_v41 = vadd.f32 %v2766_v16, %v6320_v14  ;;  %v2815_v24 = vpop.f32.mrf.mxu3 }
 0x561   : > { %v4768_v25 = vpop.eup %4767  ;;  %4779 = vrcp.f32 %v3427_v13  ;;  %v3428_v26 = vadd.f32 1.0, %v4766_v18  ;;  %v2816_v27 = vadd.f32 %v2815_v24, %v6323_v38  ;;  %v2719_v0 = vpop.f32.mrf.mxu1 }
 0x562   : > { %v4770_v1 = vpop.eup %4769  ;;  %4781 = vrcp.f32 %v3430_v9  ;;  %v3429_v43 = vadd.f32 1.0, %v4768_v25  ;;  %v2720_v28 = vadd.f32 %v2719_v0, %v6312_v32  ;;  %v2866_v53 = vpop.f32.mrf.mxu0  ;;  %v3106_v29 = vsub.f32 0.0, %v2767_v41 }
 0x563   : > { %v4772_v33 = vpop.eup %4771  ;;  %4783 = vrcp.f32 %v3428_v26  ;;  %v3434_v59 = vadd.f32 1.0, %v4770_v1  ;;  %v2867_v34 = vadd.f32 %v2866_v53, %v6314_v57  ;;  %v3107_v58 = vsub.f32 0.0, %v2816_v27 }
 0x564   : > { %v4774_v35 = vpop.eup %4773  ;;  %4785 = vrcp.f32 %v3429_v43  ;;  %v3437_v40 = vadd.f32 1.0, %v4772_v33  ;;  %v3112_v11 = vsub.f32 0.0, %v2720_v28  ;;  %v3303_v23 = vmul.f32 1.442695, %v3106_v29 }
 0x565   : > { %v4776_v2 = vpop.eup %4775  ;;  %4787 = vrcp.f32 %v3434_v59  ;;  %v3435_v22 = vadd.f32 1.0, %v4774_v35  ;;  %v3115_v3 = vsub.f32 0.0, %v2867_v34  ;;  %v3305_v47 = vmul.f32 1.442695, %v3107_v58 }
 0x566   : > { %v4778_v30 = vpop.eup %4777  ;;  %3646 = vst [vmem:[%s6340_s2 + $0x208] sm:$0xff] %v4776_v2  ;;  %4789 = vrcp.f32 %v3437_v40  ;;  %v3315_v46 = vmul.f32 1.442695, %v3112_v11  ;;  %v5051_v40 = vld [vmem:[%s6603_s16] sm:$0xff] }
 0x567   : > { %v4780_v39 = vpop.eup %4779  ;;  %4791 = vrcp.f32 %v3435_v22  ;;  %v3436_v45 = vadd.f32 1.0, %v4778_v30  ;;  %v2768_v4 = vpop.f32.mrf.mxu2  ;;  %v3321_v51 = vmul.f32 1.442695, %v3115_v3 }
 0x568   : > { %v4782_v50 = vpop.eup %4781  ;;  %3651 = vst [vmem:[%s6340_s2 + $0x230] sm:$0xff] %v4780_v39  ;;  %4793 = vpow2.f32 %v3301_v17  ;;  %v2769_v44 = vadd.f32 %v2768_v4, %v6320_v14  ;;  %v2817_v5 = vpop.f32.mrf.mxu3 }
 0x569   : > { %v4784_v8 = vpop.eup %4783  ;;  %3654 = vst [vmem:[%s6340_s2 + $0x248] sm:$0xff] %v4782_v50  ;;  %4795 = vrcp.f32 %v3436_v45  ;;  %v2818_v48 = vadd.f32 %v2817_v5, %v6323_v38  ;;  %v2722_v19 = vpop.f32.mrf.mxu1 }
 0x56a   : > { %v4786_v49 = vpop.eup %4785  ;;  %3652 = vst [vmem:[%s6340_s2 + $0x238] sm:$0xff] %v4784_v8  ;;  %4797 = vpow2.f32 %v3307_v15  ;;  %v3113_v20 = vsub.f32 0.0, %v2769_v44  ;;  %v2723_v52 = vadd.f32 %v2722_v19, %v6312_v32  ;;  %v2869_v54 = vpop.f32.mrf.mxu0 }
 0x56b   : > { %v4788_v55 = vpop.eup %4787  ;;  %3653 = vst [vmem:[%s6340_s2 + $0x240] sm:$0xff] %v4786_v49  ;;  %4799 = vpow2.f32 %v3303_v23  ;;  %v3114_v62 = vsub.f32 0.0, %v2818_v48  ;;  %v2870_v10 = vadd.f32 %v2869_v54, %v6314_v57  ;;  %v6473_v54 = vperm.slane %v5051_v40, 5 }
 0x56c   : > { %v4790_v42 = vpop.eup %4789  ;;  %3658 = vst [vmem:[%s6340_s2 + $0x268] sm:$0xff] %v4788_v55  ;;  %4801 = vpow2.f32 %v3305_v47  ;;  %v3317_v21 = vmul.f32 1.442695, %v3113_v20  ;;  %v3119_v6 = vsub.f32 0.0, %v2723_v52  ;;  %2917 = vmatmul.bf16.gmra.mxu1 %v6303_v56  ;;  %2966 = vmatmul.bf16.gmra.mxu2 %v6303_v56 }
 0x56d   : > { %v4792_v36 = vpop.eup %4791  ;;  %3661 = vst [vmem:[%s6340_s2 + $0x280] sm:$0xff] %v4790_v42  ;;  %4803 = vpow2.f32 %v3315_v46  ;;  %v3319_v63 = vmul.f32 1.442695, %v3114_v62  ;;  %3015 = vmatmul.bf16.gmra.mxu3 %v6303_v56  ;;  %v3122_v27 = vsub.f32 0.0, %v2870_v10  ;;  %v6476_v42 = vperm.slane %v5051_v40, 6 }
 0x56e   : > { %v4794_v60 = vpop.eup %4793  ;;  %3659 = vst [vmem:[%s6340_s2 + $0x270] sm:$0xff] %v4792_v36  ;;  %4805 = vpow2.f32 %v3321_v51  ;;  %v3329_v37 = vmul.f32 1.442695, %v3119_v6 }
 0x56f   : > { %v4796_v61 = vpop.eup %4795  ;;  %v3441_v12 = vadd.f32 1.0, %v4794_v60  ;;  %4807 = vpow2.f32 %v3317_v21  ;;  %v2771_v13 = vpop.f32.mrf.mxu2  ;;  %v3335_v2 = vmul.f32 1.442695, %v3122_v27 }
 0x570   : > { %v4798_v16 = vpop.eup %4797  ;;  %3660 = vst [vmem:[%s6340_s2 + $0x278] sm:$0xff] %v4796_v61  ;;  %4809 = vpow2.f32 %v3319_v63  ;;  %v2772_v18 = vadd.f32 %v2771_v13, %v6320_v14  ;;  %v2820_v9 = vpop.f32.mrf.mxu3 }
 0x571   : > { %v4800_v7 = vpop.eup %4799  ;;  %4811 = vrcp.f32 %v3441_v12  ;;  %v3444_v41 = vadd.f32 1.0, %v4798_v16  ;;  %v2821_v56 = vadd.f32 %v2820_v9, %v6323_v38  ;;  %v2724_v24 = vpop.f32.mrf.mxu1 }
 0x572   : > { %v4802_v25 = vpop.eup %4801  ;;  %v3442_v26 = vadd.f32 1.0, %v4800_v7  ;;  %4813 = vpow2.f32 %v3329_v37  ;;  %v2725_v0 = vadd.f32 %v2724_v24, %v6312_v32  ;;  %v2871_v1 = vpop.f32.mrf.mxu0  ;;  %v3120_v59 = vsub.f32 0.0, %v2772_v18 }
 0x573   : > { %v4804_v43 = vpop.eup %4803  ;;  %4815 = vrcp.f32 %v3444_v41  ;;  %v3443_v31 = vadd.f32 1.0, %v4802_v25  ;;  %v2872_v28 = vadd.f32 %v2871_v1, %v6314_v57  ;;  %v3121_v35 = vsub.f32 0.0, %v2821_v56 }
 0x574   : > { %v4806_v53 = vpop.eup %4805  ;;  %4817 = vrcp.f32 %v3442_v26  ;;  %v3448_v33 = vadd.f32 1.0, %v4804_v43  ;;  %v6464_v32 = vperm.slane %v5051_v40, 4  ;;  %v3126_v57 = vsub.f32 0.0, %v2725_v0 }
 0x575   : > { %v4808_v29 = vpop.eup %4807  ;;  %4819 = vrcp.f32 %v3443_v31  ;;  %v3451_v34 = vadd.f32 1.0, %v4806_v53  ;;  %v3129_v30 = vsub.f32 0.0, %v2872_v28  ;;  %v3331_v39 = vmul.f32 1.442695, %v3120_v59 }
 0x576   : > { %v4810_v17 = vpop.eup %4809  ;;  %4821 = vrcp.f32 %v3448_v33  ;;  %v3449_v58 = vadd.f32 1.0, %v4808_v29  ;;  %v3333_v47 = vmul.f32 1.442695, %v3121_v35  ;;  %v3343_v46 = vmul.f32 1.442695, %v3126_v57 }
 0x577   : > { %v4812_v22 = vpop.eup %4811  ;;  %4823 = vrcp.f32 %v3451_v34  ;;  %v3450_v11 = vadd.f32 1.0, %v4810_v17  ;;  %v2773_v15 = vpop.f32.mrf.mxu2 }
 0x578   : > { %v4814_v3 = vpop.eup %4813  ;;  %3665 = vst [vmem:[%s6340_s2 + $0x2a0] sm:$0xff] %v4812_v22  ;;  %4825 = vrcp.f32 %v3449_v58  ;;  %v2774_v45 = vadd.f32 %v2773_v15, %v6320_v14  ;;  %v2822_v23 = vpop.f32.mrf.mxu3  ;;  %v3349_v14 = vmul.f32 1.442695, %v3129_v30 }
 0x579   : > { %v4816_v4 = vpop.eup %4815  ;;  %4827 = vrcp.f32 %v3450_v11  ;;  %v3455_v50 = vadd.f32 1.0, %v4814_v3  ;;  %v2823_v44 = vadd.f32 %v2822_v23, %v6323_v38  ;;  %v2883_v5 = vpop.f32.mrf.mxu1 }
 0x57a   : > { %v4818_v8 = vpop.eup %4817  ;;  %3668 = vst [vmem:[%s6340_s2 + $0x2b8] sm:$0xff] %v4816_v4  ;;  %4829 = vpow2.f32 %v3335_v2  ;;  %v3127_v48 = vsub.f32 0.0, %v2774_v45  ;;  %v2884_v19 = vadd.f32 %v2883_v5, %v6464_v32 }
 0x57b   : > { %v4820_v49 = vpop.eup %4819  ;;  %3666 = vst [vmem:[%s6340_s2 + $0x2a8] sm:$0xff] %v4818_v8  ;;  %4831 = vrcp.f32 %v3455_v50  ;;  %v3128_v51 = vsub.f32 0.0, %v2823_v44 }
 0x57c   : > { %v4822_v20 = vpop.eup %4821  ;;  %3667 = vst [vmem:[%s6340_s2 + $0x2b0] sm:$0xff] %v4820_v49  ;;  %4833 = vpow2.f32 %v3331_v39  ;;  %v3345_v38 = vmul.f32 1.442695, %v3127_v48  ;;  %v3025_v52 = vsub.f32 0.0, %v2884_v19 }
 0x57d   : > { %v4824_v55 = vpop.eup %4823  ;;  %3672 = vst [vmem:[%s6340_s2 + $0x2d8] sm:$0xff] %v4822_v20  ;;  %4835 = vpow2.f32 %v3333_v47  ;;  %v3347_v62 = vmul.f32 1.442695, %v3128_v51 }
 0x57e   : > { %v4826_v21 = vpop.eup %4825  ;;  %3675 = vst [vmem:[%s6340_s2 + $0x2f0] sm:$0xff] %v4824_v55  ;;  %4837 = vpow2.f32 %v3343_v46  ;;  %v3141_v6 = vmul.f32 1.442695, %v3025_v52 }
 0x57f   : > { %v4828_v36 = vpop.eup %4827  ;;  %3673 = vst [vmem:[%s6340_s2 + $0x2e0] sm:$0xff] %v4826_v21  ;;  %4839 = vpow2.f32 %v3349_v14  ;;  %v2932_v63 = vpop.f32.mrf.mxu2 }
 0x580   : > { %v4830_v60 = vpop.eup %4829  ;;  %3674 = vst [vmem:[%s6340_s2 + $0x2e8] sm:$0xff] %v4828_v36  ;;  %4841 = vpow2.f32 %v3345_v38  ;;  %v2933_v37 = vadd.f32 %v2932_v63, %v6473_v54  ;;  %v2981_v10 = vpop.f32.mrf.mxu3 }
 0x581   : > { %v4832_v61 = vpop.eup %4831  ;;  %v3458_v12 = vadd.f32 1.0, %v4830_v60  ;;  %4843 = vpow2.f32 %v3347_v62  ;;  %v2982_v13 = vadd.f32 %v2981_v10, %v6476_v42  ;;  %v2885_v16 = vpop.f32.mrf.mxu1 }
 0x582   : > { %v4834_v18 = vpop.eup %4833  ;;  %3679 = vst [vmem:[%s6340_s2 + $0x310] sm:$0xff] %v4832_v61  ;;  %4845 = vpow2.f32 %v3141_v6  ;;  %v2886_v9 = vadd.f32 %v2885_v16, %v6464_v32  ;;  %v3026_v25 = vsub.f32 0.0, %v2933_v37 }
 0x583   : > { %v4836_v7 = vpop.eup %4835  ;;  %4847 = vrcp.f32 %v3458_v12  ;;  %v3456_v41 = vadd.f32 1.0, %v4834_v18  ;;  %v3027_v0 = vsub.f32 0.0, %v2982_v13 }
 0x584   : > { %v4838_v56 = vpop.eup %4837  ;;  %v3457_v24 = vadd.f32 1.0, %v4836_v7  ;;  %v3032_v31 = vsub.f32 0.0, %v2886_v9  ;;  %v3143_v34 = vmul.f32 1.442695, %v3026_v25 }
 0x585   : > { %v4840_v26 = vpop.eup %4839  ;;  %4849 = vrcp.f32 %v3456_v41  ;;  %v3462_v27 = vadd.f32 1.0, %v4838_v56  ;;  %v3145_v2 = vmul.f32 1.442695, %v3027_v0 }
 0x586   : > { %v4842_v1 = vpop.eup %4841  ;;  %4851 = vrcp.f32 %v3457_v24  ;;  %v3465_v43 = vadd.f32 1.0, %v4840_v26  ;;  %v3155_v11 = vmul.f32 1.442695, %v3032_v31 }
 0x587   : > { %v4844_v28 = vpop.eup %4843  ;;  %4853 = vrcp.f32 %v3462_v27  ;;  %v3463_v53 = vadd.f32 1.0, %v4842_v1  ;;  %v2934_v33 = vpop.f32.mrf.mxu2 }
 0x588   : > { %v4846_v59 = vpop.eup %4845  ;;  %4855 = vrcp.f32 %v3465_v43  ;;  %v3464_v29 = vadd.f32 1.0, %v4844_v28  ;;  %v2935_v35 = vadd.f32 %v2934_v33, %v6473_v54  ;;  %v2983_v40 = vpop.f32.mrf.mxu3 }
 0x589   : > { %v4848_v17 = vpop.eup %4847  ;;  %4857 = vrcp.f32 %v3463_v53  ;;  %v3361_v58 = vadd.f32 1.0, %v4846_v59  ;;  %v2984_v57 = vadd.f32 %v2983_v40, %v6476_v42  ;;  %v2888_v22 = vpop.f32.mrf.mxu1 }
 0x58a   : > { %3682 = vst [vmem:[%s6340_s2 + $0x328] sm:$0xff] %v4848_v17  ;;  %4859 = vrcp.f32 %v3464_v29  ;;  %v3033_v30 = vsub.f32 0.0, %v2935_v35  ;;  %v2889_v15 = vadd.f32 %v2888_v22, %v6464_v32 }
 0x58b   : > { %v4850_v3 = vpop.eup %4849  ;;  %4861 = vrcp.f32 %v3361_v58  ;;  %v3034_v39 = vsub.f32 0.0, %v2984_v57 }
 0x58c   : > { %v4852_v45 = vpop.eup %4851  ;;  %3680 = vst [vmem:[%s6340_s2 + $0x318] sm:$0xff] %v4850_v3  ;;  %4863 = vpow2.f32 %v3143_v34  ;;  %v3157_v23 = vmul.f32 1.442695, %v3033_v30  ;;  %v3039_v4 = vsub.f32 0.0, %v2889_v15 }
 0x58d   : > { %v4854_v50 = vpop.eup %4853  ;;  %3681 = vst [vmem:[%s6340_s2 + $0x320] sm:$0xff] %v4852_v45  ;;  %4865 = vpow2.f32 %v3145_v2  ;;  %v3159_v47 = vmul.f32 1.442695, %v3034_v39 }
 0x58e   : > { %v4856_v44 = vpop.eup %4855  ;;  %3686 = vst [vmem:[%s6340_s2 + $0x348] sm:$0xff] %v4854_v50  ;;  %4867 = vpow2.f32 %v3155_v11  ;;  %v3169_v5 = vmul.f32 1.442695, %v3039_v4 }
 0x58f   : > { %v4858_v8 = vpop.eup %4857  ;;  %3689 = vst [vmem:[%s6340_s2 + $0x360] sm:$0xff] %v4856_v44  ;;  %4869 = vpow2.f32 %v3157_v23  ;;  %v2937_v46 = vpop.f32.mrf.mxu2 }
 0x590   : > { %v4860_v48 = vpop.eup %4859  ;;  %3687 = vst [vmem:[%s6340_s2 + $0x350] sm:$0xff] %v4858_v8  ;;  %4871 = vpow2.f32 %v3159_v47  ;;  %v2938_v19 = vadd.f32 %v2937_v46, %v6473_v54  ;;  %v2986_v49 = vpop.f32.mrf.mxu3 }
 0x591   : > { %v4862_v14 = vpop.eup %4861  ;;  %3688 = vst [vmem:[%s6340_s2 + $0x358] sm:$0xff] %v4860_v48  ;;  %4873 = vpow2.f32 %v3169_v5  ;;  %v2987_v51 = vadd.f32 %v2986_v49, %v6476_v42  ;;  %v2890_v20 = vpop.f32.mrf.mxu1 }
 0x592   : > { %v4864_v38 = vpop.eup %4863  ;;  %3585 = vst [vmem:[%s6340_s2 + $0x20] sm:$0xff] %v4862_v14  ;;  %v2891_v52 = vadd.f32 %v2890_v20, %v6464_v32  ;;  %v3040_v21 = vsub.f32 0.0, %v2938_v19 }
 0x593   : > { %v4866_v55 = vpop.eup %4865  ;;  %v3362_v62 = vadd.f32 1.0, %v4864_v38  ;;  %v3041_v63 = vsub.f32 0.0, %v2987_v51 }
 0x594   : > { %v4868_v6 = vpop.eup %4867  ;;  %v3363_v36 = vadd.f32 1.0, %v4866_v55  ;;  %v3046_v10 = vsub.f32 0.0, %v2891_v52  ;;  %v3171_v18 = vmul.f32 1.442695, %v3040_v21 }
 0x595   : > { %v4870_v60 = vpop.eup %4869  ;;  %4875 = vrcp.f32 %v3362_v62  ;;  %v3368_v37 = vadd.f32 1.0, %v4868_v6  ;;  %v3173_v41 = vmul.f32 1.442695, %v3041_v63 }
 0x596   : > { %v4872_v61 = vpop.eup %4871  ;;  %4877 = vrcp.f32 %v3363_v36  ;;  %v3369_v12 = vadd.f32 1.0, %v4870_v60  ;;  %v3183_v25 = vmul.f32 1.442695, %v3046_v10 }
 0x597   : > { %v4874_v13 = vpop.eup %4873  ;;  %4879 = vrcp.f32 %v3368_v37  ;;  %v3370_v16 = vadd.f32 1.0, %v4872_v61  ;;  %v2939_v9 = vpop.f32.mrf.mxu2 }
 0x598   : > { %4881 = vrcp.f32 %v3369_v12  ;;  %v3375_v7 = vadd.f32 1.0, %v4874_v13  ;;  %v2940_v56 = vadd.f32 %v2939_v9, %v6473_v54  ;;  %v2988_v24 = vpop.f32.mrf.mxu3 }
 0x599   : > { %4883 = vrcp.f32 %v3370_v16  ;;  %v2989_v26 = vadd.f32 %v2988_v24, %v6476_v42  ;;  %v2893_v27 = vpop.f32.mrf.mxu1 }
 0x59a   : > { %4885 = vrcp.f32 %v3375_v7  ;;  %v3047_v0 = vsub.f32 0.0, %v2940_v56  ;;  %v2894_v1 = vadd.f32 %v2893_v27, %v6464_v32 }
 0x59b   : > { %v4876_v43 = vpop.eup %4875  ;;  %4887 = vpow2.f32 %v3171_v18  ;;  %v3048_v31 = vsub.f32 0.0, %v2989_v26 }
 0x59c   : > { %v4878_v28 = vpop.eup %4877  ;;  %3586 = vst [vmem:[%s6340_s2 + $0x28] sm:$0xff] %v4876_v43  ;;  %4889 = vpow2.f32 %v3173_v41  ;;  %v3185_v53 = vmul.f32 1.442695, %v3047_v0  ;;  %v3053_v33 = vsub.f32 0.0, %v2894_v1 }
 0x59d   : > { %v4880_v59 = vpop.eup %4879  ;;  %3587 = vst [vmem:[%s6340_s2 + $0x30] sm:$0xff] %v4878_v28  ;;  %4891 = vpow2.f32 %v3183_v25  ;;  %v3187_v29 = vmul.f32 1.442695, %v3048_v31 }
 0x59e   : > { %v4882_v34 = vpop.eup %4881  ;;  %3592 = vst [vmem:[%s6340_s2 + $0x58] sm:$0xff] %v4880_v59  ;;  %4893 = vpow2.f32 %v3185_v53  ;;  %v3197_v35 = vmul.f32 1.442695, %v3053_v33 }
 0x59f   : > { %v4884_v40 = vpop.eup %4883  ;;  %3593 = vst [vmem:[%s6340_s2 + $0x60] sm:$0xff] %v4882_v34  ;;  %4895 = vpow2.f32 %v3187_v29  ;;  %v2942_v17 = vpop.f32.mrf.mxu2 }
 0x5a0   : > { %v4886_v58 = vpop.eup %4885  ;;  %3594 = vst [vmem:[%s6340_s2 + $0x68] sm:$0xff] %v4884_v40  ;;  %4897 = vpow2.f32 %v3197_v35  ;;  %v2943_v2 = vadd.f32 %v2942_v17, %v6473_v54  ;;  %v2991_v57 = vpop.f32.mrf.mxu3 }
 0x5a1   : > { %v4888_v22 = vpop.eup %4887  ;;  %3599 = vst [vmem:[%s6340_s2 + $0x90] sm:$0xff] %v4886_v58  ;;  %v2992_v11 = vadd.f32 %v2991_v57, %v6476_v42  ;;  %v2895_v30 = vpop.f32.mrf.mxu1 }
 0x5a2   : > { %v4890_v15 = vpop.eup %4889  ;;  %v3376_v3 = vadd.f32 1.0, %v4888_v22  ;;  %v3054_v39 = vsub.f32 0.0, %v2943_v2  ;;  %v2896_v45 = vadd.f32 %v2895_v30, %v6464_v32 }
 0x5a3   : > { %v4892_v23 = vpop.eup %4891  ;;  %v3377_v4 = vadd.f32 1.0, %v4890_v15  ;;  %v3055_v50 = vsub.f32 0.0, %v2992_v11 }
 0x5a4   : > { %v4894_v47 = vpop.eup %4893  ;;  %4899 = vrcp.f32 %v3376_v3  ;;  %v3382_v44 = vadd.f32 1.0, %v4892_v23  ;;  %v3060_v5 = vsub.f32 0.0, %v2896_v45  ;;  %v3199_v49 = vmul.f32 1.442695, %v3054_v39 }
 0x5a5   : > { %v4896_v8 = vpop.eup %4895  ;;  %4901 = vrcp.f32 %v3377_v4  ;;  %v3383_v46 = vadd.f32 1.0, %v4894_v47  ;;  %v3201_v51 = vmul.f32 1.442695, %v3055_v50 }
 0x5a6   : > { %v4898_v48 = vpop.eup %4897  ;;  %4903 = vrcp.f32 %v3382_v44  ;;  %v3384_v19 = vadd.f32 1.0, %v4896_v8  ;;  %v3211_v38 = vmul.f32 1.442695, %v3060_v5 }
 0x5a7   : > { %4905 = vrcp.f32 %v3383_v46  ;;  %v3389_v14 = vadd.f32 1.0, %v4898_v48  ;;  %v2944_v20 = vpop.f32.mrf.mxu2 }
 0x5a8   : > { %4907 = vrcp.f32 %v3384_v19  ;;  %v2945_v52 = vadd.f32 %v2944_v20, %v6473_v54  ;;  %v2993_v55 = vpop.f32.mrf.mxu3 }
 0x5a9   : > { %4909 = vrcp.f32 %v3389_v14  ;;  %v2994_v62 = vadd.f32 %v2993_v55, %v6476_v42  ;;  %v2898_v21 = vpop.f32.mrf.mxu1 }
 0x5aa   : > { %v4900_v6 = vpop.eup %4899  ;;  %4911 = vpow2.f32 %v3199_v49  ;;  %v3061_v36 = vsub.f32 0.0, %v2945_v52  ;;  %v2899_v63 = vadd.f32 %v2898_v21, %v6464_v32 }
 0x5ab   : > { %v4902_v60 = vpop.eup %4901  ;;  %3600 = vst [vmem:[%s6340_s2 + $0x98] sm:$0xff] %v4900_v6  ;;  %4913 = vpow2.f32 %v3201_v51  ;;  %v3062_v37 = vsub.f32 0.0, %v2994_v62 }
 0x5ac   : > { %v4904_v10 = vpop.eup %4903  ;;  %3601 = vst [vmem:[%s6340_s2 + $0xa0] sm:$0xff] %v4902_v60  ;;  %4915 = vpow2.f32 %v3211_v38  ;;  %v3213_v61 = vmul.f32 1.442695, %v3061_v36  ;;  %v3067_v12 = vsub.f32 0.0, %v2899_v63 }
 0x5ad   : > { %v4906_v13 = vpop.eup %4905  ;;  %3606 = vst [vmem:[%s6340_s2 + $0xc8] sm:$0xff] %v4904_v10  ;;  %v3215_v16 = vmul.f32 1.442695, %v3062_v37 }
 0x5ae   : > { %v4908_v18 = vpop.eup %4907  ;;  %3607 = vst [vmem:[%s6340_s2 + $0xd0] sm:$0xff] %v4906_v13  ;;  %4917 = vpow2.f32 %v3213_v61  ;;  %v3225_v9 = vmul.f32 1.442695, %v3067_v12 }
 0x5af   : > { %v4910_v7 = vpop.eup %4909  ;;  %3608 = vst [vmem:[%s6340_s2 + $0xd8] sm:$0xff] %v4908_v18  ;;  %4919 = vpow2.f32 %v3215_v16  ;;  %v2947_v41 = vpop.f32.mrf.mxu2 }
 0x5b0   : > { %v4912_v56 = vpop.eup %4911  ;;  %3613 = vst [vmem:[%s6340_s2 + $0x100] sm:$0xff] %v4910_v7  ;;  %4921 = vpow2.f32 %v3225_v9  ;;  %v2948_v24 = vadd.f32 %v2947_v41, %v6473_v54  ;;  %v2996_v25 = vpop.f32.mrf.mxu3 }
 0x5b1   : > { %v4914_v26 = vpop.eup %4913  ;;  %v3390_v27 = vadd.f32 1.0, %v4912_v56  ;;  %v2997_v0 = vadd.f32 %v2996_v25, %v6476_v42  ;;  %v2900_v1 = vpop.f32.mrf.mxu1 }
 0x5b2   : > { %v4916_v43 = vpop.eup %4915  ;;  %v3391_v31 = vadd.f32 1.0, %v4914_v26  ;;  %v3068_v28 = vsub.f32 0.0, %v2948_v24  ;;  %v2901_v53 = vadd.f32 %v2900_v1, %v6464_v32 }
 0x5b3   : > { %4923 = vrcp.f32 %v3390_v27  ;;  %v3396_v33 = vadd.f32 1.0, %v4916_v43  ;;  %v3069_v59 = vsub.f32 0.0, %v2997_v0 }
 0x5b4   : > { %v4918_v29 = vpop.eup %4917  ;;  %4925 = vrcp.f32 %v3391_v31  ;;  %v3227_v34 = vmul.f32 1.442695, %v3068_v28  ;;  %v3074_v35 = vsub.f32 0.0, %v2901_v53 }
 0x5b5   : > { %v4920_v40 = vpop.eup %4919  ;;  %4927 = vrcp.f32 %v3396_v33  ;;  %v3397_v17 = vadd.f32 1.0, %v4918_v29  ;;  %v3229_v57 = vmul.f32 1.442695, %v3069_v59 }
 0x5b6   : > { %v4922_v58 = vpop.eup %4921  ;;  %v3398_v2 = vadd.f32 1.0, %v4920_v40  ;;  %4929 = vpow2.f32 %v3227_v34  ;;  %v3239_v11 = vmul.f32 1.442695, %v3074_v35 }
 0x5b7   : > { %4931 = vrcp.f32 %v3397_v17  ;;  %v3403_v22 = vadd.f32 1.0, %v4922_v58  ;;  %v2949_v30 = vpop.f32.mrf.mxu2 }
 0x5b8   : > { %4933 = vrcp.f32 %v3398_v2  ;;  %v2950_v15 = vadd.f32 %v2949_v30, %v6473_v54  ;;  %v2998_v3 = vpop.f32.mrf.mxu3 }
 0x5b9   : > { %v4924_v39 = vpop.eup %4923  ;;  %4935 = vrcp.f32 %v3403_v22  ;;  %v2999_v45 = vadd.f32 %v2998_v3, %v6476_v42  ;;  %v2903_v23 = vpop.f32.mrf.mxu1 }
 0x5ba   : > { %v4926_v4 = vpop.eup %4925  ;;  %3614 = vst [vmem:[%s6340_s2 + $0x108] sm:$0xff] %v4924_v39  ;;  %4937 = vpow2.f32 %v3229_v57  ;;  %v3075_v50 = vsub.f32 0.0, %v2950_v15  ;;  %v2904_v47 = vadd.f32 %v2903_v23, %v6464_v32 }
 0x5bb   : > { %v4928_v44 = vpop.eup %4927  ;;  %3615 = vst [vmem:[%s6340_s2 + $0x110] sm:$0xff] %v4926_v4  ;;  %4939 = vpow2.f32 %v3239_v11  ;;  %v3076_v5 = vsub.f32 0.0, %v2999_v45 }
 0x5bc   : > { %v4930_v8 = vpop.eup %4929  ;;  %3620 = vst [vmem:[%s6340_s2 + $0x138] sm:$0xff] %v4928_v44  ;;  %v3241_v46 = vmul.f32 1.442695, %v3075_v50  ;;  %v3081_v48 = vsub.f32 0.0, %v2904_v47 }
 0x5bd   : > { %v4932_v19 = vpop.eup %4931  ;;  %v3404_v49 = vadd.f32 1.0, %v4930_v8  ;;  %v3243_v14 = vmul.f32 1.442695, %v3076_v5 }
 0x5be   : > { %v4934_v51 = vpop.eup %4933  ;;  %3621 = vst [vmem:[%s6340_s2 + $0x140] sm:$0xff] %v4932_v19  ;;  %4941 = vpow2.f32 %v3241_v46  ;;  %v3253_v20 = vmul.f32 1.442695, %v3081_v48 }
 0x5bf   : > { %v4936_v38 = vpop.eup %4935  ;;  %3622 = vst [vmem:[%s6340_s2 + $0x148] sm:$0xff] %v4934_v51  ;;  %4943 = vrcp.f32 %v3404_v49  ;;  %v2952_v52 = vpop.f32.mrf.mxu2 }
 0x5c0   : > { %v4938_v55 = vpop.eup %4937  ;;  %3627 = vst [vmem:[%s6340_s2 + $0x170] sm:$0xff] %v4936_v38  ;;  %4945 = vpow2.f32 %v3243_v14  ;;  %v2953_v62 = vadd.f32 %v2952_v52, %v6473_v54  ;;  %v3001_v21 = vpop.f32.mrf.mxu3 }
 0x5c1   : > { %v4940_v6 = vpop.eup %4939  ;;  %v3405_v36 = vadd.f32 1.0, %v4938_v55  ;;  %4947 = vpow2.f32 %v3253_v20  ;;  %v3002_v63 = vadd.f32 %v3001_v21, %v6476_v42  ;;  %v2905_v60 = vpop.f32.mrf.mxu1 }
 0x5c2   : > { %v3410_v37 = vadd.f32 1.0, %v4940_v6  ;;  %v3082_v10 = vsub.f32 0.0, %v2953_v62  ;;  %v2906_v61 = vadd.f32 %v2905_v60, %v6464_v32 }
 0x5c3   : > { %4949 = vrcp.f32 %v3405_v36  ;;  %v3083_v12 = vsub.f32 0.0, %v3002_v63 }
 0x5c4   : > { %v4942_v13 = vpop.eup %4941  ;;  %4951 = vrcp.f32 %v3410_v37  ;;  %v3255_v16 = vmul.f32 1.442695, %v3082_v10  ;;  %v3088_v18 = vsub.f32 0.0, %v2906_v61 }
 0x5c5   : > { %v4944_v9 = vpop.eup %4943  ;;  %v3411_v7 = vadd.f32 1.0, %v4942_v13  ;;  %v3257_v41 = vmul.f32 1.442695, %v3083_v12 }
 0x5c6   : > { %v4946_v56 = vpop.eup %4945  ;;  %3628 = vst [vmem:[%s6340_s2 + $0x178] sm:$0xff] %v4944_v9  ;;  %4953 = vpow2.f32 %v3255_v16  ;;  %v3267_v26 = vmul.f32 1.442695, %v3088_v18 }
 0x5c7   : > { %v4948_v24 = vpop.eup %4947  ;;  %4955 = vrcp.f32 %v3411_v7  ;;  %v3412_v25 = vadd.f32 1.0, %v4946_v56  ;;  %v2954_v27 = vpop.f32.mrf.mxu2 }
 0x5c8   : > { %v3417_v0 = vadd.f32 1.0, %v4948_v24  ;;  %4957 = vpow2.f32 %v3257_v41  ;;  %v2955_v1 = vadd.f32 %v2954_v27, %v6473_v54  ;;  %v3003_v43 = vpop.f32.mrf.mxu3 }
 0x5c9   : > { %v4950_v31 = vpop.eup %4949  ;;  %4959 = vrcp.f32 %v3412_v25  ;;  %v3004_v28 = vadd.f32 %v3003_v43, %v6476_v42  ;;  %v2908_v53 = vpop.f32.mrf.mxu1 }
 0x5ca   : > { %v4952_v33 = vpop.eup %4951  ;;  %3629 = vst [vmem:[%s6340_s2 + $0x180] sm:$0xff] %v4950_v31  ;;  %4961 = vrcp.f32 %v3417_v0  ;;  %v3089_v59 = vsub.f32 0.0, %v2955_v1  ;;  %v2909_v29 = vadd.f32 %v2908_v53, %v6464_v32 }
 0x5cb   : > { %3634 = vst [vmem:[%s6340_s2 + $0x1a8] sm:$0xff] %v4952_v33  ;;  %4963 = vpow2.f32 %v3267_v26  ;;  %v3090_v34 = vsub.f32 0.0, %v3004_v28 }
 0x5cc   : > { %v4954_v35 = vpop.eup %4953  ;;  %v3269_v40 = vmul.f32 1.442695, %v3089_v59  ;;  %v3095_v17 = vsub.f32 0.0, %v2909_v29 }
 0x5cd   : > { %v4956_v58 = vpop.eup %4955  ;;  %v3418_v2 = vadd.f32 1.0, %v4954_v35  ;;  %v3271_v57 = vmul.f32 1.442695, %v3090_v34 }
 0x5ce   : > { %v4958_v22 = vpop.eup %4957  ;;  %3635 = vst [vmem:[%s6340_s2 + $0x1b0] sm:$0xff] %v4956_v58  ;;  %4965 = vpow2.f32 %v3269_v40  ;;  %v3281_v11 = vmul.f32 1.442695, %v3095_v17 }
 0x5cf   : > { %v4960_v30 = vpop.eup %4959  ;;  %4967 = vrcp.f32 %v3418_v2  ;;  %v3419_v15 = vadd.f32 1.0, %v4958_v22  ;;  %v2957_v3 = vpop.f32.mrf.mxu2 }
 0x5d0   : > { %v4962_v39 = vpop.eup %4961  ;;  %3636 = vst [vmem:[%s6340_s2 + $0x1b8] sm:$0xff] %v4960_v30  ;;  %4969 = vpow2.f32 %v3271_v57  ;;  %v2958_v45 = vadd.f32 %v2957_v3, %v6473_v54  ;;  %v3006_v23 = vpop.f32.mrf.mxu3 }
 0x5d1   : > { %v4964_v4 = vpop.eup %4963  ;;  %3641 = vst [vmem:[%s6340_s2 + $0x1e0] sm:$0xff] %v4962_v39  ;;  %4971 = vrcp.f32 %v3419_v15  ;;  %v3007_v50 = vadd.f32 %v3006_v23, %v6476_v42  ;;  %v2910_v47 = vpop.f32.mrf.mxu1 }
 0x5d2   : > { %v3424_v44 = vadd.f32 1.0, %v4964_v4  ;;  %4973 = vpow2.f32 %v3281_v11  ;;  %v3096_v5 = vsub.f32 0.0, %v2958_v45  ;;  %v2911_v8 = vadd.f32 %v2910_v47, %v6464_v32 }
 0x5d3   : > { %v3097_v46 = vsub.f32 0.0, %v3007_v50 }
 0x5d4   : > { %v4966_v48 = vpop.eup %4965  ;;  %4975 = vrcp.f32 %v3424_v44  ;;  %v3283_v19 = vmul.f32 1.442695, %v3096_v5  ;;  %v3102_v49 = vsub.f32 0.0, %v2911_v8 }
 0x5d5   : > { %v4968_v14 = vpop.eup %4967  ;;  %v3425_v51 = vadd.f32 1.0, %v4966_v48  ;;  %v3285_v20 = vmul.f32 1.442695, %v3097_v46 }
 0x5d6   : > { %v4970_v38 = vpop.eup %4969  ;;  %3642 = vst [vmem:[%s6340_s2 + $0x1e8] sm:$0xff] %v4968_v14  ;;  %4977 = vpow2.f32 %v3283_v19  ;;  %v3295_v52 = vmul.f32 1.442695, %v3102_v49 }
 0x5d7   : > { %v4972_v55 = vpop.eup %4971  ;;  %4979 = vrcp.f32 %v3425_v51  ;;  %v3426_v62 = vadd.f32 1.0, %v4970_v38  ;;  %v2959_v21 = vpop.f32.mrf.mxu2 }
 0x5d8   : > { %v4974_v6 = vpop.eup %4973  ;;  %3643 = vst [vmem:[%s6340_s2 + $0x1f0] sm:$0xff] %v4972_v55  ;;  %4981 = vpow2.f32 %v3285_v20  ;;  %v2960_v36 = vadd.f32 %v2959_v21, %v6473_v54  ;;  %v3008_v63 = vpop.f32.mrf.mxu3 }
 0x5d9   : > { %4983 = vrcp.f32 %v3426_v62  ;;  %v3431_v60 = vadd.f32 1.0, %v4974_v6  ;;  %v3009_v37 = vadd.f32 %v3008_v63, %v6476_v42  ;;  %v2913_v10 = vpop.f32.mrf.mxu1 }
 0x5da   : > { %v4976_v61 = vpop.eup %4975  ;;  %4985 = vpow2.f32 %v3295_v52  ;;  %v3103_v12 = vsub.f32 0.0, %v2960_v36  ;;  %v2914_v13 = vadd.f32 %v2913_v10, %v6464_v32 }
 0x5db   : > { %3648 = vst [vmem:[%s6340_s2 + $0x218] sm:$0xff] %v4976_v61  ;;  %4987 = vrcp.f32 %v3431_v60  ;;  %v3104_v16 = vsub.f32 0.0, %v3009_v37 }
 0x5dc   : > { %v4978_v18 = vpop.eup %4977  ;;  %v3297_v9 = vmul.f32 1.442695, %v3103_v12  ;;  %v3109_v7 = vsub.f32 0.0, %v2914_v13 }
 0x5dd   : > { %v4980_v41 = vpop.eup %4979  ;;  %v3432_v56 = vadd.f32 1.0, %v4978_v18  ;;  %v3299_v24 = vmul.f32 1.442695, %v3104_v16 }
 0x5de   : > { %v4982_v25 = vpop.eup %4981  ;;  %3649 = vst [vmem:[%s6340_s2 + $0x220] sm:$0xff] %v4980_v41  ;;  %4989 = vpow2.f32 %v3297_v9  ;;  %v3309_v26 = vmul.f32 1.442695, %v3109_v7 }
 0x5df   : > { %v4984_v27 = vpop.eup %4983  ;;  %4991 = vrcp.f32 %v3432_v56  ;;  %v3433_v0 = vadd.f32 1.0, %v4982_v25  ;;  %v2962_v1 = vpop.f32.mrf.mxu2 }
 0x5e0   : > { %v4986_v43 = vpop.eup %4985  ;;  %3650 = vst [vmem:[%s6340_s2 + $0x228] sm:$0xff] %v4984_v27  ;;  %4993 = vpow2.f32 %v3299_v24  ;;  %v2963_v31 = vadd.f32 %v2962_v1, %v6473_v54  ;;  %v3011_v28 = vpop.f32.mrf.mxu3 }
 0x5e1   : > { %v4988_v53 = vpop.eup %4987  ;;  %4995 = vrcp.f32 %v3433_v0  ;;  %v3438_v33 = vadd.f32 1.0, %v4986_v43  ;;  %v3012_v59 = vadd.f32 %v3011_v28, %v6476_v42  ;;  %v2915_v29 = vpop.f32.mrf.mxu1 }
 0x5e2   : > { %3655 = vst [vmem:[%s6340_s2 + $0x250] sm:$0xff] %v4988_v53  ;;  %4997 = vpow2.f32 %v3309_v26  ;;  %v3110_v34 = vsub.f32 0.0, %v2963_v31  ;;  %v2916_v35 = vadd.f32 %v2915_v29, %v6464_v32 }
 0x5e3   : > { %4999 = vrcp.f32 %v3438_v33  ;;  %v3111_v40 = vsub.f32 0.0, %v3012_v59 }
 0x5e4   : > { %v4990_v17 = vpop.eup %4989  ;;  %v3311_v58 = vmul.f32 1.442695, %v3110_v34  ;;  %v3116_v2 = vsub.f32 0.0, %v2916_v35 }
 0x5e5   : > { %v4992_v57 = vpop.eup %4991  ;;  %v3439_v22 = vadd.f32 1.0, %v4990_v17  ;;  %v3313_v11 = vmul.f32 1.442695, %v3111_v40 }
 0x5e6   : > { %v4994_v30 = vpop.eup %4993  ;;  %3656 = vst [vmem:[%s6340_s2 + $0x258] sm:$0xff] %v4992_v57  ;;  %5001 = vpow2.f32 %v3311_v58  ;;  %v3323_v15 = vmul.f32 1.442695, %v3116_v2 }
 0x5e7   : > { %v4996_v3 = vpop.eup %4995  ;;  %5003 = vrcp.f32 %v3439_v22  ;;  %v3440_v39 = vadd.f32 1.0, %v4994_v30  ;;  %v2964_v45 = vpop.f32.mrf.mxu2 }
 0x5e8   : > { %v4998_v23 = vpop.eup %4997  ;;  %3657 = vst [vmem:[%s6340_s2 + $0x260] sm:$0xff] %v4996_v3  ;;  %5005 = vpow2.f32 %v3313_v11  ;;  %v2965_v4 = vadd.f32 %v2964_v45, %v6473_v54  ;;  %v3013_v50 = vpop.f32.mrf.mxu3 }
 0x5e9   : > { %v5000_v47 = vpop.eup %4999  ;;  %5007 = vrcp.f32 %v3440_v39  ;;  %v3445_v44 = vadd.f32 1.0, %v4998_v23  ;;  %v3014_v5 = vadd.f32 %v3013_v50, %v6476_v42  ;;  %v2918_v8 = vpop.f32.mrf.mxu1 }
 0x5ea   : > { %3662 = vst [vmem:[%s6340_s2 + $0x288] sm:$0xff] %v5000_v47  ;;  %5009 = vpow2.f32 %v3323_v15  ;;  %v3117_v46 = vsub.f32 0.0, %v2965_v4  ;;  %v2919_v48 = vadd.f32 %v2918_v8, %v6464_v32 }
 0x5eb   : > { %5011 = vrcp.f32 %v3445_v44  ;;  %v3118_v19 = vsub.f32 0.0, %v3014_v5 }
 0x5ec   : > { %v5002_v49 = vpop.eup %5001  ;;  %v3325_v14 = vmul.f32 1.442695, %v3117_v46  ;;  %v3123_v51 = vsub.f32 0.0, %v2919_v48 }
 0x5ed   : > { %v5004_v20 = vpop.eup %5003  ;;  %v3446_v38 = vadd.f32 1.0, %v5002_v49  ;;  %v3327_v52 = vmul.f32 1.442695, %v3118_v19 }
 0x5ee   : > { %v5006_v55 = vpop.eup %5005  ;;  %3663 = vst [vmem:[%s6340_s2 + $0x290] sm:$0xff] %v5004_v20  ;;  %5013 = vpow2.f32 %v3325_v14  ;;  %v3337_v62 = vmul.f32 1.442695, %v3123_v51 }
 0x5ef   : > { %v5008_v21 = vpop.eup %5007  ;;  %5015 = vrcp.f32 %v3446_v38  ;;  %v3447_v6 = vadd.f32 1.0, %v5006_v55  ;;  %v2967_v36 = vpop.f32.mrf.mxu2 }
 0x5f0   : > { %v5010_v63 = vpop.eup %5009  ;;  %3664 = vst [vmem:[%s6340_s2 + $0x298] sm:$0xff] %v5008_v21  ;;  %5017 = vpow2.f32 %v3327_v52  ;;  %v2968_v60 = vadd.f32 %v2967_v36, %v6473_v54  ;;  %v3016_v37 = vpop.f32.mrf.mxu3 }
 0x5f1   : > { %v5012_v10 = vpop.eup %5011  ;;  %5019 = vrcp.f32 %v3447_v6  ;;  %v3452_v61 = vadd.f32 1.0, %v5010_v63  ;;  %v3017_v12 = vadd.f32 %v3016_v37, %v6476_v42  ;;  %v2920_v13 = vpop.f32.mrf.mxu1 }
 0x5f2   : > { %3669 = vst [vmem:[%s6340_s2 + $0x2c0] sm:$0xff] %v5012_v10  ;;  %5021 = vpow2.f32 %v3337_v62  ;;  %v3124_v16 = vsub.f32 0.0, %v2968_v60  ;;  %v2921_v18 = vadd.f32 %v2920_v13, %v6464_v32 }
 0x5f3   : > { %5023 = vrcp.f32 %v3452_v61  ;;  %v3125_v9 = vsub.f32 0.0, %v3017_v12 }
 0x5f4   : > { %v5014_v7 = vpop.eup %5013  ;;  %v3339_v41 = vmul.f32 1.442695, %v3124_v16  ;;  %v3130_v56 = vsub.f32 0.0, %v2921_v18 }
 0x5f5   : > { %v5016_v24 = vpop.eup %5015  ;;  %v3453_v25 = vadd.f32 1.0, %v5014_v7  ;;  %v3341_v26 = vmul.f32 1.442695, %v3125_v9 }
 0x5f6   : > { %v5018_v27 = vpop.eup %5017  ;;  %3670 = vst [vmem:[%s6340_s2 + $0x2c8] sm:$0xff] %v5016_v24  ;;  %5025 = vpow2.f32 %v3339_v41  ;;  %v3351_v0 = vmul.f32 1.442695, %v3130_v56 }
 0x5f7   : > { %v5020_v1 = vpop.eup %5019  ;;  %5027 = vrcp.f32 %v3453_v25  ;;  %v3454_v43 = vadd.f32 1.0, %v5018_v27  ;;  %v2969_v31 = vpop.f32.mrf.mxu2 }
 0x5f8   : > { %v5022_v28 = vpop.eup %5021  ;;  %3671 = vst [vmem:[%s6340_s2 + $0x2d0] sm:$0xff] %v5020_v1  ;;  %5029 = vpow2.f32 %v3341_v26  ;;  %v2970_v32 = vadd.f32 %v2969_v31, %v6473_v54  ;;  %v3018_v53 = vpop.f32.mrf.mxu3 }
 0x5f9   : > { %v5024_v33 = vpop.eup %5023  ;;  %5031 = vrcp.f32 %v3454_v43  ;;  %v3459_v59 = vadd.f32 1.0, %v5022_v28  ;;  %v3019_v29 = vadd.f32 %v3018_v53, %v6476_v42 }
 0x5fa   : > { %3676 = vst [vmem:[%s6340_s2 + $0x2f8] sm:$0xff] %v5024_v33  ;;  %5033 = vpow2.f32 %v3351_v0  ;;  %v3131_v34 = vsub.f32 0.0, %v2970_v32 }
 0x5fb   : > { %5035 = vrcp.f32 %v3459_v59  ;;  %v3132_v35 = vsub.f32 0.0, %v3019_v29 }
 0x5fc   : > { %v5026_v40 = vpop.eup %5025  ;;  %v3353_v17 = vmul.f32 1.442695, %v3131_v34 }
 0x5fd   : > { %v5028_v58 = vpop.eup %5027  ;;  %v3460_v2 = vadd.f32 1.0, %v5026_v40  ;;  %v3355_v57 = vmul.f32 1.442695, %v3132_v35 }
 0x5fe   : > { %v5030_v54 = vpop.eup %5029  ;;  %3677 = vst [vmem:[%s6340_s2 + $0x300] sm:$0xff] %v5028_v58  ;;  %5037 = vpow2.f32 %v3353_v17 }
 0x5ff   : > { %v5032_v22 = vpop.eup %5031  ;;  %5039 = vrcp.f32 %v3460_v2  ;;  %v3461_v11 = vadd.f32 1.0, %v5030_v54 }
 0x600   : > { %v5034_v42 = vpop.eup %5033  ;;  %3678 = vst [vmem:[%s6340_s2 + $0x308] sm:$0xff] %v5032_v22  ;;  %5041 = vpow2.f32 %v3355_v57 }
 0x601   : > { %v5036_v30 = vpop.eup %5035  ;;  %5043 = vrcp.f32 %v3461_v11  ;;  %v3466_v15 = vadd.f32 1.0, %v5034_v42 }
 0x602   : > { %3683 = vst [vmem:[%s6340_s2 + $0x330] sm:$0xff] %v5036_v30 }
 0x603   : > { %5045 = vrcp.f32 %v3466_v15 }
 0x604   : > { %v5038_v3 = vpop.eup %5037 }
 0x605   : > { %v5040_v39 = vpop.eup %5039  ;;  %v3467_v45 = vadd.f32 1.0, %v5038_v3 }
 0x606   : > { %v5042_v23 = vpop.eup %5041  ;;  %3684 = vst [vmem:[%s6340_s2 + $0x338] sm:$0xff] %v5040_v39 }
 0x607   : > { %v5044_v4 = vpop.eup %5043  ;;  %5047 = vrcp.f32 %v3467_v45  ;;  %v3468_v50 = vadd.f32 1.0, %v5042_v23 }
 0x608   : > { %3685 = vst [vmem:[%s6340_s2 + $0x340] sm:$0xff] %v5044_v4 }
 0x609   : > { %v5046_v47 = vpop.eup %5045  ;;  %5049 = vrcp.f32 %v3468_v50 }
 0x60a   : > { %3690 = vst [vmem:[%s6340_s2 + $0x368] sm:$0xff] %v5046_v47 }
 0x60d   : > { %v5048_v44 = vpop.eup %5047 }
 0x60e   : > { %3691 = vst [vmem:[%s6340_s2 + $0x370] sm:$0xff] %v5048_v44 }
 0x60f   : > { %v5050_v5 = vpop.eup %5049 }
 0x610   : > { %3692 = vst [vmem:[%s6340_s2 + $0x378] sm:$0xff] %v5050_v5 }
 0x611 PF: > { %s29_s27 = sadd.s32 1, %s5058_s27  }
 0x612   : > { %p26_p4 = scmp.ge.s32.totalorder %s29_s27, 5  }
 0x614   :  { %28 = sbr.rel (!%p26_p4) target bundleno = 4 (0x4), region = 130 }

</bundles_post_ra>
